<compile_context>
chip_gen: v6e
topology: v6e:2x2x1
jax: 0.10.0
libtpu: 0.0.40
codegen_flags: <defaults>
</compile_context>

<pallas_src>
import functools

import numpy as np
import jax
import jax.numpy as jnp
from jax import lax
from jax.experimental import pallas as pl
from jax.experimental.pallas import tpu as pltpu

BN_EPS = 1e-5  # nn.BatchNorm2d default

# Polyphase tap mapping: for output parity d in {0,1}, original 3-tap offset k lands on
# offset _PHASE_MAP[d][k] of the 1-padded original-resolution input (coinciding taps sum).
_PHASE_MAP = ((0, 1, 1), (1, 1, 2))


def _fold_weights(w_oihw):
    """OIHW 3x3 conv weight -> polyphase-folded (3, 3, Cin, 4*Cout) weight.

    conv(upsample2x(x))[n, co, 2i+dy, 2j+dx]
        = sum_{a,b,ci} wfold[a, b, ci, (2*dy+dx)*Cout + co] * x_pad[n, i+a, j+b, ci]
    (conv bias excluded: it cancels exactly under train-mode BatchNorm).
    """
    Cout, Cin, _, _ = w_oihw.shape
    w_hwio = jnp.transpose(w_oihw, (2, 3, 1, 0)).astype(jnp.float32)   # (ky, kx, Cin, Cout)
    m = np.zeros((2, 3, 3), np.float32)                                # m[d, k, a]
    for d in range(2):
        for k in range(3):
            m[d, k, _PHASE_MAP[d][k]] = 1.0
    m = jnp.asarray(m)
    wf = jnp.einsum("dka,exb,kxic->abidec", m, m, w_hwio)              # (a,b,ci,dy,dx,co)
    return wf.reshape(3, 3, Cin, 4 * Cout)


def _conv_tile(x_ref, w_ref, tile_rows):
    """f32 (tile_rows*W0, 4*Cout) polyphase-conv accumulator for one row-slab.

    x_ref: (1, H0+2, W0+2, Cin) bf16 (whole padded image; DMA elided across row tiles)
    w_ref: (3, 3, Cin, 4*Cout) bf16 folded weights.
    """
    W0 = x_ref.shape[2] - 2
    Cin = x_ref.shape[3]
    row0 = pl.multiple_of(pl.program_id(1) * tile_rows, tile_rows)
    acc = None
    for b in range(3):
        # Column-tap shift taken at load time; stays bf16 (no f32 widen).
        col = x_ref[0, pl.ds(row0, tile_rows + 2), b:b + W0, :]        # (TH+2, W0, Cin)
        for a in range(3):
            # Row-tap shift is a free leading-dim slice of the loaded value.
            patch = col[a:a + tile_rows].reshape(tile_rows * W0, Cin)  # bf16
            part = jnp.dot(patch, w_ref[a, b],
                           preferred_element_type=jnp.float32)
            acc = part if acc is None else acc + part
    return acc


def _stats_kernel(x_ref, w_ref, sum_ref, sq_ref, *, tile_rows):
    # Per-(image, row-tile) partial sums of the bias-free conv output: tiny outputs,
    # the conv intermediate never reaches HBM.
    acc = _conv_tile(x_ref, w_ref, tile_rows)
    sum_ref[0, 0] = jnp.sum(acc, axis=0, keepdims=True)
    sq_ref[0, 0] = jnp.sum(acc * acc, axis=0, keepdims=True)


def _conv_bn_relu_kernel(x_ref, w_ref, scale_ref, shift_ref, o_ref, *, tile_rows):
    # Fused conv (recomputed) + BatchNorm (pre-folded per-channel scale/shift) + ReLU.
    # Output stored bf16 (halves the dominant HBM write).
    acc = _conv_tile(x_ref, w_ref, tile_rows)
    y = acc * scale_ref[0][None, :] + shift_ref[0][None, :]
    o_ref[0] = jnp.maximum(y, 0.0).astype(o_ref.dtype)


def _pick_tile_rows(H0, W0, Cin, Cout, budget_bytes):
    """Largest row-tile TH dividing H0 whose per-step working set fits the VMEM budget."""
    C4 = 4 * Cout

    def usage(th):
        x_blk = 2 * (H0 + 2) * (W0 + 2) * Cin * 2     # padded image, bf16, double-buffered
        w_blk = 9 * Cin * C4 * 2                      # folded weight, single-buffered
        col = 3 * (th + 2) * W0 * Cin * 2             # bf16 column-tap loads
        acc = 2 * th * W0 * C4 * 4                    # f32 matmul result + running acc
        o_blk = 2 * th * W0 * C4 * 2                  # bf16 output block, double-buffered
        return x_blk + w_blk + col + acc + o_blk

    cands = [d for d in range(H0, 0, -1)
             if H0 % d == 0 and (d == H0 or (d * W0) % 16 == 0)]
    for d in cands:
        if usage(d) <= budget_bytes:
            return d
    # TODO(synk): if even the smallest row tile overflows (huge W0*Cin), the padded image
    # itself no longer fits; switch x to a haloed/manual-DMA tiling in that regime.
    return cands[-1]


def up_conv_forward(x_nchw, w_oihw, b, gamma, beta):
    N, Cin, H0, W0 = x_nchw.shape
    Cout = w_oihw.shape[0]
    C4 = 4 * Cout
    # NOTE: if C4 is not a multiple of 128 (Cout < 32 or not a multiple of 32) the output
    # stores are masked partial stores -- a perf cliff, not a correctness issue.

    # --- generation-parameterized tile size / VMEM limit (v5e 128M, v6e 128M, v7x 64M) ---
    try:
        vmem_bytes = int(pltpu.get_tpu_info().vmem_capacity_bytes)
    except Exception:
        vmem_bytes = 64 * 1024 * 1024
    tile_rows = _pick_tile_rows(H0, W0, Cin, Cout, vmem_bytes // 2)
    n_tiles = H0 // tile_rows
    vmem_limit = min(max(vmem_bytes - (16 << 20), 32 << 20), 100 << 20)

    # --- glue at original resolution only (bf16): NHWC + 1-pixel spatial pad ---
    x_pad = jnp.pad(jnp.transpose(x_nchw, (0, 2, 3, 1)).astype(jnp.bfloat16),
                    ((0, 0), (1, 1), (1, 1), (0, 0)))                 # (N, H0+2, W0+2, Cin)
    wfold = _fold_weights(w_oihw).astype(jnp.bfloat16)                 # (3, 3, Cin, 4*Cout)

    x_spec = pl.BlockSpec((1, H0 + 2, W0 + 2, Cin), lambda n, t: (n, 0, 0, 0))
    w_spec = pl.BlockSpec((3, 3, Cin, C4), lambda n, t: (0, 0, 0, 0),
                          pipeline_mode=pl.Buffered(1))                # grid-invariant
    vec_spec = pl.BlockSpec((1, C4), lambda n, t: (0, 0),
                            pipeline_mode=pl.Buffered(1))
    params = pltpu.CompilerParams(
        dimension_semantics=("parallel", "parallel"),
        vmem_limit_bytes=vmem_limit)

    # --- pass 1: per-(image, row-tile) partial BN statistics ---
    csum, csq = pl.pallas_call(
        functools.partial(_stats_kernel, tile_rows=tile_rows),
        out_shape=(jax.ShapeDtypeStruct((N, n_tiles, 1, C4), jnp.float32),
                   jax.ShapeDtypeStruct((N, n_tiles, 1, C4), jnp.float32)),
        grid=(N, n_tiles),
        in_specs=[x_spec, w_spec],
        out_specs=(pl.BlockSpec((1, 1, 1, C4), lambda n, t: (n, t, 0, 0)),
                   pl.BlockSpec((1, 1, 1, C4), lambda n, t: (n, t, 0, 0))),
        compiler_params=params,
    )(x_pad, wfold)

    # --- fold batch stats + BN affine into per-channel scale/shift ---
    count = jnp.float32(N * 4 * H0 * W0)                # = N * (2*H0) * (2*W0)
    s1 = csum.reshape(-1, 4, Cout).sum(axis=(0, 1))
    s2 = csq.reshape(-1, 4, Cout).sum(axis=(0, 1))
    mean = s1 / count
    var = s2 / count - mean * mean                      # biased variance (PyTorch BN fwd)
    # TODO(synk): E[x^2]-E[x]^2 can cancel for very large N*H*W; use a Welford/two-pass
    # reduction (the per-row-tile partials already shorten the f32 add chains).
    inv_std = lax.rsqrt(var + BN_EPS)
    scale = gamma.astype(jnp.float32) * inv_std
    # The conv bias `b` shifts the conv output and its batch mean identically, so it
    # cancels exactly under train-mode BatchNorm and does not enter scale/shift.
    del b
    shift = beta.astype(jnp.float32) - scale * mean
    scale4 = jnp.tile(scale, 4).reshape(1, C4)          # channel index = phase*Cout + co
    shift4 = jnp.tile(shift, 4).reshape(1, C4)

    # --- pass 2: fused conv + BN + ReLU, bf16 activations written once ---
    out4 = pl.pallas_call(
        functools.partial(_conv_bn_relu_kernel, tile_rows=tile_rows),
        out_shape=jax.ShapeDtypeStruct((N, H0 * W0, C4), jnp.bfloat16),
        grid=(N, n_tiles),
        in_specs=[x_spec, w_spec, vec_spec, vec_spec],
        out_specs=pl.BlockSpec((1, tile_rows * W0, C4), lambda n, t: (n, t, 0)),
        compiler_params=params,
    )(x_pad, wfold, scale4, shift4)

    # --- de-interleave the 4 polyphase outputs into NCHW (one fused XLA transpose, bf16) ---
    out = out4.reshape(N, H0, W0, 2, 2, Cout)           # (n, i, j, dy, dx, co)
    out = jnp.transpose(out, (0, 5, 1, 3, 2, 4))        # (n, co, i, dy, j, dx)
    return out.reshape(N, Cout, 2 * H0, 2 * W0).astype(jnp.float32)


def up_conv_reference(x_nchw, w_oihw, b, gamma, beta):
    """Pure-JAX f32 reference (faithful to the PyTorch module)."""
    x = jnp.transpose(x_nchw, (0, 2, 3, 1)).astype(jnp.float32)
    x = jnp.repeat(jnp.repeat(x, 2, axis=1), 2, axis=2)
    w = jnp.transpose(w_oihw, (2, 3, 1, 0)).astype(jnp.float32)
    y = lax.conv_general_dilated(
        x, w, window_strides=(1, 1), padding="SAME",
        dimension_numbers=("NHWC", "HWIO", "NHWC")) + b[None, None, None, :]
    mean = y.mean(axis=(0, 1, 2))
    var = ((y - mean) ** 2).mean(axis=(0, 1, 2))
    yhat = (y - mean) * lax.rsqrt(var + BN_EPS)
    out = jnp.maximum(yhat * gamma + beta, 0.0)
    return jnp.transpose(out, (0, 3, 1, 2))


if __name__ == "__main__":
    N, ch_in, ch_out, H0, W0 = 2, 4, 8, 16, 16
    key = jax.random.PRNGKey(0)
    k1, k2, k3, k4, k5 = jax.random.split(key, 5)
    x = jax.random.normal(k1, (N, ch_in, H0, W0), dtype=jnp.float32)
    w = jax.random.normal(k2, (ch_out, ch_in, 3, 3), dtype=jnp.float32) * 0.1
    b = jax.random.normal(k3, (ch_out,), dtype=jnp.float32) * 0.1
    gamma = 1.0 + 0.1 * jax.random.normal(k4, (ch_out,), dtype=jnp.float32)
    beta = 0.1 * jax.random.normal(k5, (ch_out,), dtype=jnp.float32)

    fwd = jax.jit(up_conv_forward)
    out = jax.block_until_ready(fwd(x, w, b, gamma, beta))
    ref = jax.block_until_ready(up_conv_reference(x, w, b, gamma, beta))

    assert out.shape == (N, ch_out, 2 * H0, 2 * W0), out.shape
    max_err = float(jnp.max(jnp.abs(out - ref)))
    mean_err = float(jnp.mean(jnp.abs(out - ref)))
    # bf16 MXU operands, bf16 folded weights and bf16 activation storage (f32 accumulation
    # and statistics) vs an all-f32 reference -> ~1-2% of the post-BN dynamic range.
    assert max_err < 1e-1, (max_err, mean_err)
    assert mean_err < 2e-2, (max_err, mean_err)
    print("KERNEL_OK")
</pallas_src>

<mosaic_0001>
module attributes {stable_mosaic.version = 11 : i64} {
  func.func @_stats_kernel(%arg0: i32, %arg1: i32, %arg2: memref<1x18x18x4xbf16, #tpu.memory_space<vmem>>, %arg3: memref<3x3x4x32xbf16, #tpu.memory_space<vmem>>, %arg4: memref<1x1x1x32xf32, #tpu.memory_space<vmem>>, %arg5: memref<1x1x1x32xf32, #tpu.memory_space<vmem>>) attributes {dimension_semantics = [#tpu.dimension_semantics<parallel>, #tpu.dimension_semantics<parallel>], iteration_bounds = array<i64: 2, 1>, scalar_prefetch = 0 : i64, scratch_operands = 0 : i64, tpu.core_type = #tpu.core_type<tc>, window_params = [{transform_indices = @transform_0, window_bounds = array<i64: 1, 18, 18, 4>}, {pipeline_mode = #tpu.pipeline_mode<synchronous>, transform_indices = @transform_1, window_bounds = array<i64: 3, 3, 4, 32>}, {transform_indices = @transform_2, window_bounds = array<i64: 1, 1, 1, 32>}, {transform_indices = @transform_3, window_bounds = array<i64: 1, 1, 1, 32>}]} {
    %c16_i32 = arith.constant 16 : i32
    %0 = arith.muli %arg1, %c16_i32 : i32
    %1 = tpu.assume_multiple %0, 16 : i32
    %c0 = arith.constant 0 : index
    %2 = arith.index_cast %1 : i32 to index
    %c0_0 = arith.constant 0 : index
    %c0_1 = arith.constant 0 : index
    %3 = vector.load %arg2[%c0, %2, %c0_0, %c0_1] : memref<1x18x18x4xbf16, #tpu.memory_space<vmem>>, vector<1x18x16x4xbf16>
    %4 = vector.shape_cast %3 : vector<1x18x16x4xbf16> to vector<18x16x4xbf16>
    %5 = vector.extract_strided_slice %4 {offsets = [0, 0, 0], sizes = [16, 16, 4], strides = [1, 1, 1]} : vector<18x16x4xbf16> to vector<16x16x4xbf16>
    %6 = vector.shape_cast %5 : vector<16x16x4xbf16> to vector<256x4xbf16>
    %c0_2 = arith.constant 0 : index
    %c0_3 = arith.constant 0 : index
    %c0_4 = arith.constant 0 : index
    %c0_5 = arith.constant 0 : index
    %7 = vector.load %arg3[%c0_2, %c0_3, %c0_4, %c0_5] : memref<3x3x4x32xbf16, #tpu.memory_space<vmem>>, vector<1x1x4x32xbf16>
    %8 = vector.shape_cast %7 : vector<1x1x4x32xbf16> to vector<4x32xbf16>
    %cst = arith.constant dense<0.000000e+00> : vector<256x32xf32>
    %9 = tpu.matmul %6, %8, %cst {dimension_numbers = #tpu.dot_dimension_numbers<[1], [0], [0], [1], [0, 0, 1, 1], [], []>} : vector<256x4xbf16>, vector<4x32xbf16>, vector<256x32xf32> -> vector<256x32xf32>
    %10 = vector.extract_strided_slice %4 {offsets = [1, 0, 0], sizes = [16, 16, 4], strides = [1, 1, 1]} : vector<18x16x4xbf16> to vector<16x16x4xbf16>
    %11 = vector.shape_cast %10 : vector<16x16x4xbf16> to vector<256x4xbf16>
    %c1 = arith.constant 1 : index
    %c0_6 = arith.constant 0 : index
    %c0_7 = arith.constant 0 : index
    %c0_8 = arith.constant 0 : index
    %12 = vector.load %arg3[%c1, %c0_6, %c0_7, %c0_8] : memref<3x3x4x32xbf16, #tpu.memory_space<vmem>>, vector<1x1x4x32xbf16>
    %13 = vector.shape_cast %12 : vector<1x1x4x32xbf16> to vector<4x32xbf16>
    %cst_9 = arith.constant dense<0.000000e+00> : vector<256x32xf32>
    %14 = tpu.matmul %11, %13, %cst_9 {dimension_numbers = #tpu.dot_dimension_numbers<[1], [0], [0], [1], [0, 0, 1, 1], [], []>} : vector<256x4xbf16>, vector<4x32xbf16>, vector<256x32xf32> -> vector<256x32xf32>
    %15 = arith.addf %9, %14 : vector<256x32xf32>
    %16 = vector.extract_strided_slice %4 {offsets = [2, 0, 0], sizes = [16, 16, 4], strides = [1, 1, 1]} : vector<18x16x4xbf16> to vector<16x16x4xbf16>
    %17 = vector.shape_cast %16 : vector<16x16x4xbf16> to vector<256x4xbf16>
    %c2 = arith.constant 2 : index
    %c0_10 = arith.constant 0 : index
    %c0_11 = arith.constant 0 : index
    %c0_12 = arith.constant 0 : index
    %18 = vector.load %arg3[%c2, %c0_10, %c0_11, %c0_12] : memref<3x3x4x32xbf16, #tpu.memory_space<vmem>>, vector<1x1x4x32xbf16>
    %19 = vector.shape_cast %18 : vector<1x1x4x32xbf16> to vector<4x32xbf16>
    %cst_13 = arith.constant dense<0.000000e+00> : vector<256x32xf32>
    %20 = tpu.matmul %17, %19, %cst_13 {dimension_numbers = #tpu.dot_dimension_numbers<[1], [0], [0], [1], [0, 0, 1, 1], [], []>} : vector<256x4xbf16>, vector<4x32xbf16>, vector<256x32xf32> -> vector<256x32xf32>
    %21 = arith.addf %15, %20 : vector<256x32xf32>
    %c0_14 = arith.constant 0 : index
    %22 = arith.index_cast %1 : i32 to index
    %c1_15 = arith.constant 1 : index
    %c0_16 = arith.constant 0 : index
    %23 = vector.load %arg2[%c0_14, %22, %c1_15, %c0_16] : memref<1x18x18x4xbf16, #tpu.memory_space<vmem>>, vector<1x18x16x4xbf16>
    %24 = vector.shape_cast %23 : vector<1x18x16x4xbf16> to vector<18x16x4xbf16>
    %25 = vector.extract_strided_slice %24 {offsets = [0, 0, 0], sizes = [16, 16, 4], strides = [1, 1, 1]} : vector<18x16x4xbf16> to vector<16x16x4xbf16>
    %26 = vector.shape_cast %25 : vector<16x16x4xbf16> to vector<256x4xbf16>
    %c0_17 = arith.constant 0 : index
    %c1_18 = arith.constant 1 : index
    %c0_19 = arith.constant 0 : index
    %c0_20 = arith.constant 0 : index
    %27 = vector.load %arg3[%c0_17, %c1_18, %c0_19, %c0_20] : memref<3x3x4x32xbf16, #tpu.memory_space<vmem>>, vector<1x1x4x32xbf16>
    %28 = vector.shape_cast %27 : vector<1x1x4x32xbf16> to vector<4x32xbf16>
    %cst_21 = arith.constant dense<0.000000e+00> : vector<256x32xf32>
    %29 = tpu.matmul %26, %28, %cst_21 {dimension_numbers = #tpu.dot_dimension_numbers<[1], [0], [0], [1], [0, 0, 1, 1], [], []>} : vector<256x4xbf16>, vector<4x32xbf16>, vector<256x32xf32> -> vector<256x32xf32>
    %30 = arith.addf %21, %29 : vector<256x32xf32>
    %31 = vector.extract_strided_slice %24 {offsets = [1, 0, 0], sizes = [16, 16, 4], strides = [1, 1, 1]} : vector<18x16x4xbf16> to vector<16x16x4xbf16>
    %32 = vector.shape_cast %31 : vector<16x16x4xbf16> to vector<256x4xbf16>
    %c1_22 = arith.constant 1 : index
    %c1_23 = arith.constant 1 : index
    %c0_24 = arith.constant 0 : index
    %c0_25 = arith.constant 0 : index
    %33 = vector.load %arg3[%c1_22, %c1_23, %c0_24, %c0_25] : memref<3x3x4x32xbf16, #tpu.memory_space<vmem>>, vector<1x1x4x32xbf16>
    %34 = vector.shape_cast %33 : vector<1x1x4x32xbf16> to vector<4x32xbf16>
    %cst_26 = arith.constant dense<0.000000e+00> : vector<256x32xf32>
    %35 = tpu.matmul %32, %34, %cst_26 {dimension_numbers = #tpu.dot_dimension_numbers<[1], [0], [0], [1], [0, 0, 1, 1], [], []>} : vector<256x4xbf16>, vector<4x32xbf16>, vector<256x32xf32> -> vector<256x32xf32>
    %36 = arith.addf %30, %35 : vector<256x32xf32>
    %37 = vector.extract_strided_slice %24 {offsets = [2, 0, 0], sizes = [16, 16, 4], strides = [1, 1, 1]} : vector<18x16x4xbf16> to vector<16x16x4xbf16>
    %38 = vector.shape_cast %37 : vector<16x16x4xbf16> to vector<256x4xbf16>
    %c2_27 = arith.constant 2 : index
    %c1_28 = arith.constant 1 : index
    %c0_29 = arith.constant 0 : index
    %c0_30 = arith.constant 0 : index
    %39 = vector.load %arg3[%c2_27, %c1_28, %c0_29, %c0_30] : memref<3x3x4x32xbf16, #tpu.memory_space<vmem>>, vector<1x1x4x32xbf16>
    %40 = vector.shape_cast %39 : vector<1x1x4x32xbf16> to vector<4x32xbf16>
    %cst_31 = arith.constant dense<0.000000e+00> : vector<256x32xf32>
    %41 = tpu.matmul %38, %40, %cst_31 {dimension_numbers = #tpu.dot_dimension_numbers<[1], [0], [0], [1], [0, 0, 1, 1], [], []>} : vector<256x4xbf16>, vector<4x32xbf16>, vector<256x32xf32> -> vector<256x32xf32>
    %42 = arith.addf %36, %41 : vector<256x32xf32>
    %c0_32 = arith.constant 0 : index
    %43 = arith.index_cast %1 : i32 to index
    %c2_33 = arith.constant 2 : index
    %c0_34 = arith.constant 0 : index
    %44 = vector.load %arg2[%c0_32, %43, %c2_33, %c0_34] : memref<1x18x18x4xbf16, #tpu.memory_space<vmem>>, vector<1x18x16x4xbf16>
    %45 = vector.shape_cast %44 : vector<1x18x16x4xbf16> to vector<18x16x4xbf16>
    %46 = vector.extract_strided_slice %45 {offsets = [0, 0, 0], sizes = [16, 16, 4], strides = [1, 1, 1]} : vector<18x16x4xbf16> to vector<16x16x4xbf16>
    %47 = vector.shape_cast %46 : vector<16x16x4xbf16> to vector<256x4xbf16>
    %c0_35 = arith.constant 0 : index
    %c2_36 = arith.constant 2 : index
    %c0_37 = arith.constant 0 : index
    %c0_38 = arith.constant 0 : index
    %48 = vector.load %arg3[%c0_35, %c2_36, %c0_37, %c0_38] : memref<3x3x4x32xbf16, #tpu.memory_space<vmem>>, vector<1x1x4x32xbf16>
    %49 = vector.shape_cast %48 : vector<1x1x4x32xbf16> to vector<4x32xbf16>
    %cst_39 = arith.constant dense<0.000000e+00> : vector<256x32xf32>
    %50 = tpu.matmul %47, %49, %cst_39 {dimension_numbers = #tpu.dot_dimension_numbers<[1], [0], [0], [1], [0, 0, 1, 1], [], []>} : vector<256x4xbf16>, vector<4x32xbf16>, vector<256x32xf32> -> vector<256x32xf32>
    %51 = arith.addf %42, %50 : vector<256x32xf32>
    %52 = vector.extract_strided_slice %45 {offsets = [1, 0, 0], sizes = [16, 16, 4], strides = [1, 1, 1]} : vector<18x16x4xbf16> to vector<16x16x4xbf16>
    %53 = vector.shape_cast %52 : vector<16x16x4xbf16> to vector<256x4xbf16>
    %c1_40 = arith.constant 1 : index
    %c2_41 = arith.constant 2 : index
    %c0_42 = arith.constant 0 : index
    %c0_43 = arith.constant 0 : index
    %54 = vector.load %arg3[%c1_40, %c2_41, %c0_42, %c0_43] : memref<3x3x4x32xbf16, #tpu.memory_space<vmem>>, vector<1x1x4x32xbf16>
    %55 = vector.shape_cast %54 : vector<1x1x4x32xbf16> to vector<4x32xbf16>
    %cst_44 = arith.constant dense<0.000000e+00> : vector<256x32xf32>
    %56 = tpu.matmul %53, %55, %cst_44 {dimension_numbers = #tpu.dot_dimension_numbers<[1], [0], [0], [1], [0, 0, 1, 1], [], []>} : vector<256x4xbf16>, vector<4x32xbf16>, vector<256x32xf32> -> vector<256x32xf32>
    %57 = arith.addf %51, %56 : vector<256x32xf32>
    %58 = vector.extract_strided_slice %45 {offsets = [2, 0, 0], sizes = [16, 16, 4], strides = [1, 1, 1]} : vector<18x16x4xbf16> to vector<16x16x4xbf16>
    %59 = vector.shape_cast %58 : vector<16x16x4xbf16> to vector<256x4xbf16>
    %c2_45 = arith.constant 2 : index
    %c2_46 = arith.constant 2 : index
    %c0_47 = arith.constant 0 : index
    %c0_48 = arith.constant 0 : index
    %60 = vector.load %arg3[%c2_45, %c2_46, %c0_47, %c0_48] : memref<3x3x4x32xbf16, #tpu.memory_space<vmem>>, vector<1x1x4x32xbf16>
    %61 = vector.shape_cast %60 : vector<1x1x4x32xbf16> to vector<4x32xbf16>
    %cst_49 = arith.constant dense<0.000000e+00> : vector<256x32xf32>
    %62 = tpu.matmul %59, %61, %cst_49 {dimension_numbers = #tpu.dot_dimension_numbers<[1], [0], [0], [1], [0, 0, 1, 1], [], []>} : vector<256x4xbf16>, vector<4x32xbf16>, vector<256x32xf32> -> vector<256x32xf32>
    %63 = arith.addf %57, %62 : vector<256x32xf32>
    %cst_50 = arith.constant dense<0.000000e+00> : vector<32xf32>
    %64 = vector.multi_reduction <add>, %63, %cst_50 [0] : vector<256x32xf32> to vector<32xf32>
    %65 = vector.shape_cast %64 : vector<32xf32> to vector<1x32xf32>
    %c0_51 = arith.constant 0 : index
    %c0_52 = arith.constant 0 : index
    %c0_53 = arith.constant 0 : index
    %c0_54 = arith.constant 0 : index
    %66 = vector.load %arg4[%c0_51, %c0_52, %c0_53, %c0_54] : memref<1x1x1x32xf32, #tpu.memory_space<vmem>>, vector<1x1x1x32xf32>
    %67 = vector.shape_cast %66 : vector<1x1x1x32xf32> to vector<1x32xf32>
    %68 = vector.shape_cast %65 : vector<1x32xf32> to vector<1x1x1x32xf32>
    tpu.vector_store %arg4[%c0_51, %c0_52, %c0_53, %c0_54], %68 {strides = array<i32>} : memref<1x1x1x32xf32, #tpu.memory_space<vmem>>, vector<1x1x1x32xf32>,
    %69 = arith.mulf %63, %63 : vector<256x32xf32>
    %cst_55 = arith.constant dense<0.000000e+00> : vector<32xf32>
    %70 = vector.multi_reduction <add>, %69, %cst_55 [0] : vector<256x32xf32> to vector<32xf32>
    %71 = vector.shape_cast %70 : vector<32xf32> to vector<1x32xf32>
    %c0_56 = arith.constant 0 : index
    %c0_57 = arith.constant 0 : index
    %c0_58 = arith.constant 0 : index
    %c0_59 = arith.constant 0 : index
    %72 = vector.load %arg5[%c0_56, %c0_57, %c0_58, %c0_59] : memref<1x1x1x32xf32, #tpu.memory_space<vmem>>, vector<1x1x1x32xf32>
    %73 = vector.shape_cast %72 : vector<1x1x1x32xf32> to vector<1x32xf32>
    %74 = vector.shape_cast %71 : vector<1x32xf32> to vector<1x1x1x32xf32>
    tpu.vector_store %arg5[%c0_56, %c0_57, %c0_58, %c0_59], %74 {strides = array<i32>} : memref<1x1x1x32xf32, #tpu.memory_space<vmem>>, vector<1x1x1x32xf32>,
    return
  }
  func.func @transform_0(%arg0: i32, %arg1: i32) -> (i32, i32, i32, i32) {
    %c0_i32 = arith.constant 0 : i32
    %c0_i32_0 = arith.constant 0 : i32
    %c0_i32_1 = arith.constant 0 : i32
    %c0_i32_2 = arith.constant 0 : i32
    return %arg0, %c0_i32, %c0_i32_0, %c0_i32_1 : i32, i32, i32, i32
  }
  func.func @transform_1(%arg0: i32, %arg1: i32) -> (i32, i32, i32, i32) {
    %c0_i32 = arith.constant 0 : i32
    %c0_i32_0 = arith.constant 0 : i32
    %c0_i32_1 = arith.constant 0 : i32
    %c0_i32_2 = arith.constant 0 : i32
    %c0_i32_3 = arith.constant 0 : i32
    return %c0_i32, %c0_i32_0, %c0_i32_1, %c0_i32_2 : i32, i32, i32, i32
  }
  func.func @transform_2(%arg0: i32, %arg1: i32) -> (i32, i32, i32, i32) {
    %c0_i32 = arith.constant 0 : i32
    %c0_i32_0 = arith.constant 0 : i32
    %c0_i32_1 = arith.constant 0 : i32
    return %arg0, %arg1, %c0_i32, %c0_i32_0 : i32, i32, i32, i32
  }
  func.func @transform_3(%arg0: i32, %arg1: i32) -> (i32, i32, i32, i32) {
    %c0_i32 = arith.constant 0 : i32
    %c0_i32_0 = arith.constant 0 : i32
    %c0_i32_1 = arith.constant 0 : i32
    return %arg0, %arg1, %c0_i32, %c0_i32_0 : i32, i32, i32, i32
  }
}

module attributes {stable_mosaic.version = 11 : i64} {
  func.func @_conv_bn_relu_kernel(%arg0: i32, %arg1: i32, %arg2: memref<1x18x18x4xbf16, #tpu.memory_space<vmem>>, %arg3: memref<3x3x4x32xbf16, #tpu.memory_space<vmem>>, %arg4: memref<1x32xf32, #tpu.memory_space<vmem>>, %arg5: memref<1x32xf32, #tpu.memory_space<vmem>>, %arg6: memref<1x256x32xbf16, #tpu.memory_space<vmem>>) attributes {dimension_semantics = [#tpu.dimension_semantics<parallel>, #tpu.dimension_semantics<parallel>], iteration_bounds = array<i64: 2, 1>, scalar_prefetch = 0 : i64, scratch_operands = 0 : i64, tpu.core_type = #tpu.core_type<tc>, window_params = [{transform_indices = @transform_0, window_bounds = array<i64: 1, 18, 18, 4>}, {pipeline_mode = #tpu.pipeline_mode<synchronous>, transform_indices = @transform_1, window_bounds = array<i64: 3, 3, 4, 32>}, {pipeline_mode = #tpu.pipeline_mode<synchronous>, transform_indices = @transform_2, window_bounds = array<i64: 1, 32>}, {pipeline_mode = #tpu.pipeline_mode<synchronous>, transform_indices = @transform_3, window_bounds = array<i64: 1, 32>}, {transform_indices = @transform_4, window_bounds = array<i64: 1, 256, 32>}]} {
    %c16_i32 = arith.constant 16 : i32
    %0 = arith.muli %arg1, %c16_i32 : i32
    %1 = tpu.assume_multiple %0, 16 : i32
    %c0 = arith.constant 0 : index
    %2 = arith.index_cast %1 : i32 to index
    %c0_0 = arith.constant 0 : index
    %c0_1 = arith.constant 0 : index
    %3 = vector.load %arg2[%c0, %2, %c0_0, %c0_1] : memref<1x18x18x4xbf16, #tpu.memory_space<vmem>>, vector<1x18x16x4xbf16>
    %4 = vector.shape_cast %3 : vector<1x18x16x4xbf16> to vector<18x16x4xbf16>
    %5 = vector.extract_strided_slice %4 {offsets = [0, 0, 0], sizes = [16, 16, 4], strides = [1, 1, 1]} : vector<18x16x4xbf16> to vector<16x16x4xbf16>
    %6 = vector.shape_cast %5 : vector<16x16x4xbf16> to vector<256x4xbf16>
    %c0_2 = arith.constant 0 : index
    %c0_3 = arith.constant 0 : index
    %c0_4 = arith.constant 0 : index
    %c0_5 = arith.constant 0 : index
    %7 = vector.load %arg3[%c0_2, %c0_3, %c0_4, %c0_5] : memref<3x3x4x32xbf16, #tpu.memory_space<vmem>>, vector<1x1x4x32xbf16>
    %8 = vector.shape_cast %7 : vector<1x1x4x32xbf16> to vector<4x32xbf16>
    %cst = arith.constant dense<0.000000e+00> : vector<256x32xf32>
    %9 = tpu.matmul %6, %8, %cst {dimension_numbers = #tpu.dot_dimension_numbers<[1], [0], [0], [1], [0, 0, 1, 1], [], []>} : vector<256x4xbf16>, vector<4x32xbf16>, vector<256x32xf32> -> vector<256x32xf32>
    %10 = vector.extract_strided_slice %4 {offsets = [1, 0, 0], sizes = [16, 16, 4], strides = [1, 1, 1]} : vector<18x16x4xbf16> to vector<16x16x4xbf16>
    %11 = vector.shape_cast %10 : vector<16x16x4xbf16> to vector<256x4xbf16>
    %c1 = arith.constant 1 : index
    %c0_6 = arith.constant 0 : index
    %c0_7 = arith.constant 0 : index
    %c0_8 = arith.constant 0 : index
    %12 = vector.load %arg3[%c1, %c0_6, %c0_7, %c0_8] : memref<3x3x4x32xbf16, #tpu.memory_space<vmem>>, vector<1x1x4x32xbf16>
    %13 = vector.shape_cast %12 : vector<1x1x4x32xbf16> to vector<4x32xbf16>
    %cst_9 = arith.constant dense<0.000000e+00> : vector<256x32xf32>
    %14 = tpu.matmul %11, %13, %cst_9 {dimension_numbers = #tpu.dot_dimension_numbers<[1], [0], [0], [1], [0, 0, 1, 1], [], []>} : vector<256x4xbf16>, vector<4x32xbf16>, vector<256x32xf32> -> vector<256x32xf32>
    %15 = arith.addf %9, %14 : vector<256x32xf32>
    %16 = vector.extract_strided_slice %4 {offsets = [2, 0, 0], sizes = [16, 16, 4], strides = [1, 1, 1]} : vector<18x16x4xbf16> to vector<16x16x4xbf16>
    %17 = vector.shape_cast %16 : vector<16x16x4xbf16> to vector<256x4xbf16>
    %c2 = arith.constant 2 : index
    %c0_10 = arith.constant 0 : index
    %c0_11 = arith.constant 0 : index
    %c0_12 = arith.constant 0 : index
    %18 = vector.load %arg3[%c2, %c0_10, %c0_11, %c0_12] : memref<3x3x4x32xbf16, #tpu.memory_space<vmem>>, vector<1x1x4x32xbf16>
    %19 = vector.shape_cast %18 : vector<1x1x4x32xbf16> to vector<4x32xbf16>
    %cst_13 = arith.constant dense<0.000000e+00> : vector<256x32xf32>
    %20 = tpu.matmul %17, %19, %cst_13 {dimension_numbers = #tpu.dot_dimension_numbers<[1], [0], [0], [1], [0, 0, 1, 1], [], []>} : vector<256x4xbf16>, vector<4x32xbf16>, vector<256x32xf32> -> vector<256x32xf32>
    %21 = arith.addf %15, %20 : vector<256x32xf32>
    %c0_14 = arith.constant 0 : index
    %22 = arith.index_cast %1 : i32 to index
    %c1_15 = arith.constant 1 : index
    %c0_16 = arith.constant 0 : index
    %23 = vector.load %arg2[%c0_14, %22, %c1_15, %c0_16] : memref<1x18x18x4xbf16, #tpu.memory_space<vmem>>, vector<1x18x16x4xbf16>
    %24 = vector.shape_cast %23 : vector<1x18x16x4xbf16> to vector<18x16x4xbf16>
    %25 = vector.extract_strided_slice %24 {offsets = [0, 0, 0], sizes = [16, 16, 4], strides = [1, 1, 1]} : vector<18x16x4xbf16> to vector<16x16x4xbf16>
    %26 = vector.shape_cast %25 : vector<16x16x4xbf16> to vector<256x4xbf16>
    %c0_17 = arith.constant 0 : index
    %c1_18 = arith.constant 1 : index
    %c0_19 = arith.constant 0 : index
    %c0_20 = arith.constant 0 : index
    %27 = vector.load %arg3[%c0_17, %c1_18, %c0_19, %c0_20] : memref<3x3x4x32xbf16, #tpu.memory_space<vmem>>, vector<1x1x4x32xbf16>
    %28 = vector.shape_cast %27 : vector<1x1x4x32xbf16> to vector<4x32xbf16>
    %cst_21 = arith.constant dense<0.000000e+00> : vector<256x32xf32>
    %29 = tpu.matmul %26, %28, %cst_21 {dimension_numbers = #tpu.dot_dimension_numbers<[1], [0], [0], [1], [0, 0, 1, 1], [], []>} : vector<256x4xbf16>, vector<4x32xbf16>, vector<256x32xf32> -> vector<256x32xf32>
    %30 = arith.addf %21, %29 : vector<256x32xf32>
    %31 = vector.extract_strided_slice %24 {offsets = [1, 0, 0], sizes = [16, 16, 4], strides = [1, 1, 1]} : vector<18x16x4xbf16> to vector<16x16x4xbf16>
    %32 = vector.shape_cast %31 : vector<16x16x4xbf16> to vector<256x4xbf16>
    %c1_22 = arith.constant 1 : index
    %c1_23 = arith.constant 1 : index
    %c0_24 = arith.constant 0 : index
    %c0_25 = arith.constant 0 : index
    %33 = vector.load %arg3[%c1_22, %c1_23, %c0_24, %c0_25] : memref<3x3x4x32xbf16, #tpu.memory_space<vmem>>, vector<1x1x4x32xbf16>
    %34 = vector.shape_cast %33 : vector<1x1x4x32xbf16> to vector<4x32xbf16>
    %cst_26 = arith.constant dense<0.000000e+00> : vector<256x32xf32>
    %35 = tpu.matmul %32, %34, %cst_26 {dimension_numbers = #tpu.dot_dimension_numbers<[1], [0], [0], [1], [0, 0, 1, 1], [], []>} : vector<256x4xbf16>, vector<4x32xbf16>, vector<256x32xf32> -> vector<256x32xf32>
    %36 = arith.addf %30, %35 : vector<256x32xf32>
    %37 = vector.extract_strided_slice %24 {offsets = [2, 0, 0], sizes = [16, 16, 4], strides = [1, 1, 1]} : vector<18x16x4xbf16> to vector<16x16x4xbf16>
    %38 = vector.shape_cast %37 : vector<16x16x4xbf16> to vector<256x4xbf16>
    %c2_27 = arith.constant 2 : index
    %c1_28 = arith.constant 1 : index
    %c0_29 = arith.constant 0 : index
    %c0_30 = arith.constant 0 : index
    %39 = vector.load %arg3[%c2_27, %c1_28, %c0_29, %c0_30] : memref<3x3x4x32xbf16, #tpu.memory_space<vmem>>, vector<1x1x4x32xbf16>
    %40 = vector.shape_cast %39 : vector<1x1x4x32xbf16> to vector<4x32xbf16>
    %cst_31 = arith.constant dense<0.000000e+00> : vector<256x32xf32>
    %41 = tpu.matmul %38, %40, %cst_31 {dimension_numbers = #tpu.dot_dimension_numbers<[1], [0], [0], [1], [0, 0, 1, 1], [], []>} : vector<256x4xbf16>, vector<4x32xbf16>, vector<256x32xf32> -> vector<256x32xf32>
    %42 = arith.addf %36, %41 : vector<256x32xf32>
    %c0_32 = arith.constant 0 : index
    %43 = arith.index_cast %1 : i32 to index
    %c2_33 = arith.constant 2 : index
    %c0_34 = arith.constant 0 : index
    %44 = vector.load %arg2[%c0_32, %43, %c2_33, %c0_34] : memref<1x18x18x4xbf16, #tpu.memory_space<vmem>>, vector<1x18x16x4xbf16>
    %45 = vector.shape_cast %44 : vector<1x18x16x4xbf16> to vector<18x16x4xbf16>
    %46 = vector.extract_strided_slice %45 {offsets = [0, 0, 0], sizes = [16, 16, 4], strides = [1, 1, 1]} : vector<18x16x4xbf16> to vector<16x16x4xbf16>
    %47 = vector.shape_cast %46 : vector<16x16x4xbf16> to vector<256x4xbf16>
    %c0_35 = arith.constant 0 : index
    %c2_36 = arith.constant 2 : index
    %c0_37 = arith.constant 0 : index
    %c0_38 = arith.constant 0 : index
    %48 = vector.load %arg3[%c0_35, %c2_36, %c0_37, %c0_38] : memref<3x3x4x32xbf16, #tpu.memory_space<vmem>>, vector<1x1x4x32xbf16>
    %49 = vector.shape_cast %48 : vector<1x1x4x32xbf16> to vector<4x32xbf16>
    %cst_39 = arith.constant dense<0.000000e+00> : vector<256x32xf32>
    %50 = tpu.matmul %47, %49, %cst_39 {dimension_numbers = #tpu.dot_dimension_numbers<[1], [0], [0], [1], [0, 0, 1, 1], [], []>} : vector<256x4xbf16>, vector<4x32xbf16>, vector<256x32xf32> -> vector<256x32xf32>
    %51 = arith.addf %42, %50 : vector<256x32xf32>
    %52 = vector.extract_strided_slice %45 {offsets = [1, 0, 0], sizes = [16, 16, 4], strides = [1, 1, 1]} : vector<18x16x4xbf16> to vector<16x16x4xbf16>
    %53 = vector.shape_cast %52 : vector<16x16x4xbf16> to vector<256x4xbf16>
    %c1_40 = arith.constant 1 : index
    %c2_41 = arith.constant 2 : index
    %c0_42 = arith.constant 0 : index
    %c0_43 = arith.constant 0 : index
    %54 = vector.load %arg3[%c1_40, %c2_41, %c0_42, %c0_43] : memref<3x3x4x32xbf16, #tpu.memory_space<vmem>>, vector<1x1x4x32xbf16>
    %55 = vector.shape_cast %54 : vector<1x1x4x32xbf16> to vector<4x32xbf16>
    %cst_44 = arith.constant dense<0.000000e+00> : vector<256x32xf32>
    %56 = tpu.matmul %53, %55, %cst_44 {dimension_numbers = #tpu.dot_dimension_numbers<[1], [0], [0], [1], [0, 0, 1, 1], [], []>} : vector<256x4xbf16>, vector<4x32xbf16>, vector<256x32xf32> -> vector<256x32xf32>
    %57 = arith.addf %51, %56 : vector<256x32xf32>
    %58 = vector.extract_strided_slice %45 {offsets = [2, 0, 0], sizes = [16, 16, 4], strides = [1, 1, 1]} : vector<18x16x4xbf16> to vector<16x16x4xbf16>
    %59 = vector.shape_cast %58 : vector<16x16x4xbf16> to vector<256x4xbf16>
    %c2_45 = arith.constant 2 : index
    %c2_46 = arith.constant 2 : index
    %c0_47 = arith.constant 0 : index
    %c0_48 = arith.constant 0 : index
    %60 = vector.load %arg3[%c2_45, %c2_46, %c0_47, %c0_48] : memref<3x3x4x32xbf16, #tpu.memory_space<vmem>>, vector<1x1x4x32xbf16>
    %61 = vector.shape_cast %60 : vector<1x1x4x32xbf16> to vector<4x32xbf16>
    %cst_49 = arith.constant dense<0.000000e+00> : vector<256x32xf32>
    %62 = tpu.matmul %59, %61, %cst_49 {dimension_numbers = #tpu.dot_dimension_numbers<[1], [0], [0], [1], [0, 0, 1, 1], [], []>} : vector<256x4xbf16>, vector<4x32xbf16>, vector<256x32xf32> -> vector<256x32xf32>
    %63 = arith.addf %57, %62 : vector<256x32xf32>
    %c0_50 = arith.constant 0 : index
    %c0_51 = arith.constant 0 : index
    %64 = vector.load %arg4[%c0_50, %c0_51] : memref<1x32xf32, #tpu.memory_space<vmem>>, vector<1x32xf32>
    %65 = vector.shape_cast %64 : vector<1x32xf32> to vector<32xf32>
    %66 = vector.shape_cast %65 : vector<32xf32> to vector<1x32xf32>
    %67 = vector.broadcast %66 : vector<1x32xf32> to vector<256x32xf32>
    %68 = arith.mulf %63, %67 : vector<256x32xf32>
    %c0_52 = arith.constant 0 : index
    %c0_53 = arith.constant 0 : index
    %69 = vector.load %arg5[%c0_52, %c0_53] : memref<1x32xf32, #tpu.memory_space<vmem>>, vector<1x32xf32>
    %70 = vector.shape_cast %69 : vector<1x32xf32> to vector<32xf32>
    %71 = vector.shape_cast %70 : vector<32xf32> to vector<1x32xf32>
    %72 = vector.broadcast %71 : vector<1x32xf32> to vector<256x32xf32>
    %73 = arith.addf %68, %72 : vector<256x32xf32>
    %cst_54 = arith.constant 0.000000e+00 : f32
    %74 = vector.broadcast %cst_54 : f32 to vector<256x32xf32>
    %75 = arith.maximumf %73, %74 : vector<256x32xf32>
    %76 = arith.truncf %75 : vector<256x32xf32> to vector<256x32xbf16>
    %c0_55 = arith.constant 0 : index
    %c0_56 = arith.constant 0 : index
    %c0_57 = arith.constant 0 : index
    %77 = vector.load %arg6[%c0_55, %c0_56, %c0_57] : memref<1x256x32xbf16, #tpu.memory_space<vmem>>, vector<1x256x32xbf16>
    %78 = vector.shape_cast %77 : vector<1x256x32xbf16> to vector<256x32xbf16>
    %79 = vector.shape_cast %76 : vector<256x32xbf16> to vector<1x256x32xbf16>
    tpu.vector_store %arg6[%c0_55, %c0_56, %c0_57], %79 {strides = array<i32>} : memref<1x256x32xbf16, #tpu.memory_space<vmem>>, vector<1x256x32xbf16>,
    return
  }
  func.func @transform_0(%arg0: i32, %arg1: i32) -> (i32, i32, i32, i32) {
    %c0_i32 = arith.constant 0 : i32
    %c0_i32_0 = arith.constant 0 : i32
    %c0_i32_1 = arith.constant 0 : i32
    %c0_i32_2 = arith.constant 0 : i32
    return %arg0, %c0_i32, %c0_i32_0, %c0_i32_1 : i32, i32, i32, i32
  }
  func.func @transform_1(%arg0: i32, %arg1: i32) -> (i32, i32, i32, i32) {
    %c0_i32 = arith.constant 0 : i32
    %c0_i32_0 = arith.constant 0 : i32
    %c0_i32_1 = arith.constant 0 : i32
    %c0_i32_2 = arith.constant 0 : i32
    %c0_i32_3 = arith.constant 0 : i32
    return %c0_i32, %c0_i32_0, %c0_i32_1, %c0_i32_2 : i32, i32, i32, i32
  }
  func.func @transform_2(%arg0: i32, %arg1: i32) -> (i32, i32) {
    %c0_i32 = arith.constant 0 : i32
    %c0_i32_0 = arith.constant 0 : i32
    %c0_i32_1 = arith.constant 0 : i32
    return %c0_i32, %c0_i32_0 : i32, i32
  }
  func.func @transform_3(%arg0: i32, %arg1: i32) -> (i32, i32) {
    %c0_i32 = arith.constant 0 : i32
    %c0_i32_0 = arith.constant 0 : i32
    %c0_i32_1 = arith.constant 0 : i32
    return %c0_i32, %c0_i32_0 : i32, i32
  }
  func.func @transform_4(%arg0: i32, %arg1: i32) -> (i32, i32, i32) {
    %c0_i32 = arith.constant 0 : i32
    %c0_i32_0 = arith.constant 0 : i32
    return %arg0, %arg1, %c0_i32 : i32, i32, i32
  }
}

</mosaic_0001>

<bundles_post_ra>
// kernel: tile.18
= control target key start
LH: loop header
LB: loop body
LE: loop exit
PB: predicated region body
PF: predicated region fallthrough
CT: control target
= control target key end

     0   :  { %s22_s0 = inlined_call_operand.vmem [shape: f32[8], index: 0, kind: input, shape index: {}]   ;;  %s23_s1 = inlined_call_operand.vmem [shape: f32[4,8], index: 1, kind: output, shape index: {}]  }
   0x1   :  { %v4_v0 = vld [vmem:[%s22_s0] ss:$0 sm:$0xff] }
   0x2   :  { %5 = vst [vmem:[%s23_s1] sm:$0xf] %v4_v0 }

// kernel: tile.19
= control target key start
LH: loop header
LB: loop body
LE: loop exit
PB: predicated region body
PF: predicated region fallthrough
CT: control target
= control target key end

     0   :  { %vm8_vm0 = vcmask 64512   ;;  %s40_s8 = smov 8   ;;  %s41_s9 = smov 16   ;;  %vm14_vm1 = vcmask 261312   ;;  %vm20_vm2 = vcmask 195712   ;;  %vm26_vm3 = vcmask 130112   ;;  %s58_s0 = inlined_call_operand.vmem [shape: f32[4,8], index: 0, kind: input, shape index: {}]   ;;  %s59_s1 = inlined_call_operand.vmem [shape: f32[1,32], index: 1, kind: output, shape index: {}]  }
   0x1   :  { %v5_v0 = vld [vmem:[%s58_s0] sm:$0xf]  ;;  %s39_s0 = smov 24  }
   0x2   :  { %6 = vst [vmem:[#allocation1] sm:$0xf] %v5_v0 }
   0x9   :  { %v11_v1 = vld [vmem:[#allocation1 + $0x3] sm:$0x1]   ;;  %v23_v2 = vld [vmem:[#allocation1 + $0x1] sm:$0x1]   ;;  %v7_v3 = vld [vmem:[#allocation1] sm:$0x1]  }
   0xa   :  { %12 = vrot.lane.b32.xlu0 %v11_v1, %s39_s0  ;;  %24 = vrot.lane.b32.xlu1 %v23_v2, %s40_s8  ;;  %v17_v4 = vld [vmem:[#allocation1 + $0x2] sm:$0x1]   ;;  %9 = vst.msk [vmem:[#allocation0] sm:$0x1] %vm8_vm0, %v7_v3  }
   0xe   :  { %18 = vrot.lane.b32.xlu0 %v17_v4, %s41_s9 }
  0x7c   :  { %v13_v5 = vpop.permute.xlu0 %12   ;;  %v25_v6 = vpop.permute.xlu1 %24  }
  0x7d   :  { %15 = vst.msk [vmem:[#allocation0] sm:$0x1] %vm14_vm1, %v13_v5  }
  0x80   :  { %v19_v7 = vpop.permute.xlu0 %18  }
  0x81   :  { %21 = vst.msk [vmem:[#allocation0] sm:$0x1] %vm20_vm2, %v19_v7  }
  0x82   :  { %27 = vst.msk [vmem:[#allocation0] sm:$0x1] %vm26_vm3, %v25_v6  }
  0x89   :  { %v32_v8 = vld [vmem:[#allocation0] sm:$0x1] }
  0x8a   :  { %35 = vst [vmem:[%s59_s1] sm:$0x1] %v32_v8 }

// kernel: up_conv_forward.2
= control target key start
LH: loop header
LB: loop body
LE: loop exit
PB: predicated region body
PF: predicated region fallthrough
CT: control target
= control target key end

     0   :  { %s4082_s12 = smov 0   ;;  %s4084_s13 = smov 0   ;;  %s5590_s0 = inlined_call_operand.vmem [shape: bf16[2,18,18,4], index: 0, kind: input, shape index: {}]   ;;  %s5591_s1 = inlined_call_operand.vmem [shape: bf16[3,3,4,32], index: 1, kind: input, shape index: {}]   ;;  %s5592_s2 = inlined_call_operand.vmem [shape: f32[2,1,1,32], index: 2, kind: output, shape index: {0}]   ;;  %s5593_s3 = inlined_call_operand.vmem [shape: f32[2,1,1,32], index: 3, kind: output, shape index: {1}]  }
   0x1   :  { %s4086_s14 = smov 0  }
   0x2 LB: > { %s26_s15 = sadd.s32 1, %s4056_s13  ;;  %p3294_p0 = scmp.ge.s32.totalorder %s4060_s14, 1  ;;  %s4060_s14 = sphi %s4086_s14, %s14_s14   ;;  %s4056_s13 = sphi %s4084_s13, %s5649_s13   ;;  %s4052_s12 = sphi %s4082_s12, %s5648_s12  }
   0x3   : > { %p28_p1 = scmp.ge.s32.totalorder %s26_s15, 2  ;;  %p156_p2 = scmp.lt.s32.totalorder %s4060_s14, 3 }
   0x5   : > { %s5651_s15 = smov (%p28_p1, %s26_s15), 0  ;;  %p157_p3 = pnand %p3294_p0, %p156_p2 }
   0x7   : > { %160 = sbr.rel (%p157_p3) target bundleno = 526 (0x20e), region = 28 }
   0xc   : > { %v3296_v0 = vld [vmem:[%s5591_s1 + $0x6] sm:$0x3]  ;;  %vm377_vm0 = vcmask 1041408   ;;  %p187_p4 = scmp.lt.s32.totalorder %s4052_s12, 1  ;;  %v245_v2 = vld [vmem:[%s5591_s1] sm:$0x3] }
   0xd   : > { %3984 = vmatprep.subr.msk.bf16.mxu1 %vm377_vm0, %v3296_v0  ;;  %3983 = vmatprep.subr.msk.bf16.mxu0 %vm377_vm0, %v3296_v0  ;;  %v379_v1 = vsel %vm377_vm0, %v3296_v0, 0  ;;  %v3346_v3 = vld [vmem:[%s5591_s1 + $0xc] sm:$0x3]  ;;  %vm328_vm1 = vcmask 31744   ;;  %v3364_v8 = vld [vmem:[%s5591_s1 + $0x2] sm:$0x3] }
   0xe   : > { %3982 = vmatpush3.bf16.msra.mxu1 %v379_v1  ;;  %3676 = vmatpush3.bf16.msra.mxu0 %v379_v1  ;;  %s5653_s12 = smov (!%p187_p4, %s4052_s12), 1  ;;  %v725_v7 = vsel %vm377_vm0, %v3346_v3, 0  ;;  %v551_v10 = vsel %vm377_vm0, %v245_v2, 0  ;;  %v3397_v11 = vld [vmem:[%s5591_s1 + $0x8] sm:$0x3]  ;;  %v1460_v26 = vsel %vm377_vm0, %v3364_v8, 0 }
   0xf   : > { %3985 = vmatprep.subr.msk.bf16.mxu1 %vm377_vm0, %v245_v2  ;;  %3986 = vmatprep.subr.msk.bf16.mxu0 %vm377_vm0, %v3346_v3  ;;  %s3993_s22 = smul.u32 216, %s5653_s12  ;;  %v1688_v25 = vsel %vm377_vm0, %v3397_v11, 0  ;;  %v3415_v28 = vld [vmem:[%s5591_s1 + $0xe] sm:$0x3]  ;;  %v3449_v30 = vld [vmem:[%s5591_s1 + $0x4] sm:$0x3]  ;;  %s197_s17 = scalar_lea.vmem %s5592_s2, %s5653_s12 }
  0x10   : > { %v4245_v47 = vsel %vm377_vm0, %v3415_v28, 0  ;;  %v4248_v48 = vsel %vm377_vm0, %v3449_v30, 0  ;;  %vm974_vm2 = vsmask.f32 3328  ;;  %vm975_vm3 = vsmask.f32 7440  ;;  %s203_s20 = scalar_lea.vmem %s5593_s3, %s5653_s12 }
  0x11   : > { %s4120_s25 = scalar_lea.vmem %s5590_s0, %s3993_s22  ;;  %vm4328_vm4 = vmor %vm974_vm2, %vm975_vm3  ;;  %vm2177_vm5 = vcmask 1042432   ;;  %vm2178_vm6 = vcmask 1046532   ;;  %vm3014_vm8 = vcmask 261120   ;;  %vm3084_vm9 = vcmask 253952  }
  0x12   : > { %v4018_v4 = vld [vmem:[%s4120_s25 + $0xc] sm:$0xff]   ;;  %v4020_v6 = vld [vmem:[%s4120_s25 + $0x18] sm:$0xff]   ;;  %v4143_v12 = vld [vmem:[%s4120_s25 + $0x24] sm:$0xff]  }
  0x13   : > { %v4124_v5 = vld [vmem:[%s4120_s25 + $0x6c] sm:$0xff]   ;;  %3677 = vmatprep.mubr.msk.bf16.mxu0 %vm328_vm1, %v4018_v4  ;;  %v4135_v9 = vld [vmem:[%s4120_s25 + $0x78] sm:$0xff]   ;;  %v4148_v13 = vld [vmem:[%s4120_s25 + $0x84] sm:$0xff]  }
  0x14   : > { %3693 = vmatprep.mubr.msk.bf16.mxu1 %vm328_vm1, %v4124_v5  ;;  %3678 = vmatmul.mubr.msk.bf16.vlgmr.msra.gmra.mxu0 %vm328_vm1, %v4020_v6  ;;  %v4024_v14 = vld [vmem:[%s4120_s25 + $0x30] sm:$0xff]   ;;  %v4161_v16 = vld [vmem:[%s4120_s25 + $0x3c] sm:$0xff]   ;;  %v4174_v18 = vld [vmem:[%s4120_s25 + $0x48] sm:$0xff]  }
  0x15   : > { %3694 = vmatmul.mubr.msk.bf16.vlgmr.msra.gmra.mxu1 %vm328_vm1, %v4135_v9  ;;  %3744 = vmatpush3.bf16.msra.mxu0 %v725_v7  ;;  %v4157_v15 = vld [vmem:[%s4120_s25 + $0x90] sm:$0xff]   ;;  %v4164_v17 = vld [vmem:[%s4120_s25 + $0x9c] sm:$0xff]   ;;  %v4177_v19 = vld [vmem:[%s4120_s25 + $0xa8] sm:$0xff]  }
  0x16   : > { %3710 = vmatpush3.bf16.msra.mxu1 %v551_v10  ;;  %3681 = vmatprep.mubr.msk.bf16.mxu0 %vm328_vm1, %v4143_v12  ;;  %v4180_v20 = vld [vmem:[%s4120_s25 + $0x54] sm:$0xff]   ;;  %v4194_v22 = vld [vmem:[%s4120_s25 + $0x60] sm:$0xff]   ;;  %v922_v31 = vld [vmem:[%s4120_s25 + $0x8] sm:$0x1] }
  0x17   : > { %3697 = vmatprep.mubr.msk.bf16.mxu1 %vm328_vm1, %v4148_v13  ;;  %3987 = vmatprep.subr.msk.bf16.mxu1 %vm377_vm0, %v3364_v8  ;;  %v4183_v21 = vld [vmem:[%s4120_s25 + $0xb4] sm:$0xff]   ;;  %v4197_v23 = vld [vmem:[%s4120_s25 + $0xc0] sm:$0xff]   ;;  %v923_v34 = vld [vmem:[%s4120_s25 + $0xc] sm:$0xf]  ;;  %v997_v38 = vshll.u32 %v922_v31, 16 }
  0x18   : > { %3988 = vmatprep.subr.msk.bf16.mxu0 %vm377_vm0, %v3397_v11  ;;  %v4034_v24 = vld [vmem:[%s4120_s25] sm:$0xff]   ;;  %v4230_v37 = vld [vmem:[%s4120_s25 + $0x10] sm:$0xf]  ;;  %v1002_v39 = vshrl.u32 %v923_v34, 16  ;;  %v4237_v44 = vld [vmem:[%s4120_s25 + $0x14] sm:$0x1] }
  0x19   : > { %v920_v27 = vld [vmem:[%s4120_s25] sm:$0xf]  ;;  %v4216_v29 = vld [vmem:[%s4120_s25 + $0x4] sm:$0xf]  ;;  %v1005_v45 = vshll.u32 %v923_v34, 16  ;;  %v1011_v46 = vshll.u32 %v4230_v37, 16  ;;  %vm4523_vm7 = vmor %vm2177_vm5, %vm2178_vm6 }
  0x1a   : > { %v978_v32 = vshrl.u32 %v920_v27, 16  ;;  %v981_v33 = vshll.u32 %v920_v27, 16  ;;  %v987_v35 = vshll.u32 %v4216_v29, 16  ;;  %v991_v36 = vshrl.u32 %v4216_v29, 16  ;;  %v926_v51 = vld [vmem:[%s4120_s25 + $0x18] sm:$0xf] }
  0x1b   : > { %v4251_v49 = vrot.slane %v997_v38, 5  ;;  %v4253_v50 = vrot.slane %v1002_v39, 4  ;;  %v4257_v52 = vld [vmem:[%s4120_s25 + $0x1c] sm:$0xf]  ;;  %v1015_v53 = vshrl.u32 %v4230_v37, 16  ;;  %v1021_v54 = vshll.u32 %v4237_v44, 16 }
  0x1c   : > { %3682 = vmatmul.mubr.msk.bf16.gmra.mxu0 %vm328_vm1, %v4024_v14  ;;  %v980_v40 = vrot.slane %v978_v32, 4  ;;  %v983_v41 = vrot.slane %v981_v33, 5  ;;  %v4234_v42 = vrot.slane %v987_v35, 5  ;;  %v993_v43 = vrot.slane %v991_v36, 4  ;;  %v929_v55 = vld [vmem:[%s4120_s25 + $0x24] sm:$0xf] }
  0x1d   : > { %3698 = vmatmul.mubr.msk.bf16.gmra.mxu1 %vm328_vm1, %v4157_v15  ;;  %3685 = vmatprep.mubr.msk.bf16.mxu0 %vm328_vm1, %v4161_v16  ;;  %v930_v56 = vld [vmem:[%s4120_s25 + $0x28] sm:$0xf]  ;;  %v4264_v59 = vrot.slane %v1005_v45, 5  ;;  %v4266_v60 = vrot.slane %v1011_v46, 5  ;;  %v932_v61 = vld [vmem:[%s4120_s25 + $0x30] sm:$0xf] }
  0x1e   : > { %3701 = vmatprep.mubr.msk.bf16.mxu1 %vm328_vm1, %v4164_v17  ;;  %v984_v57 = vor.u32 %v983_v41, %v980_v40  ;;  %v994_v58 = vor.u32 %v993_v43, %v4234_v42  ;;  %v4270_v62 = vld [vmem:[%s4120_s25 + $0x34] sm:$0xf]  ;;  %v1026_v63 = vshrl.u32 %v926_v51, 16  ;;  %v1029_v0 = vshll.u32 %v926_v51, 16  ;;  %v935_v32 = vld [vmem:[%s4120_s25 + $0x3c] sm:$0xf] }
  0x1f   : > { %v1035_v1 = vshll.u32 %v4257_v52, 16  ;;  %v1039_v2 = vshrl.u32 %v4257_v52, 16  ;;  %v1050_v3 = vshrl.u32 %v929_v55, 16  ;;  %v1063_v7 = vshrl.u32 %v930_v56, 16  ;;  %v4292_v33 = vld [vmem:[%s4120_s25 + $0x20] sm:$0x1] }
  0x20   : > { %v1074_v8 = vshrl.u32 %v932_v61, 16  ;;  %v1077_v10 = vshll.u32 %v932_v61, 16  ;;  %v1083_v11 = vshll.u32 %v4270_v62, 16  ;;  %v1028_v27 = vrot.slane %v1026_v63, 4  ;;  %5599 = vst [vmem:[#allocation2_spill] sm:$0xff] %v4292_v33 }
  0x21   : > { %v1041_v31 = vrot.slane %v1039_v2, 4  ;;  %v1052_v34 = vrot.slane %v1050_v3, 4  ;;  %v4297_v38 = vld [vmem:[%s4120_s25 + $0x2c] sm:$0x1]  ;;  %v4301_v45 = vrot.slane %v994_v58, 4  ;;  %v4303_v46 = vrot.slane %v1021_v54, 5 }
  0x22   : > { %5600 = vst [vmem:[#allocation3_spill] sm:$0xff] %v4297_v38  ;;  %v1076_v39 = vrot.slane %v1074_v8, 4  ;;  %v1079_v40 = vrot.slane %v1077_v10, 5  ;;  %v4299_v41 = vrot.slane %v1083_v11, 5  ;;  %v1098_v51 = vshrl.u32 %v935_v32, 16 }
  0x23   : > { %v1045_v61 = vshll.u32 %v4292_v33, 16  ;;  %v4313_v63 = vld [vmem:[%s4120_s25 + $0x40] sm:$0xf]  ;;  %v4495_v33 = vld [vmem:[%s4120_s25 + $0x88] sm:$0xf] }
  0x24   : > { %3686 = vmatmul.mubr.msk.bf16.gmra.mxu0 %vm328_vm1, %v4174_v18  ;;  %v1080_v3 = vor.u32 %v1079_v40, %v1076_v39  ;;  %v1107_v8 = vshll.u32 %v4313_v63, 16  ;;  %v1111_v10 = vshrl.u32 %v4313_v63, 16  ;;  %v4345_v39 = vld [vmem:[%s4120_s25 + $0x44] sm:$0x1]  ;;  %v938_v40 = vld [vmem:[%s4120_s25 + $0x48] sm:$0xf] }
  0x25   : > { %3702 = vmatmul.mubr.msk.bf16.gmra.mxu1 %vm328_vm1, %v4177_v19  ;;  %3689 = vmatprep.mubr.msk.bf16.mxu0 %vm328_vm1, %v4180_v20 }
  0x26   : > { %3705 = vmatprep.mubr.msk.bf16.mxu1 %vm328_vm1, %v4183_v21 }
  0x2c   : > { %3690 = vmatmul.mubr.msk.bf16.gmra.mxu0 %vm328_vm1, %v4194_v22 }
  0x2d   : > { %3706 = vmatmul.mubr.msk.bf16.gmra.mxu1 %vm328_vm1, %v4197_v23  ;;  %3745 = vmatprep.mubr.msk.bf16.mxu0 %vm328_vm1, %v4020_v6 }
  0x2e   : > { %3711 = vmatprep.mubr.msk.bf16.mxu1 %vm328_vm1, %v4034_v24  ;;  %v1017_v24 = vrot.slane %v1015_v53, 4  ;;  %v1101_v53 = vshll.u32 %v935_v32, 16 }
  0x34   : > { %3746 = vmatmul.mubr.msk.bf16.vlgmr.msra.gmra.mxu0 %vm328_vm1, %v4143_v12 }
  0x35   : > { %3712 = vmatmul.mubr.msk.bf16.vlgmr.msra.gmra.mxu1 %vm328_vm1, %v4018_v4  ;;  %3812 = vmatpush3.bf16.msra.mxu0 %v1688_v25  ;;  %v1053_v4 = vshll.u32 %v929_v55, 16  ;;  %v5594_v25 = vrot.slane %v4230_v37, 5  ;;  %v1008_v55 = vor.u32 %v4264_v59, %v4253_v50 }
  0x36   : > { %3778 = vmatpush3.bf16.msra.mxu1 %v1460_v26  ;;  %3715 = vmatprep.mubr.msk.bf16.mxu1 %vm328_vm1, %v4020_v6  ;;  %v1059_v6 = vshll.u32 %v930_v56, 16  ;;  %v1018_v56 = vor.u32 %v1017_v24, %v4266_v60 }
  0x37   : > { %3749 = vmatprep.mubr.msk.bf16.mxu0 %vm328_vm1, %v4024_v14  ;;  %3989 = vmatprep.subr.msk.bf16.mxu1 %vm377_vm0, %v3415_v28  ;;  %v1031_v28 = vrot.slane %v1029_v0, 5  ;;  %v1055_v35 = vrot.slane %v1053_v4, 5  ;;  %v4320_v2 = vrot.slane %v5594_v25, 4  ;;  %v1009_v11 = vrot.slane %v1008_v55, 4 }
  0x38   : > { %3990 = vmatprep.subr.msk.bf16.mxu0 %vm377_vm0, %v3449_v30  ;;  %v4286_v30 = vrot.slane %v1035_v1, 5  ;;  %v4294_v36 = vrot.slane %v1059_v6, 5  ;;  %v1069_v1 = vshll.u32 %v4297_v38, 16  ;;  %v1100_v6 = vrot.slane %v1098_v51, 4 }
  0x39   : > { %v1056_v58 = vor.u32 %v1055_v35, %v1052_v34  ;;  %v1081_v35 = vrot.slane %v1080_v3, 4  ;;  %v1113_v55 = vrot.slane %v1111_v10, 4 }
  0x3a   : > { %v1042_v0 = vor.u32 %v1041_v31, %v4286_v30  ;;  %v1071_v34 = vrot.slane %v1069_v1, 5 }
  0x3b   : > { %v1057_v31 = vrot.slane %v1056_v58, 4 }
  0x3c   : > { %3750 = vmatmul.mubr.msk.bf16.gmra.mxu0 %vm328_vm1, %v4161_v16 }
  0x3d   : > { %3716 = vmatmul.mubr.msk.bf16.gmra.mxu1 %vm328_vm1, %v4143_v12  ;;  %3753 = vmatprep.mubr.msk.bf16.mxu0 %vm328_vm1, %v4174_v18  ;;  %v1087_v12 = vshrl.u32 %v4270_v62, 16 }
  0x3e   : > { %3719 = vmatprep.mubr.msk.bf16.mxu1 %vm328_vm1, %v4024_v14  ;;  %v4278_v14 = vrot.slane %v984_v57, 4  ;;  %v1032_v57 = vor.u32 %v1031_v28, %v1028_v27  ;;  %v1047_v27 = vrot.slane %v1045_v61, 5  ;;  %v1043_v28 = vrot.slane %v1042_v0, 4 }
  0x3f   : > { %v1089_v43 = vrot.slane %v1087_v12, 4  ;;  %v1019_v12 = vrot.slane %v1018_v56, 4  ;;  %v1000_v56 = vsel %vm4328_vm4, %v4301_v45, %v4251_v49  ;;  %v1062_v49 = vsel %vm4328_vm4, %v1057_v31, %v4294_v36 }
  0x40   : > { %v1033_v24 = vrot.slane %v1032_v57, 4  ;;  %v1048_v61 = vsel %vm4328_vm4, %v1043_v28, %v1047_v27  ;;  %v1117_v45 = vshll.u32 %v4345_v39, 16  ;;  %v1125_v0 = vshll.u32 %v938_v40, 16 }
  0x41   : > { %v1090_v50 = vor.u32 %v1089_v43, %v4299_v41 }
  0x42   : > { %v1038_v57 = vsel %vm4328_vm4, %v1033_v24, %v4286_v30  ;;  %v1122_v30 = vshrl.u32 %v938_v40, 16  ;;  %v1119_v10 = vrot.slane %v1117_v45, 5  ;;  %v1127_v28 = vrot.slane %v1125_v0, 5 }
  0x43   : > { %v1091_v43 = vrot.slane %v1090_v50, 4  ;;  %v4393_v50 = vld [vmem:[%s4120_s25 + $0x50] sm:$0x1] }
  0x44   : > { %3754 = vmatmul.mubr.msk.bf16.gmra.mxu0 %vm328_vm1, %v4180_v20  ;;  %v1124_v27 = vrot.slane %v1122_v30, 4 }
  0x45   : > { %3720 = vmatmul.mubr.msk.bf16.gmra.mxu1 %vm328_vm1, %v4161_v16  ;;  %3757 = vmatprep.mubr.msk.bf16.mxu0 %vm328_vm1, %v4194_v22  ;;  %v1065_v16 = vrot.slane %v1063_v7, 4  ;;  %v1103_v7 = vrot.slane %v1101_v53, 5  ;;  %v4348_v53 = vrot.slane %v1107_v8, 5  ;;  %v4403_v8 = vcombine.low %v1038_v57, %v1048_v61 }
  0x46   : > { %3723 = vmatprep.mubr.msk.bf16.mxu1 %vm328_vm1, %v4174_v18  ;;  %v4306_v18 = vld [vmem:[%s4120_s25 + $0x38] sm:$0x1] }
  0x47   : > { %v1066_v54 = vor.u32 %v1065_v16, %v4294_v36  ;;  %v1093_v59 = vshll.u32 %v4306_v18, 16  ;;  %v1104_v51 = vor.u32 %v1103_v7, %v1100_v6  ;;  %v1114_v1 = vor.u32 %v1113_v55, %v4348_v53  ;;  %v4397_v6 = vld [vmem:[%s4120_s25 + $0x58] sm:$0xf] }
  0x48   : > { %v1159_v55 = vshrl.u32 %v4397_v6, 16 }
  0x49   : > { %v1067_v32 = vrot.slane %v1066_v54, 4  ;;  %v1095_v16 = vrot.slane %v1093_v59, 5  ;;  %v4382_v54 = vrot.slane %v1104_v51, 4  ;;  %v941_v59 = vld [vmem:[%s4120_s25 + $0x54] sm:$0xf]  ;;  %v1155_v51 = vshll.u32 %v4397_v6, 16 }
  0x4a   : > { %v1146_v40 = vshrl.u32 %v941_v59, 16 }
  0x4b   : > { %v1096_v36 = vsel %vm4328_vm4, %v1091_v43, %v1095_v16  ;;  %v4422_v16 = vld [vmem:[%s4120_s25 + $0x70] sm:$0xf]  ;;  %v1149_v43 = vshll.u32 %v941_v59, 16  ;;  %v4445_v59 = vld [vmem:[%s4120_s25 + $0x7c] sm:$0xf] }
  0x4c   : > { %3758 = vmatmul.mubr.msk.bf16.gmra.mxu0 %vm328_vm1, %v4124_v5 }
  0x4d   : > { %3724 = vmatmul.mubr.msk.bf16.gmra.mxu1 %vm328_vm1, %v4180_v20  ;;  %3761 = vmatprep.mubr.msk.bf16.mxu0 %vm328_vm1, %v4135_v9  ;;  %v990_v20 = vsel %vm4328_vm4, %v4278_v14, %v4234_v42  ;;  %v1014_v42 = vsel %vm4328_vm4, %v1009_v11, %v4266_v60  ;;  %v1024_v14 = vsel %vm4328_vm4, %v1019_v12, %v4303_v46  ;;  %v944_v11 = vld [vmem:[%s4120_s25 + $0x60] sm:$0xf]  ;;  %v4409_v12 = vld [vmem:[%s4120_s25 + $0x64] sm:$0xf] }
  0x4e   : > { %3727 = vmatprep.mubr.msk.bf16.mxu1 %vm328_vm1, %v4194_v22  ;;  %v4351_v22 = vld [vmem:[%s4120_s25 + $0x4c] sm:$0xf]  ;;  %v1072_v60 = vsel %vm4328_vm4, %v1067_v32, %v1071_v34  ;;  %v1086_v46 = vsel %vm4328_vm4, %v1081_v35, %v4299_v41  ;;  %v4390_v41 = vcombine.low %v990_v20, %v1000_v56  ;;  %v4401_v7 = vcombine.low %v1014_v42, %v1024_v14 }
  0x4f   : > { %v1131_v58 = vshll.u32 %v4351_v22, 16  ;;  %v1135_v3 = vshrl.u32 %v4351_v22, 16  ;;  %v4411_v24 = vcombine.low %v1086_v46, %v1096_v36  ;;  %v947_v32 = vld [vmem:[%s4120_s25 + $0x6c] sm:$0xf]  ;;  %v1115_v34 = vrot.slane %v1114_v1, 4 }
  0x50   : > { %v1141_v35 = vshll.u32 %v4393_v50, 16  ;;  %v1170_v56 = vshrl.u32 %v944_v11, 16  ;;  %v1173_v42 = vshll.u32 %v944_v11, 16  ;;  %v1179_v14 = vshll.u32 %v4409_v12, 16 }
  0x51   : > { %v4413_v31 = vrot.slane %v1131_v58, 5  ;;  %v1137_v20 = vrot.slane %v1135_v3, 4  ;;  %v1183_v57 = vshrl.u32 %v4409_v12, 16  ;;  %v1197_v61 = vshll.u32 %v947_v32, 16  ;;  %v950_v58 = vld [vmem:[%s4120_s25 + $0x78] sm:$0xf] }
  0x52   : > { %v1120_v45 = vsel %vm4328_vm4, %v1115_v34, %v1119_v10  ;;  %v1128_v46 = vor.u32 %v1127_v28, %v1124_v27  ;;  %v4435_v0 = vrot.slane %v1141_v35, 5  ;;  %v1148_v36 = vrot.slane %v1146_v40, 4  ;;  %v4450_v10 = vld [vmem:[%s4120_s25 + $0x5c] sm:$0x1] }
  0x53   : > { %v1138_v30 = vor.u32 %v1137_v20, %v4413_v31  ;;  %v4442_v1 = vrot.slane %v1155_v51, 5  ;;  %v1161_v3 = vrot.slane %v1159_v55, 4  ;;  %v1172_v11 = vrot.slane %v1170_v56, 4 }
  0x54   : > { %3762 = vmatmul.mubr.msk.bf16.gmra.mxu0 %vm328_vm1, %v4148_v13  ;;  %v1175_v27 = vrot.slane %v1173_v42, 5  ;;  %v4452_v28 = vrot.slane %v1179_v14, 5  ;;  %v1199_v20 = vrot.slane %v1197_v61, 5  ;;  %v1218_v51 = vshrl.u32 %v950_v58, 16 }
  0x55   : > { %3728 = vmatmul.mubr.msk.bf16.gmra.mxu1 %vm328_vm1, %v4124_v5  ;;  %3765 = vmatprep.mubr.msk.bf16.mxu0 %vm328_vm1, %v4157_v15  ;;  %v4405_v5 = vcombine.low %v1062_v49, %v1072_v60  ;;  %v1203_v49 = vshll.u32 %v4422_v16, 16  ;;  %v1207_v60 = vshrl.u32 %v4422_v16, 16  ;;  %v1221_v55 = vshll.u32 %v950_v58, 16  ;;  %v953_v58 = vld [vmem:[%s4120_s25 + $0x84] sm:$0xf] }
  0x56   : > { %3731 = vmatprep.mubr.msk.bf16.mxu1 %vm328_vm1, %v4135_v9  ;;  %v1110_v9 = vsel %vm4328_vm4, %v4382_v54, %v4348_v53  ;;  %v1194_v53 = vshrl.u32 %v947_v32, 16  ;;  %v1151_v54 = vrot.slane %v1149_v43, 5  ;;  %v4455_v32 = vld [vmem:[%s4120_s25 + $0x68] sm:$0x1]  ;;  %v4460_v43 = vld [vmem:[%s4120_s25 + $0x74] sm:$0x1]  ;;  %v1162_v61 = vor.u32 %v1161_v3, %v4442_v1 }
  0x57   : > { %v4457_v35 = vrot.slane %v1203_v49, 5  ;;  %v1209_v40 = vrot.slane %v1207_v60, 4  ;;  %v1231_v56 = vshrl.u32 %v4445_v59, 16  ;;  %v4464_v42 = vcombine.low %v1110_v9, %v1120_v45 }
  0x58   : > { %v1196_v34 = vrot.slane %v1194_v53, 4  ;;  %v4466_v14 = vrot.slane %v1128_v46, 4  ;;  %v1152_v53 = vor.u32 %v1151_v54, %v1148_v36  ;;  %v1165_v49 = vshll.u32 %v4450_v10, 16 }
  0x59   : > { %v1176_v60 = vor.u32 %v1175_v27, %v1172_v11  ;;  %v1189_v25 = vshll.u32 %v4455_v32, 16  ;;  %v1210_v9 = vor.u32 %v1209_v40, %v4457_v35  ;;  %v1213_v45 = vshll.u32 %v4460_v43, 16  ;;  %v4490_v27 = vld [vmem:[%s4120_s25 + $0x80] sm:$0x1] }
  0x5a   : > { %v1200_v38 = vor.u32 %v1199_v20, %v1196_v34  ;;  %v1220_v46 = vrot.slane %v1218_v51, 4  ;;  %v1233_v54 = vrot.slane %v1231_v56, 4  ;;  %v1134_v3 = vsel %vm4328_vm4, %v4466_v14, %v4413_v31  ;;  %v4035_v31 = vld [vmem:[%s4120_s25 + $0xcc] sm:$0xff]  }
  0x5b   : > { %v1153_v11 = vrot.slane %v1152_v53, 4  ;;  %v1245_v34 = vshll.u32 %v953_v58, 16  ;;  %v1163_v20 = vrot.slane %v1162_v61, 4  ;;  %v1177_v40 = vrot.slane %v1176_v60, 4 }
  0x5c   : > { %3766 = vmatmul.mubr.msk.bf16.gmra.mxu0 %vm328_vm1, %v4164_v17  ;;  %v1191_v51 = vrot.slane %v1189_v25, 5  ;;  %v1215_v56 = vrot.slane %v1213_v45, 5  ;;  %v1237_v61 = vshll.u32 %v4490_v27, 16 }
  0x5d   : > { %3732 = vmatmul.mubr.msk.bf16.gmra.mxu1 %vm328_vm1, %v4148_v13  ;;  %3769 = vmatprep.mubr.msk.bf16.mxu0 %vm328_vm1, %v4177_v19  ;;  %v1185_v13 = vrot.slane %v1183_v57, 4  ;;  %v4468_v57 = vrot.slane %v1138_v30, 4  ;;  %v1223_v30 = vrot.slane %v1221_v55, 5  ;;  %v1201_v55 = vrot.slane %v1200_v38, 4 }
  0x5e   : > { %3735 = vmatprep.mubr.msk.bf16.mxu1 %vm328_vm1, %v4157_v15  ;;  %v1227_v15 = vshll.u32 %v4445_v59, 16  ;;  %v1158_v25 = vsel %vm4328_vm4, %v1153_v11, %v4442_v1  ;;  %v1247_v38 = vrot.slane %v1245_v34, 5 }
  0x5f   : > { %v1186_v26 = vor.u32 %v1185_v13, %v4452_v28  ;;  %v1242_v13 = vshrl.u32 %v953_v58, 16  ;;  %v1144_v14 = vsel %vm4328_vm4, %v4468_v57, %v4435_v0  ;;  %v1224_v53 = vor.u32 %v1223_v30, %v1220_v46  ;;  %v956_v57 = vld [vmem:[%s4120_s25 + $0x90] sm:$0xf] }
  0x60   : > { %v4479_v36 = vrot.slane %v1227_v15, 5  ;;  %v1211_v15 = vrot.slane %v1210_v9, 4  ;;  %v1251_v58 = vshll.u32 %v4495_v33, 16  ;;  %v1255_v0 = vshrl.u32 %v4495_v33, 16 }
  0x61   : > { %v1182_v9 = vsel %vm4328_vm4, %v1177_v40, %v4452_v28  ;;  %v1206_v45 = vsel %vm4328_vm4, %v1201_v55, %v4457_v35  ;;  %v4532_v28 = vrot.slane %v1237_v61, 5  ;;  %v4542_v35 = vld [vmem:[%s4120_s25 + $0x8c] sm:$0x1]  ;;  %v1269_v40 = vshll.u32 %v956_v57, 16 }
  0x62   : > { %v1216_v46 = vsel %vm4328_vm4, %v1211_v15, %v1215_v56  ;;  %v4553_v55 = vrot.slane %v1251_v58, 5  ;;  %v4555_v15 = vrot.slane %v1255_v0, 4  ;;  %v5606_v56 = vrot.slane %v4230_v37, 5  ;;  %v4592_v0 = vld [vmem:[%s4120_s25 + $0xa0] sm:$0xf] }
  0x63   : > { %v1261_v61 = vshll.u32 %v4542_v35, 16  ;;  %v4589_v58 = vrot.slane %v1269_v40, 5 }
  0x64   : > { %3770 = vmatmul.mubr.msk.bf16.gmra.mxu0 %vm328_vm1, %v4183_v21 }
  0x65   : > { %3736 = vmatmul.mubr.msk.bf16.gmra.mxu1 %vm328_vm1, %v4164_v17  ;;  %3773 = vmatprep.mubr.msk.bf16.mxu0 %vm328_vm1, %v4197_v23  ;;  %v1167_v17 = vrot.slane %v1165_v49, 5  ;;  %v1187_v23 = vrot.slane %v1186_v26, 4  ;;  %v1244_v26 = vrot.slane %v1242_v13, 4  ;;  %v2112_v49 = vld [vmem:[%s4120_s25 + $0xc] sm:$0xe] }
  0x66   : > { %3739 = vmatprep.mubr.msk.bf16.mxu1 %vm328_vm1, %v4177_v19  ;;  %v1234_v19 = vor.u32 %v1233_v54, %v4479_v36  ;;  %v4528_v54 = vrot.slane %v1224_v53, 4  ;;  %v4535_v13 = vld [vmem:[%s4120_s25 + $0x94] sm:$0xf]  ;;  %v3434_v34 = vrot.slane %v2112_v49, 9 }
  0x67   : > { %v1168_v60 = vsel %vm4328_vm4, %v1163_v20, %v1167_v17  ;;  %v1192_v1 = vsel %vm4328_vm4, %v1187_v23, %v1191_v51  ;;  %v1248_v20 = vor.u32 %v1247_v38, %v1244_v26  ;;  %v1266_v17 = vshrl.u32 %v956_v57, 16  ;;  %v2116_v26 = vld [vmem:[%s4120_s25 + $0x3c] sm:$0xe]  ;;  %v2118_v57 = vld [vmem:[%s4120_s25 + $0x54] sm:$0xe] }
  0x68   : > { %v4530_v11 = vrot.slane %v1234_v19, 4  ;;  %v5605_v51 = vrot.slane %v4237_v44, 5  ;;  %v2190_v44 = vsel %vm4523_vm7, %v3434_v34, %v5606_v56  ;;  %v1279_v53 = vshrl.u32 %v4535_v13, 16 }
  0x69   : > { %v1230_v37 = vsel %vm4328_vm4, %v4528_v54, %v4479_v36  ;;  %v4585_v49 = vrot.slane %v1248_v20, 4  ;;  %v3438_v40 = vrot.slane %v2116_v26, 9  ;;  %v2224_v26 = vrot.slane %v4351_v22, 5 }
  0x6a   : > { %v2193_v23 = vsel %vm4523_vm7, %v4320_v2, %v5605_v51  ;;  %v1275_v2 = vshll.u32 %v4535_v13, 16  ;;  %v1240_v38 = vsel %vm4328_vm4, %v4530_v11, %v4532_v28  ;;  %v4601_v51 = vrot.slane %v1279_v53, 4 }
  0x6b   : > { %v4565_v19 = vcombine.low %v2190_v44, %v2193_v23  ;;  %v2217_v44 = vrot.slane %v4313_v63, 5  ;;  %v2220_v53 = vrot.slane %v4345_v39, 5  ;;  %v2119_v39 = vld [vmem:[%s4120_s25 + $0x60] sm:$0xe]  ;;  %v2120_v63 = vld [vmem:[%s4120_s25 + $0x6c] sm:$0xe] }
  0x6c   : > { %3774 = vmatmul.mubr.msk.bf16.gmra.mxu0 %vm328_vm1, %v4035_v31  ;;  %v4561_v31 = vcombine.low %v1158_v25, %v1168_v60  ;;  %v4578_v25 = vld [vmem:[%s4120_s25 + $0x9c] sm:$0xf]  ;;  %v4587_v60 = vrot.slane %v1266_v17, 4  ;;  %v4599_v34 = vrot.slane %v1275_v2, 5  ;;  %v4607_v17 = vld [vmem:[%s5591_s1 + $0xa] sm:$0x3] }
  0x6d   : > { %3740 = vmatmul.mubr.msk.bf16.gmra.mxu1 %vm328_vm1, %v4183_v21  ;;  %3813 = vmatprep.mubr.msk.bf16.mxu0 %vm328_vm1, %v4401_v7  ;;  %v4551_v21 = vcombine.low %v1134_v3, %v1144_v14  ;;  %v4568_v3 = vcombine.low %v1182_v9, %v1192_v1  ;;  %v4570_v14 = vcombine.low %v1206_v45, %v1216_v46  ;;  %v2210_v1 = vrot.slane %v4270_v62, 5  ;;  %v2117_v46 = vld [vmem:[%s4120_s25 + $0x48] sm:$0xe] }
  0x6e   : > { %3779 = vmatprep.mubr.msk.bf16.mxu1 %vm328_vm1, %v4390_v41  ;;  %v2115_v41 = vld [vmem:[%s4120_s25 + $0x30] sm:$0xe]  ;;  %v2213_v45 = vrot.slane %v4306_v18, 5  ;;  %v1290_v20 = vshrl.u32 %v4578_v25, 16  ;;  %v1293_v62 = vshll.u32 %v4578_v25, 16  ;;  %v1254_v25 = vsel %vm4328_vm4, %v4585_v49, %v4553_v55 }
  0x6f   : > { %v3437_v9 = vrot.slane %v2115_v41, 9  ;;  %v4615_v18 = vld [vmem:[%s5591_s1 + $0x10] sm:$0x3]  ;;  %v2212_v56 = vrot.slane %v2210_v1, 4  ;;  %v3439_v41 = vrot.slane %v2117_v46, 9 }
  0x70   : > { %v1292_v11 = vrot.slane %v1290_v20, 4  ;;  %v1295_v36 = vrot.slane %v1293_v62, 5  ;;  %v5611_v62 = vor.u32 %v4555_v15, %v4553_v55 }
  0x71   : > { %v2211_v23 = vsel %vm4523_vm7, %v3437_v9, %v2210_v1  ;;  %v2219_v9 = vrot.slane %v2217_v44, 4  ;;  %v2225_v22 = vsel %vm4523_vm7, %v3439_v41, %v2224_v26  ;;  %v2226_v1 = vrot.slane %v2224_v26, 4 }
  0x72   : > { %v3441_v26 = vrot.slane %v2119_v39, 9  ;;  %v2245_v39 = vrot.slane %v4422_v16, 5 }
  0x73   : > { %v2221_v46 = vsel %vm4523_vm7, %v2219_v9, %v2220_v53  ;;  %v3442_v9 = vrot.slane %v2120_v63, 9 }
  0x74   : > { %3814 = vmatmul.mubr.msk.bf16.vlgmr.msra.gmra.mxu0 %vm328_vm1, %v4403_v8 }
  0x75   : > { %3780 = vmatmul.mubr.msk.bf16.vlgmr.msra.gmra.mxu1 %vm328_vm1, %v4401_v7  ;;  %3880 = vmatpush3.bf16.msra.mxu0 %v4248_v48  ;;  %v2214_v7 = vsel %vm4523_vm7, %v2212_v56, %v2213_v45  ;;  %v2218_v48 = vsel %vm4523_vm7, %v3438_v40, %v2217_v44  ;;  %v2227_v45 = vrot.slane %v4393_v50, 5  ;;  %v3440_v40 = vrot.slane %v2118_v57, 9 }
  0x76   : > { %3846 = vmatpush3.bf16.msra.mxu1 %v4245_v47  ;;  %3783 = vmatprep.mubr.msk.bf16.mxu1 %vm328_vm1, %v4403_v8  ;;  %v4640_v47 = vcombine.low %v2211_v23, %v2214_v7  ;;  %v2231_v56 = vrot.slane %v4397_v6, 5  ;;  %v2234_v44 = vrot.slane %v4450_v10, 5  ;;  %v4652_v23 = vcombine.low %v2218_v48, %v2221_v46  ;;  %v2121_v7 = vld [vmem:[%s4120_s25 + $0x78] sm:$0xe] }
  0x77   : > { %3817 = vmatprep.mubr.msk.bf16.mxu0 %vm328_vm1, %v4405_v5  ;;  %3991 = vmatprep.subr.msk.bf16.mxu1 %vm377_vm0, %v4607_v17  ;;  %v2228_v41 = vsel %vm4523_vm7, %v2226_v1, %v2227_v45  ;;  %v2238_v50 = vrot.slane %v4409_v12, 5  ;;  %v2241_v6 = vrot.slane %v4455_v32, 5  ;;  %v3443_v1 = vrot.slane %v2121_v7, 9  ;;  %v2122_v32 = vld [vmem:[%s4120_s25 + $0x84] sm:$0xe] }
  0x78   : > { %3992 = vmatprep.subr.msk.bf16.mxu0 %vm377_vm0, %v4615_v18  ;;  %v4658_v2 = vcombine.low %v2225_v22, %v2228_v41  ;;  %v2232_v57 = vsel %vm4523_vm7, %v3440_v40, %v2231_v56  ;;  %v2233_v53 = vrot.slane %v2231_v56, 4  ;;  %v2248_v22 = vrot.slane %v4460_v43, 5  ;;  %v2123_v40 = vld [vmem:[%s4120_s25 + $0x90] sm:$0xe] }
  0x79   : > { %v2239_v10 = vsel %vm4523_vm7, %v3441_v26, %v2238_v50  ;;  %v2240_v48 = vrot.slane %v2238_v50, 4  ;;  %v2252_v45 = vrot.slane %v4445_v59, 5  ;;  %v2246_v43 = vsel %vm4523_vm7, %v3442_v9, %v2245_v39 }
  0x7a   : > { %v2235_v12 = vsel %vm4523_vm7, %v2233_v53, %v2234_v44  ;;  %v2247_v46 = vrot.slane %v2245_v39, 4  ;;  %v2255_v41 = vrot.slane %v4490_v27, 5  ;;  %v3444_v50 = vrot.slane %v2122_v32, 9  ;;  %v2124_v53 = vld [vmem:[%s4120_s25 + $0x9c] sm:$0xe] }
  0x7b   : > { %v4677_v16 = vcombine.low %v2232_v57, %v2235_v12  ;;  %v2242_v63 = vsel %vm4523_vm7, %v2240_v48, %v2241_v6  ;;  %v2253_v56 = vsel %vm4523_vm7, %v3443_v1, %v2252_v45  ;;  %v2254_v44 = vrot.slane %v2252_v45, 4  ;;  %v4697_v6 = vld [vmem:[%s4120_s25 + $0x98] sm:$0x1]  ;;  %v2125_v39 = vld [vmem:[%s4120_s25 + $0xa8] sm:$0xe] }
  0x7c   : > { %3818 = vmatmul.mubr.msk.bf16.gmra.mxu0 %vm328_vm1, %v4411_v24  ;;  %v4686_v59 = vcombine.low %v2239_v10, %v2242_v63  ;;  %v2249_v26 = vsel %vm4523_vm7, %v2247_v46, %v2248_v22  ;;  %v2259_v7 = vrot.slane %v4495_v33, 5  ;;  %v2262_v57 = vrot.slane %v4542_v35, 5  ;;  %v4706_v12 = vld [vmem:[%s4120_s25 + $0xa4] sm:$0x1]  ;;  %v4714_v32 = vld [vmem:[%s4120_s25 + $0xac] sm:$0xf] }
  0x7d   : > { %3784 = vmatmul.mubr.msk.bf16.gmra.mxu1 %vm328_vm1, %v4405_v5  ;;  %3821 = vmatprep.mubr.msk.bf16.mxu0 %vm328_vm1, %v4464_v42  ;;  %v4699_v10 = vcombine.low %v2246_v43, %v2249_v26  ;;  %v2256_v48 = vsel %vm4523_vm7, %v2254_v44, %v2255_v41  ;;  %v3445_v9 = vrot.slane %v2123_v40, 9  ;;  %v2266_v27 = vrot.slane %v4535_v13, 5  ;;  %v4726_v26 = vld [vmem:[%s4120_s25 + $0xb0] sm:$0x1] }
  0x7e   : > { %3787 = vmatprep.mubr.msk.bf16.mxu1 %vm328_vm1, %v4411_v24  ;;  %v4708_v22 = vcombine.low %v2253_v56, %v2256_v48  ;;  %v2260_v33 = vsel %vm4523_vm7, %v3444_v50, %v2259_v7  ;;  %v2261_v1 = vrot.slane %v2259_v7, 4  ;;  %v2269_v45 = vrot.slane %v4697_v6, 5 }
  0x7f   : > { %v2267_v63 = vsel %vm4523_vm7, %v3445_v9, %v2266_v27  ;;  %v2268_v43 = vrot.slane %v2266_v27, 4  ;;  %v3446_v46 = vrot.slane %v2124_v53, 9  ;;  %v2273_v13 = vrot.slane %v4592_v0, 5 }
  0x80   : > { %v2263_v40 = vsel %vm4523_vm7, %v2261_v1, %v2262_v57  ;;  %v2276_v56 = vrot.slane %v4706_v12, 5  ;;  %v3447_v44 = vrot.slane %v2125_v39, 9  ;;  %v2280_v41 = vrot.slane %v4714_v32, 5 }
  0x81   : > { %v4728_v50 = vcombine.low %v2260_v33, %v2263_v40  ;;  %v2270_v7 = vsel %vm4523_vm7, %v2268_v43, %v2269_v45  ;;  %v2274_v53 = vsel %vm4523_vm7, %v3446_v46, %v2273_v13  ;;  %v2275_v57 = vrot.slane %v2273_v13, 4  ;;  %v2126_v43 = vld [vmem:[%s4120_s25 + $0xb4] sm:$0xe]  ;;  %v966_v13 = vld [vmem:[%s4120_s25 + $0xb8] sm:$0xf] }
  0x82   : > { %v4738_v48 = vcombine.low %v2267_v63, %v2270_v7  ;;  %v2281_v9 = vsel %vm4523_vm7, %v3447_v44, %v2280_v41  ;;  %v2282_v27 = vrot.slane %v2280_v41, 4  ;;  %v2283_v39 = vrot.slane %v4726_v26, 5  ;;  %v4793_v40 = vld [vmem:[%s4120_s25 + $0xbc] sm:$0x1]  ;;  %v965_v41 = vld [vmem:[%s4120_s25 + $0xb4] sm:$0xf] }
  0x83   : > { %v4755_v33 = vcombine.low %v1230_v37, %v1240_v38  ;;  %v1263_v1 = vrot.slane %v1261_v61, 5  ;;  %v1272_v45 = vor.u32 %v4589_v58, %v4587_v60  ;;  %v2277_v63 = vsel %vm4523_vm7, %v2275_v57, %v2276_v56  ;;  %v962_v58 = vld [vmem:[%s4120_s25 + $0xa8] sm:$0xf] }
  0x84   : > { %3822 = vmatmul.mubr.msk.bf16.gmra.mxu0 %vm328_vm1, %v4551_v21  ;;  %v4768_v54 = vcombine.low %v2274_v53, %v2277_v63  ;;  %v2284_v28 = vsel %vm4523_vm7, %v2282_v27, %v2283_v39  ;;  %v1285_v35 = vshll.u32 %v4697_v6, 16  ;;  %v5608_v37 = vshll.u32 %v4592_v0, 16 }
  0x85   : > { %3788 = vmatmul.mubr.msk.bf16.gmra.mxu1 %vm328_vm1, %v4464_v42  ;;  %3825 = vmatprep.mubr.msk.bf16.mxu0 %vm328_vm1, %v4561_v31  ;;  %v5609_v38 = vshrl.u32 %v4592_v0, 16  ;;  %v4780_v20 = vcombine.low %v2281_v9, %v2284_v28  ;;  %v1259_v46 = vrot.slane %v5611_v62, 4  ;;  %v1282_v6 = vor.u32 %v4601_v51, %v4599_v34 }
  0x86   : > { %3791 = vmatprep.mubr.msk.bf16.mxu1 %vm328_vm1, %v4551_v21  ;;  %5607 = vst [vmem:[#allocation4_spill] sm:$0xff] %v4768_v54  ;;  %v4775_v61 = vrot.slane %v5608_v37, 5  ;;  %v3448_v0 = vrot.slane %v2126_v43, 9  ;;  %v1273_v56 = vrot.slane %v1272_v45, 4  ;;  %v1309_v44 = vshll.u32 %v4706_v12, 16 }
  0x87   : > { %v1305_v60 = vrot.slane %v5609_v38, 4  ;;  %5610 = vst [vmem:[#allocation5_spill] sm:$0xff] %v4780_v20  ;;  %v2287_v7 = vrot.slane %v966_v13, 5  ;;  %v2290_v53 = vrot.slane %v4793_v40, 5  ;;  %v1296_v57 = vor.u32 %v1295_v36, %v1292_v11  ;;  %v4821_v54 = vld [vmem:[%s4120_s25 + $0xc4] sm:$0xf] }
  0x88   : > { %v1314_v49 = vshrl.u32 %v962_v58, 16  ;;  %v1317_v9 = vshll.u32 %v962_v58, 16  ;;  %v1323_v55 = vshll.u32 %v4714_v32, 16  ;;  %v1327_v51 = vshrl.u32 %v4714_v32, 16 }
  0x89   : > { %v1306_v15 = vor.u32 %v1305_v60, %v4775_v61  ;;  %v2288_v27 = vsel %vm4523_vm7, %v3448_v0, %v2287_v7  ;;  %v2289_v12 = vrot.slane %v2287_v7, 4  ;;  %v1264_v39 = vsel %vm4328_vm4, %v1259_v46, %v1263_v1  ;;  %v968_v0 = vld [vmem:[%s4120_s25 + $0xc0] sm:$0xf] }
  0x8a   : > { %v1283_v45 = vrot.slane %v1282_v6, 4  ;;  %v1287_v63 = vrot.slane %v1285_v35, 5  ;;  %v1338_v43 = vshrl.u32 %v965_v41, 16  ;;  %v1341_v32 = vshll.u32 %v965_v41, 16 }
  0x8b   : > { %v1347_v11 = vshll.u32 %v966_v13, 16  ;;  %v1351_v36 = vshrl.u32 %v966_v13, 16  ;;  %v2291_v28 = vsel %vm4523_vm7, %v2289_v12, %v2290_v53  ;;  %v1297_v37 = vrot.slane %v1296_v57, 4 }
  0x8c   : > { %3826 = vmatmul.mubr.msk.bf16.gmra.mxu0 %vm328_vm1, %v4568_v3  ;;  %v1311_v38 = vrot.slane %v1309_v44, 5  ;;  %v1316_v60 = vrot.slane %v1314_v49, 4  ;;  %v4815_v58 = vcombine.low %v2288_v27, %v2291_v28  ;;  %v1307_v1 = vrot.slane %v1306_v15, 4 }
  0x8d   : > { %3792 = vmatmul.mubr.msk.bf16.gmra.mxu1 %vm328_vm1, %v4561_v31  ;;  %3829 = vmatprep.mubr.msk.bf16.mxu0 %vm328_vm1, %v4570_v14  ;;  %v1319_v62 = vrot.slane %v1317_v9, 5  ;;  %v1325_v35 = vrot.slane %v1323_v55, 5  ;;  %v1329_v46 = vrot.slane %v1327_v51, 4  ;;  %v4817_v6 = vcombine.low %v1254_v25, %v1264_v39 }
  0x8e   : > { %3795 = vmatprep.mubr.msk.bf16.mxu1 %vm328_vm1, %v4568_v3  ;;  %v1340_v7 = vrot.slane %v1338_v43, 4  ;;  %v1343_v41 = vrot.slane %v1341_v32, 5  ;;  %v1349_v20 = vrot.slane %v1347_v11, 5  ;;  %v1353_v13 = vrot.slane %v1351_v36, 4 }
  0x8f   : > { %v1278_v44 = vsel %vm4328_vm4, %v1273_v56, %v4599_v34  ;;  %v1288_v53 = vsel %vm4328_vm4, %v1283_v45, %v1287_v63  ;;  %v1333_v57 = vshll.u32 %v4726_v26, 16  ;;  %v1302_v25 = vsel %vm4328_vm4, %v1297_v37, %v4775_v61 }
  0x90   : > { %v1312_v49 = vsel %vm4328_vm4, %v1307_v1, %v1311_v38  ;;  %v1320_v9 = vor.u32 %v1319_v62, %v1316_v60  ;;  %v1330_v55 = vor.u32 %v1329_v46, %v1325_v35  ;;  %v1656_v34 = vshrl.u32 %v968_v0, 16  ;;  %v970_v1 = vld [vmem:[%s4120_s25 + $0xc8] sm:$0x1] }
  0x91   : > { %v1659_v26 = vshll.u32 %v968_v0, 16  ;;  %v1665_v56 = vshll.u32 %v4821_v54, 16  ;;  %v1669_v15 = vshrl.u32 %v4821_v54, 16  ;;  %v1344_v61 = vor.u32 %v1343_v41, %v1340_v7 }
  0x92   : > { %v1354_v51 = vor.u32 %v1353_v13, %v1349_v20  ;;  %v1357_v27 = vshll.u32 %v4793_v40, 16  ;;  %v4845_v12 = vcombine.low %v1278_v44, %v1288_v53  ;;  %v4847_v39 = vcombine.low %v1302_v25, %v1312_v49  ;;  %v2111_v44 = vld [vmem:[%s4120_s25] sm:$0xe] }
  0x93   : > { %v1321_v45 = vrot.slane %v1320_v9, 4  ;;  %v1331_v63 = vrot.slane %v1330_v55, 4  ;;  %v1335_v43 = vrot.slane %v1333_v57, 5  ;;  %v1658_v32 = vrot.slane %v1656_v34, 4 }
  0x94   : > { %3830 = vmatmul.mubr.msk.bf16.gmra.mxu0 %vm328_vm1, %v4755_v33  ;;  %v1661_v11 = vrot.slane %v1659_v26, 5  ;;  %v1667_v36 = vrot.slane %v1665_v56, 5  ;;  %v1671_v28 = vrot.slane %v1669_v15, 4  ;;  %v1345_v37 = vrot.slane %v1344_v61, 4  ;;  %v4036_v26 = vld [vmem:[%s4120_s25 + $0x8] sm:$0x1] }
  0x95   : > { %3796 = vmatmul.mubr.msk.bf16.gmra.mxu1 %vm328_vm1, %v4570_v14  ;;  %3833 = vmatprep.mubr.msk.bf16.mxu0 %vm328_vm1, %v4817_v6  ;;  %v1355_v38 = vrot.slane %v1354_v51, 4  ;;  %v1359_v60 = vrot.slane %v1357_v27, 5  ;;  %v1326_v40 = vsel %vm4328_vm4, %v1321_v45, %v1325_v35  ;;  %v1336_v62 = vsel %vm4328_vm4, %v1331_v63, %v1335_v43  ;;  %v4884_v15 = vld [vmem:[%s4120_s25 + $0xd0] sm:$0xf]  ;;  %v4887_v61 = vld [vmem:[%s4120_s25 + $0xd4] sm:$0x1] }
  0x96   : > { %3799 = vmatprep.mubr.msk.bf16.mxu1 %vm328_vm1, %v4755_v33  ;;  %v1662_v46 = vor.u32 %v1661_v11, %v1658_v32  ;;  %v1672_v0 = vor.u32 %v1671_v28, %v1667_v36  ;;  %v1675_v7 = vshll.u32 %v970_v1, 16  ;;  %v1350_v41 = vsel %vm4328_vm4, %v1345_v37, %v1349_v20  ;;  %v2127_v43 = vld [vmem:[%s4120_s25 + $0xc0] sm:$0xe]  ;;  %v2128_v37 = vld [vmem:[%s4120_s25 + $0xcc] sm:$0xe] }
  0x97   : > { %v1360_v35 = vsel %vm4328_vm4, %v1355_v38, %v1359_v60  ;;  %v2182_v13 = vrot.slane %v4216_v29, 5  ;;  %v4868_v53 = vcombine.low %v1326_v40, %v1336_v62  ;;  %v3433_v55 = vrot.slane %v2111_v44, 9 }
  0x98   : > { %v4870_v57 = vcombine.low %v1350_v41, %v1360_v35  ;;  %v1663_v25 = vrot.slane %v1662_v46, 4  ;;  %v1673_v49 = vrot.slane %v1672_v0, 4  ;;  %v1677_v9 = vrot.slane %v1675_v7, 5  ;;  %v2113_v46 = vld [vmem:[%s4120_s25 + $0x18] sm:$0xe] }
  0x99   : > { %v2184_v34 = vrot.slane %v2182_v13, 4  ;;  %v2185_v20 = vrot.slane %v4036_v26, 5  ;;  %v2591_v51 = vrot.slane %v4821_v54, 5  ;;  %v2183_v27 = vsel %vm4523_vm7, %v3433_v55, %v2182_v13 }
  0x9a   : > { %v1668_v29 = vsel %vm4328_vm4, %v1663_v25, %v1667_v36  ;;  %v1678_v56 = vsel %vm4328_vm4, %v1673_v49, %v1677_v9  ;;  %v2808_v63 = vrot.slane %v4887_v61, 5  ;;  %v2805_v32 = vrot.slane %v4884_v15, 5  ;;  %v5612_v25 = vld [vmem:[#allocation2_spill] sm:$0xff]  ;;  %v4037_v9 = vld [vmem:[%s4120_s25 + $0x28] sm:$0xf] }
  0x9b   : > { %v2186_v45 = vsel %vm4523_vm7, %v2184_v34, %v2185_v20  ;;  %v3482_v11 = vrot.slane %v2127_v43, 9  ;;  %v2593_v36 = vrot.slane %v2591_v51, 4  ;;  %v2594_v28 = vrot.slane %v970_v1, 5  ;;  %v2114_v34 = vld [vmem:[%s4120_s25 + $0x24] sm:$0xe] }
  0x9c   : > { %3834 = vmatmul.mubr.msk.bf16.gmra.mxu0 %vm328_vm1, %v4845_v12  ;;  %v4900_v54 = vcombine.low %v1668_v29, %v1678_v56  ;;  %v2196_v38 = vrot.slane %v4257_v52, 5  ;;  %v3501_v60 = vrot.slane %v2128_v37, 9  ;;  %v2807_v40 = vrot.slane %v2805_v32, 4 }
  0x9d   : > { %3800 = vmatmul.mubr.msk.bf16.gmra.mxu1 %vm328_vm1, %v4817_v6  ;;  %3837 = vmatprep.mubr.msk.bf16.mxu0 %vm328_vm1, %v4847_v39  ;;  %v3450_v62 = vcombine.low %v2183_v27, %v2186_v45  ;;  %v2592_v0 = vsel %vm4523_vm7, %v3482_v11, %v2591_v51  ;;  %v2595_v7 = vsel %vm4523_vm7, %v2593_v36, %v2594_v28  ;;  %v3435_v13 = vrot.slane %v2113_v46, 9  ;;  %v5613_v51 = vld [vmem:[#allocation3_spill] sm:$0xff] }
  0x9e   : > { %3803 = vmatprep.mubr.msk.bf16.mxu1 %vm328_vm1, %v4845_v12  ;;  %v4908_v41 = vcombine.low %v2592_v0, %v2595_v7  ;;  %v4912_v1 = vsel %vm4523_vm7, %v3501_v60, %v2805_v32  ;;  %v4916_v52 = vsel %vm4523_vm7, %v2807_v40, %v2808_v63  ;;  %v2198_v44 = vrot.slane %v2196_v38, 4 }
  0x9f   : > { %v3503_v35 = vcombine.low %v4912_v1, %v4916_v52  ;;  %v2199_v49 = vrot.slane %v5612_v25, 5  ;;  %v2203_v55 = vrot.slane %v4037_v9, 5  ;;  %v2197_v26 = vsel %vm4523_vm7, %v3435_v13, %v2196_v38 }
  0xa0   : > { %v3436_v29 = vrot.slane %v2114_v34, 9  ;;  %v2206_v27 = vrot.slane %v5613_v51, 5  ;;  %v2819_v45 = vsel %vm377_vm0, %v4615_v18, 0  ;;  %v2605_v63 = vsel %vm377_vm0, %v4607_v17, 0 }
  0xa1   : > { %v2200_v20 = vsel %vm4523_vm7, %v2198_v44, %v2199_v49  ;;  %v2205_v56 = vrot.slane %v2203_v55, 4  ;;  %v1903_v0 = vshll.u32 %v4887_v61, 16  ;;  %v5615_v61 = vld [vmem:[#allocation5_spill] sm:$0xff] }
  0xa2   : > { %v4939_v43 = vcombine.low %v2197_v26, %v2200_v20 }
  0xa3   : > { %v2207_v32 = vsel %vm4523_vm7, %v2205_v56, %v2206_v27  ;;  %v1905_v9 = vrot.slane %v1903_v0, 5 }
  0xa4   : > { %3838 = vmatmul.mubr.msk.bf16.gmra.mxu0 %vm328_vm1, %v4868_v53 }
  0xa5   : > { %3804 = vmatmul.mubr.msk.bf16.gmra.mxu1 %vm328_vm1, %v4847_v39  ;;  %3841 = vmatprep.mubr.msk.bf16.mxu0 %vm328_vm1, %v4870_v57 }
  0xa6   : > { %3807 = vmatprep.mubr.msk.bf16.mxu1 %vm328_vm1, %v4868_v53 }
  0xac   : > { %3842 = vmatmul.mubr.msk.bf16.gmra.mxu0 %vm328_vm1, %v4900_v54 }
  0xad   : > { %3808 = vmatmul.mubr.msk.bf16.gmra.mxu1 %vm328_vm1, %v4870_v57  ;;  %3881 = vmatprep.mubr.msk.bf16.mxu0 %vm328_vm1, %v3450_v62 }
  0xae   : > { %3847 = vmatprep.mubr.msk.bf16.mxu1 %vm328_vm1, %v4403_v8  ;;  %v2204_v8 = vsel %vm4523_vm7, %v3436_v29, %v2203_v55 }
  0xaf   : > { %v4953_v17 = vcombine.low %v2204_v8, %v2207_v32 }
  0xb4   : > { %3882 = vmatmul.mubr.msk.bf16.vlgmr.msra.gmra.mxu0 %vm328_vm1, %v4565_v19 }
  0xb5   : > { %3848 = vmatmul.mubr.msk.bf16.vlgmr.msra.gmra.mxu1 %vm328_vm1, %v4405_v5  ;;  %3948 = vmatpush3.bf16.msra.mxu0 %v2819_v45  ;;  %v971_v5 = vld [vmem:[%s4120_s25 + $0xcc] sm:$0xf] }
  0xb6   : > { %3914 = vmatpush3.bf16.msra.mxu1 %v2605_v63  ;;  %3851 = vmatprep.mubr.msk.bf16.mxu1 %vm328_vm1, %v4411_v24 }
  0xb7   : > { %3885 = vmatprep.mubr.msk.bf16.mxu0 %vm328_vm1, %v4939_v43 }
  0xbc   : > { %3886 = vmatmul.mubr.msk.bf16.gmra.mxu0 %vm328_vm1, %v4953_v17 }
  0xbd   : > { %3852 = vmatmul.mubr.msk.bf16.gmra.mxu1 %vm328_vm1, %v4464_v42  ;;  %3889 = vmatprep.mubr.msk.bf16.mxu0 %vm328_vm1, %v4640_v47 }
  0xbe   : > { %3855 = vmatprep.mubr.msk.bf16.mxu1 %vm328_vm1, %v4551_v21  ;;  %v1884_v21 = vshrl.u32 %v971_v5, 16 }
  0xc0   : > { %v1886_v36 = vrot.slane %v1884_v21, 4 }
  0xc4   : > { %3890 = vmatmul.mubr.msk.bf16.gmra.mxu0 %vm328_vm1, %v4652_v23 }
  0xc5   : > { %3856 = vmatmul.mubr.msk.bf16.gmra.mxu1 %vm328_vm1, %v4561_v31  ;;  %3893 = vmatprep.mubr.msk.bf16.mxu0 %vm328_vm1, %v4658_v2  ;;  %v1887_v31 = vshll.u32 %v971_v5, 16 }
  0xc6   : > { %3859 = vmatprep.mubr.msk.bf16.mxu1 %vm328_vm1, %v4568_v3  ;;  %v1893_v3 = vshll.u32 %v4884_v15, 16 }
  0xc7   : > { %v1889_v28 = vrot.slane %v1887_v31, 5 }
  0xc8   : > { %v1895_v37 = vrot.slane %v1893_v3, 5 }
  0xc9   : > { %v1890_v62 = vor.u32 %v1889_v28, %v1886_v36 }
  0xcc   : > { %3894 = vmatmul.mubr.msk.bf16.gmra.mxu0 %vm328_vm1, %v4677_v16 }
  0xcd   : > { %3860 = vmatmul.mubr.msk.bf16.gmra.mxu1 %vm328_vm1, %v4570_v14  ;;  %3897 = vmatprep.mubr.msk.bf16.mxu0 %vm328_vm1, %v4686_v59  ;;  %v1897_v14 = vshrl.u32 %v4884_v15, 16 }
  0xce   : > { %3863 = vmatprep.mubr.msk.bf16.mxu1 %vm328_vm1, %v4755_v33 }
  0xcf   : > { %v1899_v38 = vrot.slane %v1897_v14, 4 }
  0xd1   : > { %v1900_v46 = vor.u32 %v1899_v38, %v1895_v37 }
  0xd3   : > { %v1901_v49 = vrot.slane %v1900_v46, 4 }
  0xd4   : > { %v4980_v24 = vpop.f32.mrf.mxu0  ;;  %3898 = vmatmul.mubr.msk.bf16.gmra.mxu0 %vm328_vm1, %v4699_v10 }
  0xd5   : > { %v4984_v42 = vpop.f32.mrf.mxu1  ;;  %3864 = vmatmul.mubr.msk.bf16.gmra.mxu1 %vm328_vm1, %v4817_v6  ;;  %3901 = vmatprep.mubr.msk.bf16.mxu0 %vm328_vm1, %v4708_v22  ;;  %v1906_v56 = vsel %vm4328_vm4, %v1901_v49, %v1905_v9 }
  0xd6   : > { %v4990_v30 = vpop.f32.mrf.mxu0  ;;  %3867 = vmatprep.mubr.msk.bf16.mxu1 %vm328_vm1, %v4845_v12 }
  0xd7   : > { %v4996_v18 = vpop.f32.mrf.mxu1 }
  0xd8   : > { %v4998_v33 = vpop.f32.mrf.mxu0 }
  0xd9   : > { %v5000_v11 = vpop.f32.mrf.mxu1 }
  0xda   : > { %v5002_v6 = vpop.f32.mrf.mxu0 }
  0xdb   : > { %v5004_v60 = vpop.f32.mrf.mxu1 }
  0xdc   : > { %v5006_v12 = vpop.f32.mrf.mxu0  ;;  %3902 = vmatmul.mubr.msk.bf16.gmra.mxu0 %vm328_vm1, %v4728_v50 }
  0xdd   : > { %v5010_v15 = vpop.f32.mrf.mxu1  ;;  %3868 = vmatmul.mubr.msk.bf16.gmra.mxu1 %vm328_vm1, %v4847_v39  ;;  %3905 = vmatprep.mubr.msk.bf16.mxu0 %vm328_vm1, %v4738_v48  ;;  %v1891_v39 = vrot.slane %v1890_v62, 4 }
  0xde   : > { %v5016_v40 = vpop.f32.mrf.mxu0  ;;  %3871 = vmatprep.mubr.msk.bf16.mxu1 %vm328_vm1, %v4868_v53  ;;  %v5614_v53 = vld [vmem:[#allocation4_spill] sm:$0xff] }
  0xdf   : > { %v5021_v7 = vpop.f32.mrf.mxu1  ;;  %v1896_v29 = vsel %vm4328_vm4, %v1891_v39, %v1895_v37 }
  0xe0   : > { %v5023_v13 = vpop.f32.mrf.mxu0 }
  0xe1   : > { %v5025_v44 = vpop.f32.mrf.mxu1 }
  0xe2   : > { %v5027_v25 = vpop.f32.mrf.mxu0 }
  0xe3   : > { %v5029_v55 = vpop.f32.mrf.mxu1 }
  0xe4   : > { %v5031_v34 = vpop.f32.mrf.mxu0  ;;  %3906 = vmatmul.mubr.msk.bf16.gmra.mxu0 %vm328_vm1, %v5614_v53 }
  0xe5   : > { %v5035_v26 = vpop.f32.mrf.mxu1  ;;  %3872 = vmatmul.mubr.msk.bf16.gmra.mxu1 %vm328_vm1, %v4870_v57  ;;  %3909 = vmatprep.mubr.msk.bf16.mxu0 %vm328_vm1, %v5615_v61  ;;  %v3416_v57 = vcombine.low %v1896_v29, %v1906_v56 }
  0xe6   : > { %v5041_v20 = vpop.f32.mrf.mxu0  ;;  %3875 = vmatprep.mubr.msk.bf16.mxu1 %vm328_vm1, %v4900_v54 }
  0xe7   : > { %v5049_v51 = vpop.f32.mrf.mxu1 }
  0xe8   : > { %v5051_v27 = vpop.f32.mrf.mxu0 }
  0xe9   : > { %v5053_v45 = vpop.f32.mrf.mxu1 }
  0xea   : > { %v5055_v63 = vpop.f32.mrf.mxu0 }
  0xeb   : > { %v5057_v8 = vpop.f32.mrf.mxu1 }
  0xec   : > { %v5059_v32 = vpop.f32.mrf.mxu0  ;;  %3910 = vmatmul.mubr.msk.bf16.gmra.mxu0 %vm328_vm1, %v4815_v58 }
  0xed   : > { %v5063_v54 = vpop.f32.mrf.mxu1  ;;  %3876 = vmatmul.mubr.msk.bf16.gmra.mxu1 %vm328_vm1, %v3416_v57  ;;  %3949 = vmatprep.mubr.msk.bf16.mxu0 %vm328_vm1, %v4939_v43 }
  0xee   : > { %v5068_v4 = vpop.f32.mrf.mxu0  ;;  %3915 = vmatprep.mubr.msk.bf16.mxu1 %vm328_vm1, %v4565_v19 }
  0xef   : > { %v5072_v5 = vpop.f32.mrf.mxu1 }
  0xf0   : > { %v5074_v21 = vpop.f32.mrf.mxu0 }
  0xf1   : > { %v5076_v31 = vpop.f32.mrf.mxu1 }
  0xf2   : > { %v5078_v3 = vpop.f32.mrf.mxu0 }
  0xf3   : > { %v5080_v14 = vpop.f32.mrf.mxu1 }
  0xf4   : > { %v3747_v36 = vpop.f32.mrf.mxu0  ;;  %3950 = vmatmul.mubr.msk.bf16.vlgmr.msra.gmra.mxu0 %vm328_vm1, %v4953_v17 }
  0xf5   : > { %v3713_v28 = vpop.f32.mrf.mxu1  ;;  %3916 = vmatmul.mubr.msk.bf16.vlgmr.msra.gmra.mxu1 %vm328_vm1, %v4939_v43  ;;  %3953 = vmatprep.mubr.msk.bf16.mxu0 %vm328_vm1, %v4640_v47 }
  0xf6   : > { %v596_v19 = vadd.f32 %v3713_v28, %v4980_v24  ;;  %v761_v37 = vpop.f32.mrf.mxu0  ;;  %3919 = vmatprep.mubr.msk.bf16.mxu1 %vm328_vm1, %v4953_v17 }
  0xf7   : > { %v587_v38 = vpop.f32.mrf.mxu1 }
  0xf8   : > { %v5091_v62 = vadd.f32 %v3747_v36, %v596_v19  ;;  %v588_v46 = vadd.f32 %v587_v38, %v4990_v30  ;;  %v3748_v0 = vpop.f32.mrf.mxu0 }
  0xf9   : > { %v3714_v39 = vpop.f32.mrf.mxu1 }
  0xfa   : > { %v5094_v49 = vadd.f32 %v761_v37, %v588_v46  ;;  %v599_v43 = vadd.f32 %v3714_v39, %v4998_v33  ;;  %v764_v9 = vpop.f32.mrf.mxu0 }
  0xfb   : > { %v590_v29 = vpop.f32.mrf.mxu1 }
  0xfc   : > { %v5097_v56 = vadd.f32 %v3748_v0, %v599_v43  ;;  %v591_v24 = vadd.f32 %v590_v29, %v5002_v6  ;;  %v3751_v57 = vpop.f32.mrf.mxu0  ;;  %3954 = vmatmul.mubr.msk.bf16.gmra.mxu0 %vm328_vm1, %v4652_v23 }
  0xfd   : > { %v3717_v17 = vpop.f32.mrf.mxu1  ;;  %3920 = vmatmul.mubr.msk.bf16.gmra.mxu1 %vm328_vm1, %v4640_v47  ;;  %3957 = vmatprep.mubr.msk.bf16.mxu0 %vm328_vm1, %v4658_v2 }
  0xfe   : > { %v5106_v30 = vadd.f32 %v764_v9, %v591_v24  ;;  %v612_v33 = vadd.f32 %v3717_v17, %v5006_v12  ;;  %v777_v36 = vpop.f32.mrf.mxu0  ;;  %3923 = vmatprep.mubr.msk.bf16.mxu1 %vm328_vm1, %v4652_v23 }
  0xff   : > { %v603_v6 = vpop.f32.mrf.mxu1 }
 0x100   : > { %v5111_v28 = vadd.f32 %v3751_v57, %v612_v33  ;;  %v604_v19 = vadd.f32 %v603_v6, %v5016_v40  ;;  %v3752_v37 = vpop.f32.mrf.mxu0 }
 0x101   : > { %v3718_v38 = vpop.f32.mrf.mxu1 }
 0x102   : > { %v5114_v46 = vadd.f32 %v777_v36, %v604_v19  ;;  %v615_v47 = vadd.f32 %v3718_v38, %v5023_v13  ;;  %v780_v0 = vpop.f32.mrf.mxu0 }
 0x103   : > { %v606_v39 = vpop.f32.mrf.mxu1 }
 0x104   : > { %v5117_v43 = vadd.f32 %v3752_v37, %v615_v47  ;;  %v607_v12 = vadd.f32 %v606_v39, %v5027_v25  ;;  %v3755_v9 = vpop.f32.mrf.mxu0  ;;  %3958 = vmatmul.mubr.msk.bf16.gmra.mxu0 %vm328_vm1, %v4677_v16 }
 0x105   : > { %v3721_v23 = vpop.f32.mrf.mxu1  ;;  %3924 = vmatmul.mubr.msk.bf16.gmra.mxu1 %vm328_vm1, %v4658_v2  ;;  %3961 = vmatprep.mubr.msk.bf16.mxu0 %vm328_vm1, %v4686_v59 }
 0x106   : > { %v5126_v40 = vadd.f32 %v780_v0, %v607_v12  ;;  %v628_v13 = vadd.f32 %v3721_v23, %v5031_v34  ;;  %v793_v29 = vpop.f32.mrf.mxu0  ;;  %3927 = vmatprep.mubr.msk.bf16.mxu1 %vm328_vm1, %v4677_v16 }
 0x107   : > { %v619_v25 = vpop.f32.mrf.mxu1 }
 0x108   : > { %v5131_v24 = vadd.f32 %v3755_v9, %v628_v13  ;;  %v620_v57 = vadd.f32 %v619_v25, %v5041_v20  ;;  %v3756_v17 = vpop.f32.mrf.mxu0 }
 0x109   : > { %v3722_v33 = vpop.f32.mrf.mxu1 }
 0x10a   : > { %v5134_v36 = vadd.f32 %v793_v29, %v620_v57  ;;  %v631_v2 = vadd.f32 %v3722_v33, %v5051_v27  ;;  %v796_v6 = vpop.f32.mrf.mxu0 }
 0x10b   : > { %v622_v19 = vpop.f32.mrf.mxu1 }
 0x10c   : > { %v5137_v37 = vadd.f32 %v3756_v17, %v631_v2  ;;  %v623_v34 = vadd.f32 %v622_v19, %v5055_v63  ;;  %v3759_v38 = vpop.f32.mrf.mxu0  ;;  %3962 = vmatmul.mubr.msk.bf16.gmra.mxu0 %vm328_vm1, %v4699_v10 }
 0x10d   : > { %v3725_v16 = vpop.f32.mrf.mxu1  ;;  %3928 = vmatmul.mubr.msk.bf16.gmra.mxu1 %vm328_vm1, %v4686_v59  ;;  %3965 = vmatprep.mubr.msk.bf16.mxu0 %vm328_vm1, %v4708_v22 }
 0x10e   : > { %v5146_v20 = vadd.f32 %v796_v6, %v623_v34  ;;  %v644_v27 = vadd.f32 %v3725_v16, %v5059_v32  ;;  %v809_v47 = vpop.f32.mrf.mxu0  ;;  %3931 = vmatprep.mubr.msk.bf16.mxu1 %vm328_vm1, %v4699_v10 }
 0x10f   : > { %v635_v63 = vpop.f32.mrf.mxu1 }
 0x110   : > { %v5151_v0 = vadd.f32 %v3759_v38, %v644_v27  ;;  %v636_v39 = vadd.f32 %v635_v63, %v5068_v4  ;;  %v3760_v12 = vpop.f32.mrf.mxu0 }
 0x111   : > { %v3726_v9 = vpop.f32.mrf.mxu1 }
 0x112   : > { %v5154_v23 = vadd.f32 %v809_v47, %v636_v39  ;;  %v647_v59 = vadd.f32 %v3726_v9, %v5074_v21  ;;  %v812_v13 = vpop.f32.mrf.mxu0 }
 0x113   : > { %v638_v29 = vpop.f32.mrf.mxu1 }
 0x114   : > { %v5157_v25 = vadd.f32 %v3760_v12, %v647_v59  ;;  %v639_v32 = vadd.f32 %v638_v29, %v5078_v3  ;;  %v3763_v57 = vpop.f32.mrf.mxu0  ;;  %3966 = vmatmul.mubr.msk.bf16.gmra.mxu0 %vm328_vm1, %v4728_v50 }
 0x115   : > { %v3729_v10 = vpop.f32.mrf.mxu1  ;;  %3932 = vmatmul.mubr.msk.bf16.gmra.mxu1 %vm328_vm1, %v4708_v22  ;;  %3969 = vmatprep.mubr.msk.bf16.mxu0 %vm328_vm1, %v4738_v48 }
 0x116   : > { %v5166_v4 = vadd.f32 %v812_v13, %v639_v32  ;;  %v660_v21 = vadd.f32 %v3729_v10, %v4984_v42  ;;  %v825_v17 = vpop.f32.mrf.mxu0  ;;  %3935 = vmatprep.mubr.msk.bf16.mxu1 %vm328_vm1, %v4728_v50 }
 0x117   : > { %v651_v3 = vpop.f32.mrf.mxu1 }
 0x118   : > { %v5171_v33 = vadd.f32 %v3763_v57, %v660_v21  ;;  %v652_v2 = vadd.f32 %v651_v3, %v4996_v18  ;;  %v3764_v6 = vpop.f32.mrf.mxu0 }
 0x119   : > { %v3730_v19 = vpop.f32.mrf.mxu1 }
 0x11a   : > { %v5174_v34 = vadd.f32 %v825_v17, %v652_v2  ;;  %v663_v22 = vadd.f32 %v3730_v19, %v5000_v11  ;;  %v828_v38 = vpop.f32.mrf.mxu0 }
 0x11b   : > { %v654_v16 = vpop.f32.mrf.mxu1 }
 0x11c   : > { %v5177_v27 = vadd.f32 %v3764_v6, %v663_v22  ;;  %v655_v42 = vadd.f32 %v654_v16, %v5004_v60  ;;  %v3767_v47 = vpop.f32.mrf.mxu0  ;;  %3970 = vmatmul.mubr.msk.bf16.gmra.mxu0 %vm328_vm1, %v5614_v53 }
 0x11d   : > { %v3733_v50 = vpop.f32.mrf.mxu1  ;;  %3936 = vmatmul.mubr.msk.bf16.gmra.mxu1 %vm328_vm1, %v4738_v48  ;;  %3973 = vmatprep.mubr.msk.bf16.mxu0 %vm328_vm1, %v5615_v61 }
 0x11e   : > { %v5186_v18 = vadd.f32 %v828_v38, %v655_v42  ;;  %v676_v11 = vadd.f32 %v3733_v50, %v5010_v15  ;;  %v841_v63 = vpop.f32.mrf.mxu0  ;;  %3939 = vmatprep.mubr.msk.bf16.mxu1 %vm328_vm1, %v5614_v53 }
 0x11f   : > { %v667_v60 = vpop.f32.mrf.mxu1 }
 0x120   : > { %v5191_v39 = vadd.f32 %v3767_v47, %v676_v11  ;;  %v668_v12 = vadd.f32 %v667_v60, %v5021_v7  ;;  %v3768_v9 = vpop.f32.mrf.mxu0 }
 0x121   : > { %v3734_v59 = vpop.f32.mrf.mxu1 }
 0x122   : > { %v5194_v13 = vadd.f32 %v841_v63, %v668_v12  ;;  %v679_v48 = vadd.f32 %v3734_v59, %v5025_v44  ;;  %v844_v29 = vpop.f32.mrf.mxu0 }
 0x123   : > { %v670_v32 = vpop.f32.mrf.mxu1 }
 0x124   : > { %v5197_v57 = vadd.f32 %v3768_v9, %v679_v48  ;;  %v671_v15 = vadd.f32 %v670_v32, %v5029_v55  ;;  %v3771_v10 = vpop.f32.mrf.mxu0  ;;  %3974 = vmatmul.mubr.msk.bf16.gmra.mxu0 %vm328_vm1, %v4815_v58 }
 0x125   : > { %v3737_v53 = vpop.f32.mrf.mxu1  ;;  %3940 = vmatmul.mubr.msk.bf16.gmra.mxu1 %vm328_vm1, %v5615_v61  ;;  %3977 = vmatprep.mubr.msk.bf16.mxu0 %vm328_vm1, %v4908_v41 }
 0x126   : > { %v5206_v7 = vadd.f32 %v844_v29, %v671_v15  ;;  %v692_v44 = vadd.f32 %v3737_v53, %v5035_v26  ;;  %v857_v21 = vpop.f32.mrf.mxu0  ;;  %3943 = vmatprep.mubr.msk.bf16.mxu1 %vm328_vm1, %v4815_v58 }
 0x127   : > { %v683_v55 = vpop.f32.mrf.mxu1 }
 0x128   : > { %v5211_v17 = vadd.f32 %v3771_v10, %v692_v44  ;;  %v684_v3 = vadd.f32 %v683_v55, %v5049_v51  ;;  %v3772_v2 = vpop.f32.mrf.mxu0 }
 0x129   : > { %v3738_v6 = vpop.f32.mrf.mxu1 }
 0x12a   : > { %v5214_v19 = vadd.f32 %v857_v21, %v684_v3  ;;  %v695_v61 = vadd.f32 %v3738_v6, %v5053_v45  ;;  %v860_v22 = vpop.f32.mrf.mxu0 }
 0x12b   : > { %v686_v38 = vpop.f32.mrf.mxu1 }
 0x12c   : > { %v5217_v16 = vadd.f32 %v3772_v2, %v695_v61  ;;  %v687_v26 = vadd.f32 %v686_v38, %v5057_v8  ;;  %v3775_v42 = vpop.f32.mrf.mxu0  ;;  %3978 = vmatmul.mubr.msk.bf16.gmra.mxu0 %vm328_vm1, %v3503_v35 }
 0x12d   : > { %v3741_v58 = vpop.f32.mrf.mxu1  ;;  %3944 = vmatmul.mubr.msk.bf16.gmra.mxu1 %vm328_vm1, %v4908_v41 }
 0x12e   : > { %v5226_v51 = vadd.f32 %v860_v22, %v687_v26  ;;  %v708_v45 = vadd.f32 %v3741_v58, %v5063_v54  ;;  %v873_v47 = vpop.f32.mrf.mxu0 }
 0x12f   : > { %v699_v50 = vpop.f32.mrf.mxu1 }
 0x130   : > { %v5229_v11 = vadd.f32 %v3775_v42, %v708_v45  ;;  %v700_v8 = vadd.f32 %v699_v50, %v5072_v5  ;;  %v3776_v63 = vpop.f32.mrf.mxu0 }
 0x131   : > { %v3742_v60 = vpop.f32.mrf.mxu1 }
 0x132   : > { %v5232_v12 = vadd.f32 %v873_v47, %v700_v8  ;;  %v711_v1 = vadd.f32 %v3742_v60, %v5076_v31  ;;  %v876_v52 = vpop.f32.mrf.mxu0 }
 0x133   : > { %v702_v35 = vpop.f32.mrf.mxu1 }
 0x134   : > { %v5235_v9 = vadd.f32 %v3776_v63, %v711_v1  ;;  %v703_v41 = vadd.f32 %v702_v35, %v5080_v14  ;;  %v3815_v59 = vpop.f32.mrf.mxu0 }
 0x135   : > { %v3781_v54 = vpop.f32.mrf.mxu1 }
 0x136   : > { %v5238_v48 = vadd.f32 %v876_v52, %v703_v41  ;;  %v1625_v29 = vadd.f32 %v3781_v54, %v5091_v62  ;;  %v1724_v32 = vpop.f32.mrf.mxu0 }
 0x137   : > { %v1496_v5 = vpop.f32.mrf.mxu1 }
 0x138   : > { %v5241_v15 = vadd.f32 %v3815_v59, %v1625_v29  ;;  %v1623_v10 = vadd.f32 %v1496_v5, %v5094_v49  ;;  %v3816_v53 = vpop.f32.mrf.mxu0 }
 0x139   : > { %v3782_v31 = vpop.f32.mrf.mxu1 }
 0x13a   : > { %v5244_v44 = vadd.f32 %v1724_v32, %v1623_v10  ;;  %v1626_v21 = vadd.f32 %v3782_v31, %v5097_v56  ;;  %v1727_v55 = vpop.f32.mrf.mxu0 }
 0x13b   : > { %v1499_v14 = vpop.f32.mrf.mxu1 }
 0x13c   : > { %v5247_v3 = vadd.f32 %v3816_v53, %v1626_v21  ;;  %v1624_v2 = vadd.f32 %v1499_v14, %v5106_v30  ;;  %v3819_v6 = vpop.f32.mrf.mxu0 }
 0x13d   : > { %v3785_v62 = vpop.f32.mrf.mxu1 }
 0x13e   : > { %v5250_v61 = vadd.f32 %v1727_v55, %v1624_v2  ;;  %v1629_v22 = vadd.f32 %v3785_v62, %v5111_v28  ;;  %v1740_v38 = vpop.f32.mrf.mxu0 }
 0x13f   : > { %v1512_v49 = vpop.f32.mrf.mxu1 }
 0x140   : > { %v5253_v26 = vadd.f32 %v3819_v6, %v1629_v22  ;;  %v1627_v42 = vadd.f32 %v1512_v49, %v5114_v46  ;;  %v3820_v58 = vpop.f32.mrf.mxu0 }
 0x141   : > { %v3786_v56 = vpop.f32.mrf.mxu1 }
 0x142   : > { %v5256_v45 = vadd.f32 %v1740_v38, %v1627_v42  ;;  %v1630_v47 = vadd.f32 %v3786_v56, %v5117_v43  ;;  %v1743_v50 = vpop.f32.mrf.mxu0 }
 0x143   : > { %v1515_v30 = vpop.f32.mrf.mxu1 }
 0x144   : > { %v5259_v8 = vadd.f32 %v3820_v58, %v1630_v47  ;;  %v1628_v63 = vadd.f32 %v1515_v30, %v5126_v40  ;;  %v3823_v60 = vpop.f32.mrf.mxu0 }
 0x145   : > { %v3789_v28 = vpop.f32.mrf.mxu1 }
 0x146   : > { %v5262_v1 = vadd.f32 %v1743_v50, %v1628_v63  ;;  %v1633_v52 = vadd.f32 %v3789_v28, %v5131_v24  ;;  %v1756_v35 = vpop.f32.mrf.mxu0 }
 0x147   : > { %v1528_v46 = vpop.f32.mrf.mxu1 }
 0x148   : > { %v5265_v41 = vadd.f32 %v3823_v60, %v1633_v52  ;;  %v1631_v59 = vadd.f32 %v1528_v46, %v5134_v36  ;;  %v3824_v54 = vpop.f32.mrf.mxu0 }
 0x149   : > { %v3790_v43 = vpop.f32.mrf.mxu1 }
 0x14a   : > { %v5268_v29 = vadd.f32 %v1756_v35, %v1631_v59  ;;  %v1634_v32 = vadd.f32 %v3790_v43, %v5137_v37  ;;  %v1759_v5 = vpop.f32.mrf.mxu0 }
 0x14b   : > { %v1531_v40 = vpop.f32.mrf.mxu1 }
 0x14c   : > { %v5271_v10 = vadd.f32 %v3824_v54, %v1634_v32  ;;  %v1632_v53 = vadd.f32 %v1531_v40, %v5146_v20  ;;  %v3827_v31 = vpop.f32.mrf.mxu0 }
 0x14d   : > { %v3793_v24 = vpop.f32.mrf.mxu1 }
 0x14e   : > { %v5274_v21 = vadd.f32 %v1759_v5, %v1632_v53  ;;  %v1637_v55 = vadd.f32 %v3793_v24, %v5151_v0  ;;  %v1772_v14 = vpop.f32.mrf.mxu0 }
 0x14f   : > { %v1544_v36 = vpop.f32.mrf.mxu1 }
 0x150   : > { %v5277_v2 = vadd.f32 %v3827_v31, %v1637_v55  ;;  %v1635_v6 = vadd.f32 %v1544_v36, %v5154_v23  ;;  %v3828_v62 = vpop.f32.mrf.mxu0 }
 0x151   : > { %v3794_v37 = vpop.f32.mrf.mxu1 }
 0x152   : > { %v5280_v22 = vadd.f32 %v1772_v14, %v1635_v6  ;;  %v1638_v38 = vadd.f32 %v3794_v37, %v5157_v25  ;;  %v1775_v49 = vpop.f32.mrf.mxu0 }
 0x153   : > { %v1547_v20 = vpop.f32.mrf.mxu1 }
 0x154   : > { %v5283_v42 = vadd.f32 %v3828_v62, %v1638_v38  ;;  %v1636_v58 = vadd.f32 %v1547_v20, %v5166_v4  ;;  %v3831_v56 = vpop.f32.mrf.mxu0 }
 0x155   : > { %v3797_v0 = vpop.f32.mrf.mxu1 }
 0x156   : > { %v5286_v47 = vadd.f32 %v1775_v49, %v1636_v58  ;;  %v1641_v50 = vadd.f32 %v3797_v0, %v5171_v33  ;;  %v1788_v30 = vpop.f32.mrf.mxu0 }
 0x157   : > { %v1560_v23 = vpop.f32.mrf.mxu1 }
 0x158   : > { %v5289_v63 = vadd.f32 %v3831_v56, %v1641_v50  ;;  %v1639_v60 = vadd.f32 %v1560_v23, %v5174_v34  ;;  %v3832_v28 = vpop.f32.mrf.mxu0 }
 0x159   : > { %v3798_v25 = vpop.f32.mrf.mxu1 }
 0x15a   : > { %v5292_v52 = vadd.f32 %v1788_v30, %v1639_v60  ;;  %v1642_v35 = vadd.f32 %v3798_v25, %v5177_v27  ;;  %v1791_v46 = vpop.f32.mrf.mxu0 }
 0x15b   : > { %v1563_v4 = vpop.f32.mrf.mxu1 }
 0x15c   : > { %v5295_v59 = vadd.f32 %v3832_v28, %v1642_v35  ;;  %v1640_v54 = vadd.f32 %v1563_v4, %v5186_v18  ;;  %v3835_v43 = vpop.f32.mrf.mxu0 }
 0x15d   : > { %v3801_v33 = vpop.f32.mrf.mxu1 }
 0x15e   : > { %v5298_v32 = vadd.f32 %v1791_v46, %v1640_v54  ;;  %v1645_v5 = vadd.f32 %v3801_v33, %v5191_v39  ;;  %v1804_v40 = vpop.f32.mrf.mxu0 }
 0x15f   : > { %v1576_v34 = vpop.f32.mrf.mxu1 }
 0x160   : > { %v5301_v53 = vadd.f32 %v3835_v43, %v1645_v5  ;;  %v1643_v31 = vadd.f32 %v1576_v34, %v5194_v13  ;;  %v3836_v24 = vpop.f32.mrf.mxu0 }
 0x161   : > { %v3802_v27 = vpop.f32.mrf.mxu1 }
 0x162   : > { %v5304_v55 = vadd.f32 %v1804_v40, %v1643_v31  ;;  %v1646_v14 = vadd.f32 %v3802_v27, %v5197_v57  ;;  %v1807_v36 = vpop.f32.mrf.mxu0 }
 0x163   : > { %v1579_v18 = vpop.f32.mrf.mxu1 }
 0x164   : > { %v5307_v6 = vadd.f32 %v3836_v24, %v1646_v14  ;;  %v1644_v62 = vadd.f32 %v1579_v18, %v5206_v7  ;;  %v3839_v37 = vpop.f32.mrf.mxu0 }
 0x165   : > { %v3805_v39 = vpop.f32.mrf.mxu1 }
 0x166   : > { %v5310_v38 = vadd.f32 %v1807_v36, %v1644_v62  ;;  %v1649_v49 = vadd.f32 %v3805_v39, %v5211_v17  ;;  %v1820_v20 = vpop.f32.mrf.mxu0 }
 0x167   : > { %v1592_v13 = vpop.f32.mrf.mxu1 }
 0x168   : > { %v5313_v58 = vadd.f32 %v3839_v37, %v1649_v49  ;;  %v1647_v56 = vadd.f32 %v1592_v13, %v5214_v19  ;;  %v3840_v0 = vpop.f32.mrf.mxu0 }
 0x169   : > { %v3806_v57 = vpop.f32.mrf.mxu1 }
 0x16a   : > { %v5316_v50 = vadd.f32 %v1820_v20, %v1647_v56  ;;  %v1650_v30 = vadd.f32 %v3806_v57, %v5217_v16  ;;  %v1823_v23 = vpop.f32.mrf.mxu0 }
 0x16b   : > { %v1595_v7 = vpop.f32.mrf.mxu1 }
 0x16c   : > { %v5319_v60 = vadd.f32 %v3840_v0, %v1650_v30  ;;  %v1648_v28 = vadd.f32 %v1595_v7, %v5226_v51  ;;  %v3843_v25 = vpop.f32.mrf.mxu0 }
 0x16d   : > { %v3809_v17 = vpop.f32.mrf.mxu1 }
 0x16e   : > { %v5322_v35 = vadd.f32 %v1823_v23, %v1648_v28  ;;  %v1653_v46 = vadd.f32 %v3809_v17, %v5229_v11  ;;  %v1836_v4 = vpop.f32.mrf.mxu0 }
 0x16f   : > { %v1608_v19 = vpop.f32.mrf.mxu1 }
 0x170   : > { %5616 = vst [vmem:[#allocation2_spill] sm:$0xff] %v5322_v35  ;;  %v5325_v54 = vadd.f32 %v3843_v25, %v1653_v46  ;;  %v1651_v43 = vadd.f32 %v1608_v19, %v5232_v12  ;;  %v3844_v33 = vpop.f32.mrf.mxu0 }
 0x171   : > { %v3810_v16 = vpop.f32.mrf.mxu1 }
 0x172   : > { %v5328_v5 = vadd.f32 %v1836_v4, %v1651_v43  ;;  %v1654_v40 = vadd.f32 %v3810_v16, %v5235_v9  ;;  %v1839_v34 = vpop.f32.mrf.mxu0 }
 0x173   : > { %v1611_v51 = vpop.f32.mrf.mxu1 }
 0x174   : > { %5617 = vst [vmem:[#allocation3_spill] sm:$0xff] %v5328_v5  ;;  %v5331_v31 = vadd.f32 %v3844_v33, %v1654_v40  ;;  %v1652_v24 = vadd.f32 %v1611_v51, %v5238_v48  ;;  %v3883_v27 = vpop.f32.mrf.mxu0 }
 0x175   : > { %v3849_v11 = vpop.f32.mrf.mxu1 }
 0x176   : > { %v5334_v14 = vadd.f32 %v1839_v34, %v1652_v24  ;;  %v2081_v36 = vadd.f32 %v3849_v11, %v5241_v15  ;;  %v2427_v18 = vpop.f32.mrf.mxu0 }
 0x177   : > { %v1952_v12 = vpop.f32.mrf.mxu1 }
 0x178   : > { %5618 = vst [vmem:[#allocation4_spill] sm:$0xff] %v5334_v14  ;;  %v5337_v62 = vadd.f32 %v3883_v27, %v2081_v36  ;;  %v2079_v37 = vadd.f32 %v1952_v12, %v5244_v44  ;;  %v3884_v39 = vpop.f32.mrf.mxu0 }
 0x179   : > { %v3850_v9 = vpop.f32.mrf.mxu1 }
 0x17a   : > { %v5340_v49 = vadd.f32 %v2427_v18, %v2079_v37  ;;  %v2082_v20 = vadd.f32 %v3850_v9, %v5247_v3  ;;  %v5343_v13 = vpop.f32.mrf.mxu0 }
 0x17b   : > { %v5345_v48 = vpop.f32.mrf.mxu1 }
 0x17c   : > { %v5347_v56 = vadd.f32 %v3884_v39, %v2082_v20  ;;  %v3887_v0 = vpop.f32.mrf.mxu0 }
 0x17d   : > { %v3853_v15 = vpop.f32.mrf.mxu1 }
 0x17e   : > { %v2085_v57 = vadd.f32 %v3853_v15, %v5253_v26  ;;  %v5350_v30 = vpop.f32.mrf.mxu0 }
 0x17f   : > { %v5352_v23 = vpop.f32.mrf.mxu1 }
 0x180   : > { %v5354_v44 = vadd.f32 %v3887_v0, %v2085_v57  ;;  %v3888_v7 = vpop.f32.mrf.mxu0 }
 0x181   : > { %v3854_v28 = vpop.f32.mrf.mxu1 }
 0x182   : > { %v2086_v3 = vadd.f32 %v3854_v28, %v5259_v8  ;;  %v5357_v25 = vpop.f32.mrf.mxu0 }
 0x183   : > { %v5359_v17 = vpop.f32.mrf.mxu1 }
 0x184   : > { %v5361_v46 = vadd.f32 %v3888_v7, %v2086_v3  ;;  %v3891_v4 = vpop.f32.mrf.mxu0 }
 0x185   : > { %v3857_v19 = vpop.f32.mrf.mxu1 }
 0x186   : > { %v2089_v26 = vadd.f32 %v3857_v19, %v5265_v41  ;;  %v5364_v43 = vpop.f32.mrf.mxu0 }
 0x187   : > { %v5366_v33 = vpop.f32.mrf.mxu1 }
 0x188   : > { %v5368_v16 = vadd.f32 %v3891_v4, %v2089_v26  ;;  %v3892_v40 = vpop.f32.mrf.mxu0 }
 0x189   : > { %v3858_v34 = vpop.f32.mrf.mxu1 }
 0x18a   : > { %v2090_v8 = vadd.f32 %v3858_v34, %v5271_v10  ;;  %v5371_v51 = vpop.f32.mrf.mxu0 }
 0x18b   : > { %v5373_v24 = vpop.f32.mrf.mxu1 }
 0x18c   : > { %v5375_v27 = vadd.f32 %v3892_v40, %v2090_v8  ;;  %v3895_v11 = vpop.f32.mrf.mxu0 }
 0x18d   : > { %v3861_v36 = vpop.f32.mrf.mxu1 }
 0x18e   : > { %v2093_v41 = vadd.f32 %v3861_v36, %v5277_v2  ;;  %v5378_v18 = vpop.f32.mrf.mxu0 }
 0x18f   : > { %v5380_v12 = vpop.f32.mrf.mxu1 }
 0x190   : > { %v5382_v37 = vadd.f32 %v3895_v11, %v2093_v41  ;;  %v3896_v39 = vpop.f32.mrf.mxu0 }
 0x191   : > { %v3862_v9 = vpop.f32.mrf.mxu1 }
 0x192   : > { %v2094_v10 = vadd.f32 %v3862_v9, %v5283_v42  ;;  %v5385_v20 = vpop.f32.mrf.mxu0 }
 0x193   : > { %v5387_v0 = vpop.f32.mrf.mxu1 }
 0x194   : > { %v5389_v15 = vadd.f32 %v3896_v39, %v2094_v10  ;;  %v3899_v57 = vpop.f32.mrf.mxu0 }
 0x195   : > { %v3865_v7 = vpop.f32.mrf.mxu1 }
 0x196   : > { %v2097_v2 = vadd.f32 %v3865_v7, %v5289_v63  ;;  %v5392_v28 = vpop.f32.mrf.mxu0 }
 0x197   : > { %v5394_v3 = vpop.f32.mrf.mxu1 }
 0x198   : > { %v5396_v4 = vadd.f32 %v3899_v57, %v2097_v2  ;;  %v3900_v19 = vpop.f32.mrf.mxu0 }
 0x199   : > { %v3866_v26 = vpop.f32.mrf.mxu1 }
 0x19a   : > { %v2098_v42 = vadd.f32 %v3866_v26, %v5295_v59  ;;  %v5399_v40 = vpop.f32.mrf.mxu0 }
 0x19b   : > { %v5401_v34 = vpop.f32.mrf.mxu1 }
 0x19c   : > { %v5403_v8 = vadd.f32 %v3900_v19, %v2098_v42  ;;  %v3903_v11 = vpop.f32.mrf.mxu0 }
 0x19d   : > { %v3869_v36 = vpop.f32.mrf.mxu1 }
 0x19e   : > { %v2101_v63 = vadd.f32 %v3869_v36, %v5301_v53  ;;  %v5406_v41 = vpop.f32.mrf.mxu0 }
 0x19f   : > { %v5408_v39 = vpop.f32.mrf.mxu1 }
 0x1a0   : > { %v5410_v9 = vadd.f32 %v3903_v11, %v2101_v63  ;;  %v3904_v10 = vpop.f32.mrf.mxu0 }
 0x1a1   : > { %v3870_v57 = vpop.f32.mrf.mxu1 }
 0x1a2   : > { %v2102_v59 = vadd.f32 %v3870_v57, %v5307_v6  ;;  %v5413_v7 = vpop.f32.mrf.mxu0 }
 0x1a3   : > { %v5415_v2 = vpop.f32.mrf.mxu1 }
 0x1a4   : > { %v5417_v19 = vadd.f32 %v3904_v10, %v2102_v59  ;;  %v3907_v26 = vpop.f32.mrf.mxu0 }
 0x1a5   : > { %v3873_v42 = vpop.f32.mrf.mxu1 }
 0x1a6   : > { %5619 = vst [vmem:[#allocation5_spill] sm:$0xff] %v5417_v19  ;;  %v2105_v53 = vadd.f32 %v3873_v42, %v5313_v58  ;;  %v5420_v36 = vpop.f32.mrf.mxu0 }
 0x1a7   : > { %5620 = vst [vmem:[#allocation6_spill] sm:$0xff] %v5420_v36  ;;  %v5422_v14 = vpop.f32.mrf.mxu1 }
 0x1a8   : > { %5621 = vst [vmem:[#allocation7_spill] sm:$0xff] %v5422_v14  ;;  %v5424_v11 = vadd.f32 %v3907_v26, %v2105_v53  ;;  %v3908_v63 = vpop.f32.mrf.mxu0 }
 0x1a9   : > { %v3874_v5 = vpop.f32.mrf.mxu1 }
 0x1aa   : > { %5622 = vst [vmem:[#allocation8_spill] sm:$0xff] %v5424_v11  ;;  %v2106_v6 = vadd.f32 %v3874_v5, %v5319_v60  ;;  %v5427_v57 = vpop.f32.mrf.mxu0 }
 0x1ab   : > { %5623 = vst [vmem:[#allocation9_spill] sm:$0xff] %v5427_v57  ;;  %v5429_v35 = vpop.f32.mrf.mxu1 }
 0x1ac   : > { %5624 = vst [vmem:[#allocation10_spill] sm:$0xff] %v5429_v35  ;;  %v5431_v10 = vadd.f32 %v3908_v63, %v2106_v6  ;;  %v3911_v59 = vpop.f32.mrf.mxu0 }
 0x1ad   : > { %v3877_v19 = vpop.f32.mrf.mxu1 }
 0x1ae   : > { %5625 = vst [vmem:[#allocation11_spill] sm:$0xff] %v5431_v10  ;;  %v2109_v58 = vadd.f32 %v3877_v19, %v5325_v54  ;;  %v5434_v42 = vpop.f32.mrf.mxu0  ;;  %v2080_v54 = vadd.f32 %v5345_v48, %v5250_v61  ;;  %v2084_v61 = vadd.f32 %v5359_v17, %v5262_v1 }
 0x1af   : > { %5626 = vst [vmem:[#allocation12_spill] sm:$0xff] %v5434_v42  ;;  %v5436_v36 = vpop.f32.mrf.mxu1 }
 0x1b0   : > { %5627 = vst [vmem:[#allocation13_spill] sm:$0xff] %v5436_v36  ;;  %v5438_v26 = vadd.f32 %v3911_v59, %v2109_v58  ;;  %v3912_v53 = vpop.f32.mrf.mxu0 }
 0x1b1   : > { %v3878_v11 = vpop.f32.mrf.mxu1 }
 0x1b2   : > { %5628 = vst [vmem:[#allocation14_spill] sm:$0xff] %v5438_v26  ;;  %v2110_v60 = vadd.f32 %v3878_v11, %v5331_v31  ;;  %v5441_v5 = vpop.f32.mrf.mxu0  ;;  %v2083_v31 = vadd.f32 %v5352_v23, %v5256_v45 }
 0x1b3   : > { %5629 = vst [vmem:[#allocation15_spill] sm:$0xff] %v5441_v5  ;;  %v5443_v57 = vpop.f32.mrf.mxu1 }
 0x1b4   : > { %5630 = vst [vmem:[#allocation16_spill] sm:$0xff] %v5443_v57  ;;  %v5445_v63 = vadd.f32 %v3912_v53, %v2110_v60  ;;  %v3951_v6 = vpop.f32.mrf.mxu0  ;;  %v2555_v53 = vadd.f32 %v5343_v13, %v2080_v54  ;;  %v2087_v13 = vadd.f32 %v5366_v33, %v5268_v29 }
 0x1b5   : > { %v3917_v10 = vpop.f32.mrf.mxu1 }
 0x1b6   : > { %5631 = vst [vmem:[#allocation17_spill] sm:$0xff] %v5445_v63  ;;  %v2855_v35 = vpop.f32.mrf.mxu0  ;;  %v2770_v26 = vadd.f32 %v3917_v10, %v5337_v62  ;;  %v2558_v62 = vadd.f32 %v5350_v30, %v2083_v31 }
 0x1b7   : > { %v2641_v19 = vpop.f32.mrf.mxu1 }
 0x1b8   : > { %v2768_v59 = vadd.f32 %v2641_v19, %v5340_v49  ;;  %v3952_v58 = vpop.f32.mrf.mxu0  ;;  %v2984_v57 = vadd.f32 %v3951_v6, %v2770_v26 }
 0x1b9   : > { %v3918_v42 = vpop.f32.mrf.mxu1 }
 0x1ba   : > { %v2858_v11 = vpop.f32.mrf.mxu0  ;;  %v2982_v60 = vadd.f32 %v2855_v35, %v2768_v59  ;;  %v2771_v63 = vadd.f32 %v3918_v42, %v5347_v56  ;;  %v2559_v35 = vadd.f32 %v5357_v25, %v2084_v61  ;;  %v3088_v42 = vmul.f32 %v2984_v57, %v2984_v57 }
 0x1bb   : > { %v2644_v5 = vpop.f32.mrf.mxu1  ;;  %v3018_v54 = vsel %vm3014_vm8, %v2984_v57, 0.0 }
 0x1bc   : > { %v3955_v48 = vpop.f32.mrf.mxu0  ;;  %v2769_v49 = vadd.f32 %v2644_v5, %v2555_v53  ;;  %v3086_v36 = vmul.f32 %v2982_v60, %v2982_v60  ;;  %v2985_v45 = vadd.f32 %v3952_v58, %v2771_v63  ;;  %v3015_v26 = vsel %vm3014_vm8, %v2982_v60, 0.0 }
 0x1bd   : > { %v3921_v19 = vpop.f32.mrf.mxu1  ;;  %v2088_v63 = vadd.f32 %v5373_v24, %v5274_v21  ;;  %v3121_v21 = vsel %vm3014_vm8, %v3088_v42, 0.0 }
 0x1be   : > { %v2871_v10 = vpop.f32.mrf.mxu0  ;;  %v2983_v23 = vadd.f32 %v2858_v11, %v2769_v49  ;;  %v2774_v56 = vadd.f32 %v3921_v19, %v5354_v44  ;;  %v3118_v29 = vsel %vm3014_vm8, %v3086_v36, 0.0  ;;  %v3089_v44 = vmul.f32 %v2985_v45, %v2985_v45 }
 0x1bf   : > { %v2657_v14 = vpop.f32.mrf.mxu1  ;;  %v2562_v11 = vadd.f32 %v5364_v43, %v2087_v13  ;;  %v3020_v24 = vsel %vm3014_vm8, %v2985_v45, 0.0  ;;  %v2563_v36 = vadd.f32 %v5371_v51, %v2088_v63 }
 0x1c0   : > { %v2772_v1 = vadd.f32 %v2657_v14, %v2558_v62  ;;  %v3956_v17 = vpop.f32.mrf.mxu0  ;;  %v3016_v30 = vsel %vm3014_vm8, %v2983_v23, 0.0  ;;  %v3087_v5 = vmul.f32 %v2983_v23, %v2983_v23  ;;  %v2988_v61 = vadd.f32 %v3955_v48, %v2774_v56 }
 0x1c1   : > { %v3922_v6 = vpop.f32.mrf.mxu1  ;;  %v3017_v25 = vadd.f32 %v3016_v30, %v3015_v26  ;;  %v3123_v43 = vsel %vm3014_vm8, %v3089_v44, 0.0 }
 0x1c2   : > { %v2986_v59 = vadd.f32 %v2871_v10, %v2772_v1  ;;  %v2874_v58 = vpop.f32.mrf.mxu0  ;;  %v3119_v14 = vsel %vm3014_vm8, %v3087_v5, 0.0  ;;  %v2775_v33 = vadd.f32 %v3922_v6, %v5361_v46  ;;  %v2091_v10 = vadd.f32 %v5380_v12, %v5280_v22 }
 0x1c3   : > { %v2660_v31 = vpop.f32.mrf.mxu1  ;;  %v3019_v53 = vadd.f32 %v3018_v54, %v3017_v25  ;;  %v3120_v60 = vadd.f32 %v3119_v14, %v3118_v29  ;;  %v3092_v26 = vmul.f32 %v2988_v61, %v2988_v61  ;;  %v2092_v54 = vadd.f32 %v5387_v0, %v5286_v47 }
 0x1c4   : > { %v3959_v49 = vpop.f32.mrf.mxu0  ;;  %v3090_v57 = vmul.f32 %v2986_v59, %v2986_v59  ;;  %v2773_v19 = vadd.f32 %v2660_v31, %v2559_v35  ;;  %v3022_v48 = vsel %vm3014_vm8, %v2986_v59, 0.0  ;;  %v2989_v13 = vadd.f32 %v3956_v17, %v2775_v33 }
 0x1c5   : > { %v3925_v62 = vpop.f32.mrf.mxu1  ;;  %v3122_v46 = vadd.f32 %v3121_v21, %v3120_v60  ;;  %v3021_v23 = vadd.f32 %v3020_v24, %v3019_v53  ;;  %v3026_v17 = vsel %vm3014_vm8, %v2988_v61, 0.0  ;;  %v3129_v47 = vsel %vm3014_vm8, %v3092_v26, 0.0 }
 0x1c6   : > { %v2887_v1 = vpop.f32.mrf.mxu0  ;;  %v2987_v56 = vadd.f32 %v2874_v58, %v2773_v19  ;;  %v3125_v51 = vsel %vm3014_vm8, %v3090_v57, 0.0  ;;  %v2778_v12 = vadd.f32 %v3925_v62, %v5368_v16  ;;  %v3093_v29 = vmul.f32 %v2989_v13, %v2989_v13 }
 0x1c7   : > { %v2673_v42 = vpop.f32.mrf.mxu1  ;;  %v3023_v45 = vadd.f32 %v3022_v48, %v3021_v23  ;;  %v3124_v30 = vadd.f32 %v3123_v43, %v3122_v46  ;;  %v3028_v0 = vsel %vm3014_vm8, %v2989_v13, 0.0  ;;  %v2567_v19 = vadd.f32 %v5385_v20, %v2092_v54 }
 0x1c8   : > { %v2776_v35 = vadd.f32 %v2673_v42, %v2562_v11  ;;  %v3960_v5 = vpop.f32.mrf.mxu0  ;;  %v3024_v6 = vsel %vm3014_vm8, %v2987_v56, 0.0  ;;  %v3091_v22 = vmul.f32 %v2987_v56, %v2987_v56  ;;  %v2566_v11 = vadd.f32 %v5378_v18, %v2091_v10 }
 0x1c9   : > { %v3926_v63 = vpop.f32.mrf.mxu1  ;;  %v3126_v25 = vadd.f32 %v3125_v51, %v3124_v30  ;;  %v3025_v59 = vadd.f32 %v3024_v6, %v3023_v45  ;;  %v2992_v61 = vadd.f32 %v3959_v49, %v2778_v12  ;;  %v2095_v18 = vadd.f32 %v5394_v3, %v5292_v52 }
 0x1ca   : > { %v2890_v58 = vpop.f32.mrf.mxu0  ;;  %v3127_v44 = vsel %vm3014_vm8, %v3091_v22, 0.0  ;;  %v2990_v14 = vadd.f32 %v2887_v1, %v2776_v35  ;;  %v2779_v33 = vadd.f32 %v3926_v63, %v5375_v27  ;;  %v3131_v10 = vsel %vm3014_vm8, %v3093_v29, 0.0 }
 0x1cb   : > { %v2676_v31 = vpop.f32.mrf.mxu1  ;;  %v3027_v53 = vadd.f32 %v3026_v17, %v3025_v59  ;;  %v3128_v16 = vadd.f32 %v3127_v44, %v3126_v25  ;;  %v3096_v20 = vmul.f32 %v2992_v61, %v2992_v61  ;;  %v2096_v52 = vadd.f32 %v5401_v34, %v5298_v32 }
 0x1cc   : > { %v2777_v60 = vadd.f32 %v2676_v31, %v2563_v36  ;;  %v3963_v21 = vpop.f32.mrf.mxu0  ;;  %v3094_v24 = vmul.f32 %v2990_v14, %v2990_v14  ;;  %v3030_v36 = vsel %vm3014_vm8, %v2990_v14, 0.0  ;;  %v2993_v1 = vadd.f32 %v3960_v5, %v2779_v33 }
 0x1cd   : > { %v3929_v57 = vpop.f32.mrf.mxu1  ;;  %v3130_v62 = vadd.f32 %v3129_v47, %v3128_v16  ;;  %v3029_v46 = vadd.f32 %v3028_v0, %v3027_v53  ;;  %v3034_v22 = vsel %vm3014_vm8, %v2992_v61, 0.0  ;;  %v2570_v25 = vadd.f32 %v5392_v28, %v2095_v18 }
 0x1ce   : > { %v2991_v23 = vadd.f32 %v2890_v58, %v2777_v60  ;;  %v2903_v27 = vpop.f32.mrf.mxu0  ;;  %v3133_v26 = vsel %vm3014_vm8, %v3094_v24, 0.0  ;;  %v2782_v45 = vadd.f32 %v3929_v57, %v5382_v37  ;;  %v3097_v12 = vmul.f32 %v2993_v1, %v2993_v1 }
 0x1cf   : > { %v2689_v43 = vpop.f32.mrf.mxu1  ;;  %v3031_v48 = vadd.f32 %v3030_v36, %v3029_v46  ;;  %v3132_v13 = vadd.f32 %v3131_v10, %v3130_v62  ;;  %v3137_v32 = vsel %vm3014_vm8, %v3096_v20, 0.0  ;;  %v3036_v34 = vsel %vm3014_vm8, %v2993_v1, 0.0 }
 0x1d0   : > { %v3032_v49 = vsel %vm3014_vm8, %v2991_v23, 0.0  ;;  %v3095_v56 = vmul.f32 %v2991_v23, %v2991_v23  ;;  %v3964_v42 = vpop.f32.mrf.mxu0  ;;  %v2780_v30 = vadd.f32 %v2689_v43, %v2566_v11  ;;  %v2996_v44 = vadd.f32 %v3963_v21, %v2782_v45 }
 0x1d1   : > { %v3930_v35 = vpop.f32.mrf.mxu1  ;;  %v3134_v3 = vadd.f32 %v3133_v26, %v3132_v13  ;;  %v3033_v51 = vadd.f32 %v3032_v49, %v3031_v48  ;;  %v2571_v31 = vadd.f32 %v5399_v40, %v2096_v52  ;;  %v2099_v11 = vadd.f32 %v5408_v39, %v5304_v55 }
 0x1d2   : > { %v3135_v5 = vsel %vm3014_vm8, %v3095_v56, 0.0  ;;  %v2906_v6 = vpop.f32.mrf.mxu0  ;;  %v2994_v63 = vadd.f32 %v2903_v27, %v2780_v30  ;;  %v2783_v54 = vadd.f32 %v3930_v35, %v5389_v15  ;;  %v3139_v28 = vsel %vm3014_vm8, %v3097_v12, 0.0 }
 0x1d3   : > { %v2692_v17 = vpop.f32.mrf.mxu1  ;;  %v3035_v37 = vadd.f32 %v3034_v22, %v3033_v51  ;;  %v3136_v59 = vadd.f32 %v3135_v5, %v3134_v3  ;;  %v3100_v40 = vmul.f32 %v2996_v44, %v2996_v44  ;;  %v2100_v27 = vadd.f32 %v5415_v2, %v5310_v38 }
 0x1d4   : > { %v2781_v58 = vadd.f32 %v2692_v17, %v2567_v19  ;;  %v3967_v29 = vpop.f32.mrf.mxu0  ;;  %v3098_v14 = vmul.f32 %v2994_v63, %v2994_v63  ;;  %v3038_v60 = vsel %vm3014_vm8, %v2994_v63, 0.0  ;;  %v2997_v47 = vadd.f32 %v3964_v42, %v2783_v54 }
 0x1d5   : > { %v3933_v33 = vpop.f32.mrf.mxu1  ;;  %v3138_v15 = vadd.f32 %v3137_v32, %v3136_v59  ;;  %v3037_v53 = vadd.f32 %v3036_v34, %v3035_v37  ;;  %v3042_v43 = vsel %vm3014_vm8, %v2996_v44, 0.0  ;;  %v3145_v45 = vsel %vm3014_vm8, %v3100_v40, 0.0  ;;  %v5632_v44 = vld [vmem:[#allocation7_spill] sm:$0xff] }
 0x1d6   : > { %v2919_v16 = vpop.f32.mrf.mxu0  ;;  %v2995_v0 = vadd.f32 %v2906_v6, %v2781_v58  ;;  %v2786_v21 = vadd.f32 %v3933_v33, %v5396_v4  ;;  %v3141_v46 = vsel %vm3014_vm8, %v3098_v14, 0.0  ;;  %v3101_v48 = vmul.f32 %v2997_v47, %v2997_v47 }
 0x1d7   : > { %v2705_v61 = vpop.f32.mrf.mxu1  ;;  %v3039_v24 = vadd.f32 %v3038_v60, %v3037_v53  ;;  %v3140_v57 = vadd.f32 %v3139_v28, %v3138_v15  ;;  %v3044_v38 = vsel %vm3014_vm8, %v2997_v47, 0.0  ;;  %v2574_v52 = vadd.f32 %v5406_v41, %v2099_v11  ;;  %v5633_v60 = vld [vmem:[#allocation5_spill] sm:$0xff] }
 0x1d8   : > { %v2784_v19 = vadd.f32 %v2705_v61, %v2570_v25  ;;  %v3968_v62 = vpop.f32.mrf.mxu0  ;;  %v3040_v55 = vsel %vm3014_vm8, %v2995_v0, 0.0  ;;  %v3099_v39 = vmul.f32 %v2995_v0, %v2995_v0  ;;  %v3000_v20 = vadd.f32 %v3967_v29, %v2786_v21  ;;  %v5634_v61 = vld [vmem:[#allocation2_spill] sm:$0xff] }
 0x1d9   : > { %v3934_v23 = vpop.f32.mrf.mxu1  ;;  %v3142_v18 = vadd.f32 %v3141_v46, %v3140_v57  ;;  %v3041_v10 = vadd.f32 %v3040_v55, %v3039_v24  ;;  %v2575_v3 = vadd.f32 %v5413_v7, %v2100_v27  ;;  %v2103_v14 = vadd.f32 %v5632_v44, %v5316_v50  ;;  %v5635_v24 = vld [vmem:[#allocation10_spill] sm:$0xff] }
 0x1da   : > { %v2998_v36 = vadd.f32 %v2919_v16, %v2784_v19  ;;  %v2922_v1 = vpop.f32.mrf.mxu0  ;;  %v3143_v4 = vsel %vm3014_vm8, %v3099_v39, 0.0  ;;  %v2787_v13 = vadd.f32 %v3934_v23, %v5403_v8  ;;  %v3147_v8 = vsel %vm3014_vm8, %v3101_v48, 0.0  ;;  %v5636_v23 = vld [vmem:[#allocation6_spill] sm:$0xff] }
 0x1db   : > { %v2708_v49 = vpop.f32.mrf.mxu1  ;;  %v3043_v56 = vadd.f32 %v3042_v43, %v3041_v10  ;;  %v3144_v42 = vadd.f32 %v3143_v4, %v3142_v18  ;;  %v3104_v17 = vmul.f32 %v3000_v20, %v3000_v20  ;;  %v3050_v33 = vsel %vm3014_vm8, %v3000_v20, 0.0 }
 0x1dc   : > { %v3971_v26 = vpop.f32.mrf.mxu0  ;;  %v3102_v2 = vmul.f32 %v2998_v36, %v2998_v36  ;;  %v2785_v30 = vadd.f32 %v2708_v49, %v2571_v31  ;;  %v3046_v22 = vsel %vm3014_vm8, %v2998_v36, 0.0  ;;  %v3001_v12 = vadd.f32 %v3968_v62, %v2787_v13  ;;  %v5637_v13 = vld [vmem:[#allocation8_spill] sm:$0xff] }
 0x1dd   : > { %v3937_v35 = vpop.f32.mrf.mxu1  ;;  %v3146_v51 = vadd.f32 %v3145_v45, %v3144_v42  ;;  %v3045_v5 = vadd.f32 %v3044_v38, %v3043_v56  ;;  %v2104_v57 = vadd.f32 %v5635_v24, %v5634_v61  ;;  %v3153_v50 = vsel %vm3014_vm8, %v3104_v17, 0.0 }
 0x1de   : > { %v2935_v6 = vpop.f32.mrf.mxu0  ;;  %v2999_v63 = vadd.f32 %v2922_v1, %v2785_v30  ;;  %v3149_v29 = vsel %vm3014_vm8, %v3102_v2, 0.0  ;;  %v2790_v32 = vadd.f32 %v3937_v35, %v5410_v9  ;;  %v3105_v53 = vmul.f32 %v3001_v12, %v3001_v12  ;;  %v5638_v2 = vld [vmem:[#allocation9_spill] sm:$0xff] }
 0x1df   : > { %v2721_v54 = vpop.f32.mrf.mxu1  ;;  %v3047_v25 = vadd.f32 %v3046_v22, %v3045_v5  ;;  %v3148_v37 = vadd.f32 %v3147_v8, %v3146_v51  ;;  %v3052_v40 = vsel %vm3014_vm8, %v3001_v12, 0.0  ;;  %v2578_v27 = vadd.f32 %v5636_v23, %v2103_v14  ;;  %v5639_v5 = vld [vmem:[#allocation3_spill] sm:$0xff] }
 0x1e0   : > { %v2788_v59 = vadd.f32 %v2721_v54, %v2574_v52  ;;  %v3972_v58 = vpop.f32.mrf.mxu0  ;;  %v3048_v41 = vsel %vm3014_vm8, %v2999_v63, 0.0  ;;  %v3103_v7 = vmul.f32 %v2999_v63, %v2999_v63  ;;  %v3004_v46 = vadd.f32 %v3971_v26, %v2790_v32 }
 0x1e1   : > { %v3938_v34 = vpop.f32.mrf.mxu1  ;;  %v3150_v31 = vadd.f32 %v3149_v29, %v3148_v37  ;;  %v3049_v11 = vadd.f32 %v3048_v41, %v3047_v25  ;;  %v3155_v43 = vsel %vm3014_vm8, %v3105_v53, 0.0  ;;  %v2579_v30 = vadd.f32 %v5638_v2, %v2104_v57 }
 0x1e2   : > { %v2938_v15 = vpop.f32.mrf.mxu0  ;;  %v3151_v16 = vsel %vm3014_vm8, %v3103_v7, 0.0  ;;  %v3002_v28 = vadd.f32 %v2935_v6, %v2788_v59  ;;  %v2791_v47 = vadd.f32 %v3938_v34, %v5633_v60  ;;  %v3108_v35 = vmul.f32 %v3004_v46, %v3004_v46  ;;  %v5640_v6 = vld [vmem:[#allocation13_spill] sm:$0xff]  ;;  %v5641_v59 = vld [vmem:[#allocation11_spill] sm:$0xff] }
 0x1e3   : > { %v2724_v0 = vpop.f32.mrf.mxu1  ;;  %v3051_v9 = vadd.f32 %v3050_v33, %v3049_v11  ;;  %v3152_v21 = vadd.f32 %v3151_v16, %v3150_v31  ;;  %v2107_v8 = vadd.f32 %v5640_v6, %v5639_v5  ;;  %v3058_v17 = vsel %vm3014_vm8, %v3004_v46, 0.0  ;;  %v5643_v16 = vld [vmem:[#allocation4_spill] sm:$0xff] }
 0x1e4   : > { %v2789_v19 = vadd.f32 %v2724_v0, %v2575_v3  ;;  %v3975_v62 = vpop.f32.mrf.mxu0  ;;  %v3106_v55 = vmul.f32 %v3002_v28, %v3002_v28  ;;  %v3054_v48 = vsel %vm3014_vm8, %v3002_v28, 0.0  ;;  %v3005_v4 = vadd.f32 %v3972_v58, %v2791_v47  ;;  %v5644_v28 = vld [vmem:[#allocation16_spill] sm:$0xff] }
 0x1e5   : > { %v3941_v39 = vpop.f32.mrf.mxu1  ;;  %v3154_v18 = vadd.f32 %v3153_v50, %v3152_v21  ;;  %v3053_v10 = vadd.f32 %v3052_v40, %v3051_v9  ;;  %v3161_v14 = vsel %vm3014_vm8, %v3108_v35, 0.0  ;;  %v2108_v60 = vadd.f32 %v5644_v28, %v5643_v16 }
 0x1e6   : > { %v3003_v36 = vadd.f32 %v2938_v15, %v2789_v19  ;;  %v2951_v1 = vpop.f32.mrf.mxu0  ;;  %v2794_v49 = vadd.f32 %v3941_v39, %v5637_v13  ;;  %v3157_v52 = vsel %vm3014_vm8, %v3106_v55, 0.0  ;;  %v3109_v25 = vmul.f32 %v3005_v4, %v3005_v4  ;;  %v5642_v15 = vld [vmem:[#allocation12_spill] sm:$0xff] }
 0x1e7   : > { %v2737_v56 = vpop.f32.mrf.mxu1  ;;  %v3055_v42 = vadd.f32 %v3054_v48, %v3053_v10  ;;  %v3156_v20 = vadd.f32 %v3155_v43, %v3154_v18  ;;  %v3060_v33 = vsel %vm3014_vm8, %v3005_v4, 0.0  ;;  %v2582_v53 = vadd.f32 %v5642_v15, %v2107_v8 }
 0x1e8   : > { %v3056_v26 = vsel %vm3014_vm8, %v3003_v36, 0.0  ;;  %v3107_v45 = vmul.f32 %v3003_v36, %v3003_v36  ;;  %v3976_v38 = vpop.f32.mrf.mxu0  ;;  %v2792_v3 = vadd.f32 %v2737_v56, %v2578_v27  ;;  %v3008_v32 = vadd.f32 %v3975_v62, %v2794_v49  ;;  %v5645_v27 = vld [vmem:[#allocation14_spill] sm:$0xff]  ;;  %v5646_v36 = vld [vmem:[#allocation15_spill] sm:$0xff] }
 0x1e9   : > { %v3942_v51 = vpop.f32.mrf.mxu1  ;;  %v3158_v22 = vadd.f32 %v3157_v52, %v3156_v20  ;;  %v3057_v12 = vadd.f32 %v3056_v26, %v3055_v42  ;;  %v3163_v24 = vsel %vm3014_vm8, %v3109_v25, 0.0  ;;  %v5647_v20 = vld [vmem:[#allocation17_spill] sm:$0xff] }
 0x1ea   : > { %v3159_v63 = vsel %vm3014_vm8, %v3107_v45, 0.0  ;;  %v2954_v54 = vpop.f32.mrf.mxu0  ;;  %v3006_v37 = vadd.f32 %v2951_v1, %v2792_v3  ;;  %v2795_v58 = vadd.f32 %v3942_v51, %v5641_v59  ;;  %v3112_v62 = vmul.f32 %v3008_v32, %v3008_v32 }
 0x1eb   : > { %v2740_v29 = vpop.f32.mrf.mxu1  ;;  %v3059_v41 = vadd.f32 %v3058_v17, %v3057_v12  ;;  %v3160_v7 = vadd.f32 %v3159_v63, %v3158_v22  ;;  %v2583_v1 = vadd.f32 %v5646_v36, %v2108_v60  ;;  %v3066_v49 = vsel %vm3014_vm8, %v3008_v32, 0.0 }
 0x1ec   : > { %v2793_v34 = vadd.f32 %v2740_v29, %v2579_v30  ;;  %v3979_v44 = vpop.f32.mrf.mxu0  ;;  %v3110_v31 = vmul.f32 %v3006_v37, %v3006_v37  ;;  %v3062_v57 = vsel %vm3014_vm8, %v3006_v37, 0.0  ;;  %v3009_v9 = vadd.f32 %v3976_v38, %v2795_v58 }
 0x1ed   : > { %v3945_v11 = vpop.f32.mrf.mxu1  ;;  %v3162_v47 = vadd.f32 %v3161_v14, %v3160_v7  ;;  %v3061_v0 = vadd.f32 %v3060_v33, %v3059_v41  ;;  %v3169_v38 = vsel %vm3014_vm8, %v3112_v62, 0.0 }
 0x1ee   : > { %v2967_v61 = vpop.f32.mrf.mxu0  ;;  %v3007_v21 = vadd.f32 %v2954_v54, %v2793_v34  ;;  %v3165_v55 = vsel %vm3014_vm8, %v3110_v31, 0.0  ;;  %v2798_v18 = vadd.f32 %v3945_v11, %v5645_v27  ;;  %v3113_v56 = vmul.f32 %v3009_v9, %v3009_v9 }
 0x1ef   : > { %v2753_v19 = vpop.f32.mrf.mxu1  ;;  %v3063_v50 = vadd.f32 %v3062_v57, %v3061_v0  ;;  %v3164_v40 = vadd.f32 %v3163_v24, %v3162_v47  ;;  %v3068_v35 = vsel %vm3014_vm8, %v3009_v9, 0.0 }
 0x1f0   : > { %v2796_v46 = vadd.f32 %v2753_v19, %v2582_v53  ;;  %v3064_v39 = vsel %vm3014_vm8, %v3007_v21, 0.0  ;;  %v3111_v23 = vmul.f32 %v3007_v21, %v3007_v21  ;;  %v3980_v13 = vpop.f32.mrf.mxu0  ;;  %v3012_v52 = vadd.f32 %v3979_v44, %v2798_v18 }
 0x1f1   : > { %v3946_v10 = vpop.f32.mrf.mxu1  ;;  %v3166_v43 = vadd.f32 %v3165_v55, %v3164_v40  ;;  %v3065_v48 = vadd.f32 %v3064_v39, %v3063_v50  ;;  %v3171_v22 = vsel %vm3014_vm8, %v3113_v56, 0.0 }
 0x1f2   : > { %v3010_v4 = vadd.f32 %v2967_v61, %v2796_v46  ;;  %v3167_v42 = vsel %vm3014_vm8, %v3111_v23, 0.0  ;;  %v2799_v26 = vadd.f32 %v3946_v10, %v5647_v20  ;;  %v2970_v8 = vpop.f32.mrf.mxu0  ;;  %v3116_v37 = vmul.f32 %v3012_v52, %v3012_v52 }
 0x1f3   : > { %v2756_v45 = vpop.f32.mrf.mxu1  ;;  %v3067_v2 = vadd.f32 %v3066_v49, %v3065_v48  ;;  %v3168_v30 = vadd.f32 %v3167_v42, %v3166_v43  ;;  %v3074_v32 = vsel %vm3014_vm8, %v3012_v52, 0.0 }
 0x1f4   : > { %v3114_v3 = vmul.f32 %v3010_v4, %v3010_v4  ;;  %v2797_v51 = vadd.f32 %v2756_v45, %v2583_v1  ;;  %v3070_v12 = vsel %vm3014_vm8, %v3010_v4, 0.0  ;;  %v3013_v63 = vadd.f32 %v3980_v13, %v2799_v26 }
 0x1f5   : > { %v3170_v5 = vadd.f32 %v3169_v38, %v3168_v30  ;;  %v3069_v6 = vadd.f32 %v3068_v35, %v3067_v2  ;;  %v3177_v31 = vsel %vm3014_vm8, %v3116_v37, 0.0 }
 0x1f6   : > { %v3011_v54 = vadd.f32 %v2970_v8, %v2797_v51  ;;  %v3173_v59 = vsel %vm3014_vm8, %v3114_v3, 0.0  ;;  %v3117_v34 = vmul.f32 %v3013_v63, %v3013_v63  ;;  %v3076_v11 = vsel %vm3014_vm8, %v3013_v63, 0.0 }
 0x1f7   : > { %v3071_v17 = vadd.f32 %v3070_v12, %v3069_v6  ;;  %v3172_v25 = vadd.f32 %v3171_v22, %v3170_v5 }
 0x1f8   : > { %v3072_v58 = vsel %vm3014_vm8, %v3011_v54, 0.0  ;;  %v3115_v29 = vmul.f32 %v3011_v54, %v3011_v54  ;;  %v3179_v16 = vsel %vm3014_vm8, %v3117_v34, 0.0 }
 0x1f9   : > { %v3174_v41 = vadd.f32 %v3173_v59, %v3172_v25  ;;  %v3073_v7 = vadd.f32 %v3072_v58, %v3071_v17 }
 0x1fa   : > { %v3175_v44 = vsel %vm3014_vm8, %v3115_v29, 0.0 }
 0x1fb   : > { %v3075_v14 = vadd.f32 %v3074_v32, %v3073_v7  ;;  %v3176_v33 = vadd.f32 %v3175_v44, %v3174_v41 }
 0x1fd   : > { %v3077_v15 = vadd.f32 %v3076_v11, %v3075_v14  ;;  %v3178_v53 = vadd.f32 %v3177_v31, %v3176_v33 }
 0x1ff   : > { %v3078_v28 = vrot.slane %v3077_v15, 4  ;;  %v3180_v60 = vadd.f32 %v3179_v16, %v3178_v53 }
 0x201   : > { %v3079_v47 = vadd.f32 %v3078_v28, %v3077_v15  ;;  %v3181_v0 = vrot.slane %v3180_v60, 4 }
 0x203   : > { %v3080_v61 = vrot.slane %v3079_v47, 2  ;;  %v3182_v24 = vadd.f32 %v3181_v0, %v3180_v60 }
 0x205   : > { %v3081_v57 = vadd.f32 %v3080_v61, %v3079_v47  ;;  %v3183_v9 = vrot.slane %v3182_v24, 2 }
 0x207   : > { %v3082_v21 = vrot.slane %v3081_v57, 1  ;;  %v3184_v19 = vadd.f32 %v3183_v9, %v3182_v24 }
 0x209   : > { %v3083_v62 = vadd.f32 %v3082_v21, %v3081_v57  ;;  %v3185_v50 = vrot.slane %v3184_v19, 1 }
 0x20b   : > { %3085 = vst.msk [vmem:[%s197_s17] sm:$0x1] %vm3084_vm9, %v3083_v62  ;;  %v3186_v40 = vadd.f32 %v3185_v50, %v3184_v19 }
 0x20d   : > { %3187 = vst.msk [vmem:[%s203_s20] sm:$0x1] %vm3084_vm9, %v3186_v40 }
 0x20e PF: > { %s14_s14 = sadd.s32 1, %s4060_s14   ;;  %s5648_s12 = smov %s4056_s13 }
 0x20f   : > { %p11_p5 = scmp.ge.s32.totalorder %s14_s14, 4   ;;  %s5649_s13 = smov %s5651_s15 }
 0x211   :  { %13 = sbr.rel (!%p11_p5) target bundleno = 2 (0x2), region = 79 }

// kernel: up_conv_forward.3
= control target key start
LH: loop header
LB: loop body
LE: loop exit
PB: predicated region body
PF: predicated region fallthrough
CT: control target
= control target key end

     0   :  { %s4251_s15 = smov 0   ;;  %s4253_s16 = smov 0   ;;  %s5873_s0 = inlined_call_operand.vmem [shape: bf16[2,18,18,4], index: 0, kind: input, shape index: {}]   ;;  %s5874_s1 = inlined_call_operand.vmem [shape: bf16[3,3,4,32], index: 1, kind: input, shape index: {}]   ;;  %s5875_s2 = inlined_call_operand.vmem [shape: f32[1,32], index: 2, kind: input, shape index: {}]   ;;  %s5876_s3 = inlined_call_operand.vmem [shape: f32[1,32], index: 3, kind: input, shape index: {}]   ;;  %s5877_s4 = inlined_call_operand.vmem [shape: bf16[2,256,32], index: 4, kind: output, shape index: {}]  }
   0x1   :  { %s4255_s17 = smov 0  }
   0x2 LB: > { %s26_s18 = sadd.s32 1, %s4220_s16  ;;  %p3389_p0 = scmp.ge.s32.totalorder %s4224_s17, 1  ;;  %s4224_s17 = sphi %s4255_s17, %s14_s17   ;;  %s4220_s16 = sphi %s4253_s16, %s5985_s16   ;;  %s4216_s15 = sphi %s4251_s15, %s5984_s15  }
   0x3   : > { %p28_p1 = scmp.ge.s32.totalorder %s26_s18, 2  ;;  %p176_p2 = scmp.lt.s32.totalorder %s4224_s17, 3 }
   0x5   : > { %s5987_s18 = smov (%p28_p1, %s26_s18), 0  ;;  %p177_p3 = pnand %p3389_p0, %p176_p2 }
   0x7   : > { %180 = sbr.rel (%p177_p3) target bundleno = 513 (0x201), region = 36 }
   0xc   : > { %v3393_v0 = vld [vmem:[%s5874_s1 + $0x6] sm:$0x3]  ;;  %vm394_vm0 = vcmask 1041408   ;;  %p206_p4 = scmp.lt.s32.totalorder %s4216_s15, 1  ;;  %v262_v2 = vld [vmem:[%s5874_s1] sm:$0x3] }
   0xd   : > { %4148 = vmatprep.subr.msk.bf16.mxu1 %vm394_vm0, %v3393_v0  ;;  %4147 = vmatprep.subr.msk.bf16.mxu0 %vm394_vm0, %v3393_v0  ;;  %v396_v1 = vsel %vm394_vm0, %v3393_v0, 0  ;;  %v3443_v3 = vld [vmem:[%s5874_s1 + $0xc] sm:$0x3]  ;;  %vm345_vm1 = vcmask 31744   ;;  %v3461_v8 = vld [vmem:[%s5874_s1 + $0x2] sm:$0x3] }
   0xe   : > { %4146 = vmatpush3.bf16.msra.mxu1 %v396_v1  ;;  %3840 = vmatpush3.bf16.msra.mxu0 %v396_v1  ;;  %s5989_s15 = smov (!%p206_p4, %s4216_s15), 1  ;;  %v742_v7 = vsel %vm394_vm0, %v3443_v3, 0  ;;  %v568_v10 = vsel %vm394_vm0, %v262_v2, 0  ;;  %v3494_v11 = vld [vmem:[%s5874_s1 + $0x8] sm:$0x3]  ;;  %v1477_v26 = vsel %vm394_vm0, %v3461_v8, 0 }
   0xf   : > { %4149 = vmatprep.subr.msk.bf16.mxu1 %vm394_vm0, %v262_v2  ;;  %4150 = vmatprep.subr.msk.bf16.mxu0 %vm394_vm0, %v3443_v3  ;;  %s4157_s25 = smul.u32 216, %s5989_s15  ;;  %v1705_v25 = vsel %vm394_vm0, %v3494_v11, 0  ;;  %v3512_v28 = vld [vmem:[%s5874_s1 + $0xe] sm:$0x3]  ;;  %v3546_v30 = vld [vmem:[%s5874_s1 + $0x4] sm:$0x3] }
  0x10   : > { %v4414_v47 = vsel %vm394_vm0, %v3512_v28, 0  ;;  %v4417_v48 = vsel %vm394_vm0, %v3546_v30, 0  ;;  %vm991_vm2 = vsmask.f32 3328  ;;  %vm992_vm3 = vsmask.f32 7440 }
  0x11   : > { %s4289_s28 = scalar_lea.vmem %s5873_s0, %s4157_s25  ;;  %vm4497_vm4 = vmor %vm991_vm2, %vm992_vm3  ;;  %vm2194_vm5 = vcmask 1042432   ;;  %vm2195_vm6 = vcmask 1046532   ;;  %s3653_s23 = sshll.u32 %s5989_s15, 7  ;;  %vm3269_vm8 = vcmask 257024  }
  0x12   : > { %v4182_v4 = vld [vmem:[%s4289_s28 + $0xc] sm:$0xff]   ;;  %v4184_v6 = vld [vmem:[%s4289_s28 + $0x18] sm:$0xff]   ;;  %v4312_v12 = vld [vmem:[%s4289_s28 + $0x24] sm:$0xff]   ;;  %s5668_s25 = scalar_lea.vmem %s5877_s4, %s3653_s23 }
  0x13   : > { %v4293_v5 = vld [vmem:[%s4289_s28 + $0x6c] sm:$0xff]   ;;  %3841 = vmatprep.mubr.msk.bf16.mxu0 %vm345_vm1, %v4182_v4  ;;  %v4304_v9 = vld [vmem:[%s4289_s28 + $0x78] sm:$0xff]   ;;  %v4317_v13 = vld [vmem:[%s4289_s28 + $0x84] sm:$0xff]  }
  0x14   : > { %3857 = vmatprep.mubr.msk.bf16.mxu1 %vm345_vm1, %v4293_v5  ;;  %3842 = vmatmul.mubr.msk.bf16.vlgmr.msra.gmra.mxu0 %vm345_vm1, %v4184_v6  ;;  %v4188_v14 = vld [vmem:[%s4289_s28 + $0x30] sm:$0xff]   ;;  %v4330_v16 = vld [vmem:[%s4289_s28 + $0x3c] sm:$0xff]   ;;  %v4343_v18 = vld [vmem:[%s4289_s28 + $0x48] sm:$0xff]  }
  0x15   : > { %3858 = vmatmul.mubr.msk.bf16.vlgmr.msra.gmra.mxu1 %vm345_vm1, %v4304_v9  ;;  %3908 = vmatpush3.bf16.msra.mxu0 %v742_v7  ;;  %v4326_v15 = vld [vmem:[%s4289_s28 + $0x90] sm:$0xff]   ;;  %v4333_v17 = vld [vmem:[%s4289_s28 + $0x9c] sm:$0xff]   ;;  %v4346_v19 = vld [vmem:[%s4289_s28 + $0xa8] sm:$0xff]  }
  0x16   : > { %3874 = vmatpush3.bf16.msra.mxu1 %v568_v10  ;;  %3845 = vmatprep.mubr.msk.bf16.mxu0 %vm345_vm1, %v4312_v12  ;;  %v4349_v20 = vld [vmem:[%s4289_s28 + $0x54] sm:$0xff]   ;;  %v4363_v22 = vld [vmem:[%s4289_s28 + $0x60] sm:$0xff]   ;;  %v939_v31 = vld [vmem:[%s4289_s28 + $0x8] sm:$0x1] }
  0x17   : > { %3861 = vmatprep.mubr.msk.bf16.mxu1 %vm345_vm1, %v4317_v13  ;;  %4151 = vmatprep.subr.msk.bf16.mxu1 %vm394_vm0, %v3461_v8  ;;  %v4352_v21 = vld [vmem:[%s4289_s28 + $0xb4] sm:$0xff]   ;;  %v4366_v23 = vld [vmem:[%s4289_s28 + $0xc0] sm:$0xff]   ;;  %v940_v34 = vld [vmem:[%s4289_s28 + $0xc] sm:$0xf]  ;;  %v1014_v38 = vshll.u32 %v939_v31, 16 }
  0x18   : > { %4152 = vmatprep.subr.msk.bf16.mxu0 %vm394_vm0, %v3494_v11  ;;  %v4198_v24 = vld [vmem:[%s4289_s28] sm:$0xff]   ;;  %v4399_v37 = vld [vmem:[%s4289_s28 + $0x10] sm:$0xf]  ;;  %v1019_v39 = vshrl.u32 %v940_v34, 16  ;;  %v4406_v44 = vld [vmem:[%s4289_s28 + $0x14] sm:$0x1] }
  0x19   : > { %v937_v27 = vld [vmem:[%s4289_s28] sm:$0xf]  ;;  %v4385_v29 = vld [vmem:[%s4289_s28 + $0x4] sm:$0xf]  ;;  %v1022_v45 = vshll.u32 %v940_v34, 16  ;;  %v1028_v46 = vshll.u32 %v4399_v37, 16  ;;  %vm4692_vm7 = vmor %vm2194_vm5, %vm2195_vm6 }
  0x1a   : > { %v995_v32 = vshrl.u32 %v937_v27, 16  ;;  %v998_v33 = vshll.u32 %v937_v27, 16  ;;  %v1004_v35 = vshll.u32 %v4385_v29, 16  ;;  %v1008_v36 = vshrl.u32 %v4385_v29, 16  ;;  %v943_v51 = vld [vmem:[%s4289_s28 + $0x18] sm:$0xf] }
  0x1b   : > { %v4420_v49 = vrot.slane %v1014_v38, 5  ;;  %v4422_v50 = vrot.slane %v1019_v39, 4  ;;  %v4426_v52 = vld [vmem:[%s4289_s28 + $0x1c] sm:$0xf]  ;;  %v1032_v53 = vshrl.u32 %v4399_v37, 16  ;;  %v1038_v54 = vshll.u32 %v4406_v44, 16 }
  0x1c   : > { %3846 = vmatmul.mubr.msk.bf16.gmra.mxu0 %vm345_vm1, %v4188_v14  ;;  %v997_v40 = vrot.slane %v995_v32, 4  ;;  %v1000_v41 = vrot.slane %v998_v33, 5  ;;  %v4403_v42 = vrot.slane %v1004_v35, 5  ;;  %v1010_v43 = vrot.slane %v1008_v36, 4  ;;  %v946_v55 = vld [vmem:[%s4289_s28 + $0x24] sm:$0xf] }
  0x1d   : > { %3862 = vmatmul.mubr.msk.bf16.gmra.mxu1 %vm345_vm1, %v4326_v15  ;;  %3849 = vmatprep.mubr.msk.bf16.mxu0 %vm345_vm1, %v4330_v16  ;;  %v947_v56 = vld [vmem:[%s4289_s28 + $0x28] sm:$0xf]  ;;  %v4433_v59 = vrot.slane %v1022_v45, 5  ;;  %v4435_v60 = vrot.slane %v1028_v46, 5  ;;  %v949_v61 = vld [vmem:[%s4289_s28 + $0x30] sm:$0xf] }
  0x1e   : > { %3865 = vmatprep.mubr.msk.bf16.mxu1 %vm345_vm1, %v4333_v17  ;;  %v1001_v57 = vor.u32 %v1000_v41, %v997_v40  ;;  %v1011_v58 = vor.u32 %v1010_v43, %v4403_v42  ;;  %v4439_v62 = vld [vmem:[%s4289_s28 + $0x34] sm:$0xf]  ;;  %v1043_v63 = vshrl.u32 %v943_v51, 16  ;;  %v1046_v0 = vshll.u32 %v943_v51, 16  ;;  %v952_v32 = vld [vmem:[%s4289_s28 + $0x3c] sm:$0xf] }
  0x1f   : > { %v1052_v1 = vshll.u32 %v4426_v52, 16  ;;  %v1056_v2 = vshrl.u32 %v4426_v52, 16  ;;  %v1067_v3 = vshrl.u32 %v946_v55, 16  ;;  %v1080_v7 = vshrl.u32 %v947_v56, 16  ;;  %v4461_v33 = vld [vmem:[%s4289_s28 + $0x20] sm:$0x1] }
  0x20   : > { %v1091_v8 = vshrl.u32 %v949_v61, 16  ;;  %v1094_v10 = vshll.u32 %v949_v61, 16  ;;  %v1100_v11 = vshll.u32 %v4439_v62, 16  ;;  %v1045_v27 = vrot.slane %v1043_v63, 4  ;;  %5883 = vst [vmem:[#allocation2_spill] sm:$0xff] %v4461_v33 }
  0x21   : > { %v1058_v31 = vrot.slane %v1056_v2, 4  ;;  %v1069_v34 = vrot.slane %v1067_v3, 4  ;;  %v4466_v38 = vld [vmem:[%s4289_s28 + $0x2c] sm:$0x1]  ;;  %v4470_v45 = vrot.slane %v1011_v58, 4  ;;  %v4472_v46 = vrot.slane %v1038_v54, 5 }
  0x22   : > { %5884 = vst [vmem:[#allocation3_spill] sm:$0xff] %v4466_v38  ;;  %v1093_v39 = vrot.slane %v1091_v8, 4  ;;  %v1096_v40 = vrot.slane %v1094_v10, 5  ;;  %v4468_v41 = vrot.slane %v1100_v11, 5  ;;  %v1115_v51 = vshrl.u32 %v952_v32, 16 }
  0x23   : > { %v1062_v61 = vshll.u32 %v4461_v33, 16  ;;  %v4482_v63 = vld [vmem:[%s4289_s28 + $0x40] sm:$0xf]  ;;  %v4664_v33 = vld [vmem:[%s4289_s28 + $0x88] sm:$0xf] }
  0x24   : > { %3850 = vmatmul.mubr.msk.bf16.gmra.mxu0 %vm345_vm1, %v4343_v18  ;;  %v1097_v3 = vor.u32 %v1096_v40, %v1093_v39  ;;  %v1124_v8 = vshll.u32 %v4482_v63, 16  ;;  %v1128_v10 = vshrl.u32 %v4482_v63, 16  ;;  %v4514_v39 = vld [vmem:[%s4289_s28 + $0x44] sm:$0x1]  ;;  %v955_v40 = vld [vmem:[%s4289_s28 + $0x48] sm:$0xf] }
  0x25   : > { %3866 = vmatmul.mubr.msk.bf16.gmra.mxu1 %vm345_vm1, %v4346_v19  ;;  %3853 = vmatprep.mubr.msk.bf16.mxu0 %vm345_vm1, %v4349_v20 }
  0x26   : > { %3869 = vmatprep.mubr.msk.bf16.mxu1 %vm345_vm1, %v4352_v21 }
  0x2c   : > { %3854 = vmatmul.mubr.msk.bf16.gmra.mxu0 %vm345_vm1, %v4363_v22 }
  0x2d   : > { %3870 = vmatmul.mubr.msk.bf16.gmra.mxu1 %vm345_vm1, %v4366_v23  ;;  %3909 = vmatprep.mubr.msk.bf16.mxu0 %vm345_vm1, %v4184_v6 }
  0x2e   : > { %3875 = vmatprep.mubr.msk.bf16.mxu1 %vm345_vm1, %v4198_v24  ;;  %v1034_v24 = vrot.slane %v1032_v53, 4  ;;  %v1118_v53 = vshll.u32 %v952_v32, 16 }
  0x34   : > { %3910 = vmatmul.mubr.msk.bf16.vlgmr.msra.gmra.mxu0 %vm345_vm1, %v4312_v12 }
  0x35   : > { %3876 = vmatmul.mubr.msk.bf16.vlgmr.msra.gmra.mxu1 %vm345_vm1, %v4182_v4  ;;  %3976 = vmatpush3.bf16.msra.mxu0 %v1705_v25  ;;  %v1070_v4 = vshll.u32 %v946_v55, 16  ;;  %v5878_v25 = vrot.slane %v4399_v37, 5  ;;  %v1025_v55 = vor.u32 %v4433_v59, %v4422_v50 }
  0x36   : > { %3942 = vmatpush3.bf16.msra.mxu1 %v1477_v26  ;;  %3879 = vmatprep.mubr.msk.bf16.mxu1 %vm345_vm1, %v4184_v6  ;;  %v1076_v6 = vshll.u32 %v947_v56, 16  ;;  %v1035_v56 = vor.u32 %v1034_v24, %v4435_v60 }
  0x37   : > { %3913 = vmatprep.mubr.msk.bf16.mxu0 %vm345_vm1, %v4188_v14  ;;  %4153 = vmatprep.subr.msk.bf16.mxu1 %vm394_vm0, %v3512_v28  ;;  %v1048_v28 = vrot.slane %v1046_v0, 5  ;;  %v1072_v35 = vrot.slane %v1070_v4, 5  ;;  %v4489_v2 = vrot.slane %v5878_v25, 4  ;;  %v1026_v11 = vrot.slane %v1025_v55, 4 }
  0x38   : > { %4154 = vmatprep.subr.msk.bf16.mxu0 %vm394_vm0, %v3546_v30  ;;  %v4455_v30 = vrot.slane %v1052_v1, 5  ;;  %v4463_v36 = vrot.slane %v1076_v6, 5  ;;  %v1086_v1 = vshll.u32 %v4466_v38, 16  ;;  %v1117_v6 = vrot.slane %v1115_v51, 4 }
  0x39   : > { %v1073_v58 = vor.u32 %v1072_v35, %v1069_v34  ;;  %v1098_v35 = vrot.slane %v1097_v3, 4  ;;  %v1130_v55 = vrot.slane %v1128_v10, 4 }
  0x3a   : > { %v1059_v0 = vor.u32 %v1058_v31, %v4455_v30  ;;  %v1088_v34 = vrot.slane %v1086_v1, 5 }
  0x3b   : > { %v1074_v31 = vrot.slane %v1073_v58, 4 }
  0x3c   : > { %3914 = vmatmul.mubr.msk.bf16.gmra.mxu0 %vm345_vm1, %v4330_v16 }
  0x3d   : > { %3880 = vmatmul.mubr.msk.bf16.gmra.mxu1 %vm345_vm1, %v4312_v12  ;;  %3917 = vmatprep.mubr.msk.bf16.mxu0 %vm345_vm1, %v4343_v18  ;;  %v1104_v12 = vshrl.u32 %v4439_v62, 16 }
  0x3e   : > { %3883 = vmatprep.mubr.msk.bf16.mxu1 %vm345_vm1, %v4188_v14  ;;  %v4447_v14 = vrot.slane %v1001_v57, 4  ;;  %v1049_v57 = vor.u32 %v1048_v28, %v1045_v27  ;;  %v1064_v27 = vrot.slane %v1062_v61, 5  ;;  %v1060_v28 = vrot.slane %v1059_v0, 4 }
  0x3f   : > { %v1106_v43 = vrot.slane %v1104_v12, 4  ;;  %v1036_v12 = vrot.slane %v1035_v56, 4  ;;  %v1017_v56 = vsel %vm4497_vm4, %v4470_v45, %v4420_v49  ;;  %v1079_v49 = vsel %vm4497_vm4, %v1074_v31, %v4463_v36 }
  0x40   : > { %v1050_v24 = vrot.slane %v1049_v57, 4  ;;  %v1065_v61 = vsel %vm4497_vm4, %v1060_v28, %v1064_v27  ;;  %v1134_v45 = vshll.u32 %v4514_v39, 16  ;;  %v1142_v0 = vshll.u32 %v955_v40, 16 }
  0x41   : > { %v1107_v50 = vor.u32 %v1106_v43, %v4468_v41 }
  0x42   : > { %v1055_v57 = vsel %vm4497_vm4, %v1050_v24, %v4455_v30  ;;  %v1139_v30 = vshrl.u32 %v955_v40, 16  ;;  %v1136_v10 = vrot.slane %v1134_v45, 5  ;;  %v1144_v28 = vrot.slane %v1142_v0, 5 }
  0x43   : > { %v1108_v43 = vrot.slane %v1107_v50, 4  ;;  %v4562_v50 = vld [vmem:[%s4289_s28 + $0x50] sm:$0x1] }
  0x44   : > { %3918 = vmatmul.mubr.msk.bf16.gmra.mxu0 %vm345_vm1, %v4349_v20  ;;  %v1141_v27 = vrot.slane %v1139_v30, 4 }
  0x45   : > { %3884 = vmatmul.mubr.msk.bf16.gmra.mxu1 %vm345_vm1, %v4330_v16  ;;  %3921 = vmatprep.mubr.msk.bf16.mxu0 %vm345_vm1, %v4363_v22  ;;  %v1082_v16 = vrot.slane %v1080_v7, 4  ;;  %v1120_v7 = vrot.slane %v1118_v53, 5  ;;  %v4517_v53 = vrot.slane %v1124_v8, 5  ;;  %v4572_v8 = vcombine.low %v1055_v57, %v1065_v61 }
  0x46   : > { %3887 = vmatprep.mubr.msk.bf16.mxu1 %vm345_vm1, %v4343_v18  ;;  %v4475_v18 = vld [vmem:[%s4289_s28 + $0x38] sm:$0x1] }
  0x47   : > { %v1083_v54 = vor.u32 %v1082_v16, %v4463_v36  ;;  %v1110_v59 = vshll.u32 %v4475_v18, 16  ;;  %v1121_v51 = vor.u32 %v1120_v7, %v1117_v6  ;;  %v1131_v1 = vor.u32 %v1130_v55, %v4517_v53  ;;  %v4566_v6 = vld [vmem:[%s4289_s28 + $0x58] sm:$0xf] }
  0x48   : > { %v1176_v55 = vshrl.u32 %v4566_v6, 16 }
  0x49   : > { %v1084_v32 = vrot.slane %v1083_v54, 4  ;;  %v1112_v16 = vrot.slane %v1110_v59, 5  ;;  %v4551_v54 = vrot.slane %v1121_v51, 4  ;;  %v958_v59 = vld [vmem:[%s4289_s28 + $0x54] sm:$0xf]  ;;  %v1172_v51 = vshll.u32 %v4566_v6, 16 }
  0x4a   : > { %v1163_v40 = vshrl.u32 %v958_v59, 16 }
  0x4b   : > { %v1113_v36 = vsel %vm4497_vm4, %v1108_v43, %v1112_v16  ;;  %v4591_v16 = vld [vmem:[%s4289_s28 + $0x70] sm:$0xf]  ;;  %v1166_v43 = vshll.u32 %v958_v59, 16  ;;  %v4614_v59 = vld [vmem:[%s4289_s28 + $0x7c] sm:$0xf] }
  0x4c   : > { %3922 = vmatmul.mubr.msk.bf16.gmra.mxu0 %vm345_vm1, %v4293_v5 }
  0x4d   : > { %3888 = vmatmul.mubr.msk.bf16.gmra.mxu1 %vm345_vm1, %v4349_v20  ;;  %3925 = vmatprep.mubr.msk.bf16.mxu0 %vm345_vm1, %v4304_v9  ;;  %v1007_v20 = vsel %vm4497_vm4, %v4447_v14, %v4403_v42  ;;  %v1031_v42 = vsel %vm4497_vm4, %v1026_v11, %v4435_v60  ;;  %v1041_v14 = vsel %vm4497_vm4, %v1036_v12, %v4472_v46  ;;  %v961_v11 = vld [vmem:[%s4289_s28 + $0x60] sm:$0xf]  ;;  %v4578_v12 = vld [vmem:[%s4289_s28 + $0x64] sm:$0xf] }
  0x4e   : > { %3891 = vmatprep.mubr.msk.bf16.mxu1 %vm345_vm1, %v4363_v22  ;;  %v4520_v22 = vld [vmem:[%s4289_s28 + $0x4c] sm:$0xf]  ;;  %v1089_v60 = vsel %vm4497_vm4, %v1084_v32, %v1088_v34  ;;  %v1103_v46 = vsel %vm4497_vm4, %v1098_v35, %v4468_v41  ;;  %v4559_v41 = vcombine.low %v1007_v20, %v1017_v56  ;;  %v4570_v7 = vcombine.low %v1031_v42, %v1041_v14 }
  0x4f   : > { %v1148_v58 = vshll.u32 %v4520_v22, 16  ;;  %v1152_v3 = vshrl.u32 %v4520_v22, 16  ;;  %v4580_v24 = vcombine.low %v1103_v46, %v1113_v36  ;;  %v964_v32 = vld [vmem:[%s4289_s28 + $0x6c] sm:$0xf]  ;;  %v1132_v34 = vrot.slane %v1131_v1, 4 }
  0x50   : > { %v1158_v35 = vshll.u32 %v4562_v50, 16  ;;  %v1187_v56 = vshrl.u32 %v961_v11, 16  ;;  %v1190_v42 = vshll.u32 %v961_v11, 16  ;;  %v1196_v14 = vshll.u32 %v4578_v12, 16 }
  0x51   : > { %v4582_v31 = vrot.slane %v1148_v58, 5  ;;  %v1154_v20 = vrot.slane %v1152_v3, 4  ;;  %v1200_v57 = vshrl.u32 %v4578_v12, 16  ;;  %v1214_v61 = vshll.u32 %v964_v32, 16  ;;  %v967_v58 = vld [vmem:[%s4289_s28 + $0x78] sm:$0xf] }
  0x52   : > { %v1137_v45 = vsel %vm4497_vm4, %v1132_v34, %v1136_v10  ;;  %v1145_v46 = vor.u32 %v1144_v28, %v1141_v27  ;;  %v4604_v0 = vrot.slane %v1158_v35, 5  ;;  %v1165_v36 = vrot.slane %v1163_v40, 4  ;;  %v4619_v10 = vld [vmem:[%s4289_s28 + $0x5c] sm:$0x1] }
  0x53   : > { %v1155_v30 = vor.u32 %v1154_v20, %v4582_v31  ;;  %v4611_v1 = vrot.slane %v1172_v51, 5  ;;  %v1178_v3 = vrot.slane %v1176_v55, 4  ;;  %v1189_v11 = vrot.slane %v1187_v56, 4 }
  0x54   : > { %3926 = vmatmul.mubr.msk.bf16.gmra.mxu0 %vm345_vm1, %v4317_v13  ;;  %v1192_v27 = vrot.slane %v1190_v42, 5  ;;  %v4621_v28 = vrot.slane %v1196_v14, 5  ;;  %v1216_v20 = vrot.slane %v1214_v61, 5  ;;  %v1235_v51 = vshrl.u32 %v967_v58, 16 }
  0x55   : > { %3892 = vmatmul.mubr.msk.bf16.gmra.mxu1 %vm345_vm1, %v4293_v5  ;;  %3929 = vmatprep.mubr.msk.bf16.mxu0 %vm345_vm1, %v4326_v15  ;;  %v4574_v5 = vcombine.low %v1079_v49, %v1089_v60  ;;  %v1220_v49 = vshll.u32 %v4591_v16, 16  ;;  %v1224_v60 = vshrl.u32 %v4591_v16, 16  ;;  %v1238_v55 = vshll.u32 %v967_v58, 16  ;;  %v970_v58 = vld [vmem:[%s4289_s28 + $0x84] sm:$0xf] }
  0x56   : > { %3895 = vmatprep.mubr.msk.bf16.mxu1 %vm345_vm1, %v4304_v9  ;;  %v1127_v9 = vsel %vm4497_vm4, %v4551_v54, %v4517_v53  ;;  %v1211_v53 = vshrl.u32 %v964_v32, 16  ;;  %v1168_v54 = vrot.slane %v1166_v43, 5  ;;  %v4624_v32 = vld [vmem:[%s4289_s28 + $0x68] sm:$0x1]  ;;  %v4629_v43 = vld [vmem:[%s4289_s28 + $0x74] sm:$0x1]  ;;  %v1179_v61 = vor.u32 %v1178_v3, %v4611_v1 }
  0x57   : > { %v4626_v35 = vrot.slane %v1220_v49, 5  ;;  %v1226_v40 = vrot.slane %v1224_v60, 4  ;;  %v1248_v56 = vshrl.u32 %v4614_v59, 16  ;;  %v4633_v42 = vcombine.low %v1127_v9, %v1137_v45 }
  0x58   : > { %v1213_v34 = vrot.slane %v1211_v53, 4  ;;  %v4635_v14 = vrot.slane %v1145_v46, 4  ;;  %v1169_v53 = vor.u32 %v1168_v54, %v1165_v36  ;;  %v1182_v49 = vshll.u32 %v4619_v10, 16 }
  0x59   : > { %v1193_v60 = vor.u32 %v1192_v27, %v1189_v11  ;;  %v1206_v25 = vshll.u32 %v4624_v32, 16  ;;  %v1227_v9 = vor.u32 %v1226_v40, %v4626_v35  ;;  %v1230_v45 = vshll.u32 %v4629_v43, 16  ;;  %v4659_v27 = vld [vmem:[%s4289_s28 + $0x80] sm:$0x1] }
  0x5a   : > { %v1217_v38 = vor.u32 %v1216_v20, %v1213_v34  ;;  %v1237_v46 = vrot.slane %v1235_v51, 4  ;;  %v1250_v54 = vrot.slane %v1248_v56, 4  ;;  %v1151_v3 = vsel %vm4497_vm4, %v4635_v14, %v4582_v31  ;;  %v4199_v31 = vld [vmem:[%s4289_s28 + $0xcc] sm:$0xff]  }
  0x5b   : > { %v1170_v11 = vrot.slane %v1169_v53, 4  ;;  %v1262_v34 = vshll.u32 %v970_v58, 16  ;;  %v1180_v20 = vrot.slane %v1179_v61, 4  ;;  %v1194_v40 = vrot.slane %v1193_v60, 4 }
  0x5c   : > { %3930 = vmatmul.mubr.msk.bf16.gmra.mxu0 %vm345_vm1, %v4333_v17  ;;  %v1208_v51 = vrot.slane %v1206_v25, 5  ;;  %v1232_v56 = vrot.slane %v1230_v45, 5  ;;  %v1254_v61 = vshll.u32 %v4659_v27, 16 }
  0x5d   : > { %3896 = vmatmul.mubr.msk.bf16.gmra.mxu1 %vm345_vm1, %v4317_v13  ;;  %3933 = vmatprep.mubr.msk.bf16.mxu0 %vm345_vm1, %v4346_v19  ;;  %v1202_v13 = vrot.slane %v1200_v57, 4  ;;  %v4637_v57 = vrot.slane %v1155_v30, 4  ;;  %v1240_v30 = vrot.slane %v1238_v55, 5  ;;  %v1218_v55 = vrot.slane %v1217_v38, 4 }
  0x5e   : > { %3899 = vmatprep.mubr.msk.bf16.mxu1 %vm345_vm1, %v4326_v15  ;;  %v1244_v15 = vshll.u32 %v4614_v59, 16  ;;  %v1175_v25 = vsel %vm4497_vm4, %v1170_v11, %v4611_v1  ;;  %v1264_v38 = vrot.slane %v1262_v34, 5 }
  0x5f   : > { %v1203_v26 = vor.u32 %v1202_v13, %v4621_v28  ;;  %v1259_v13 = vshrl.u32 %v970_v58, 16  ;;  %v1161_v14 = vsel %vm4497_vm4, %v4637_v57, %v4604_v0  ;;  %v1241_v53 = vor.u32 %v1240_v30, %v1237_v46  ;;  %v973_v57 = vld [vmem:[%s4289_s28 + $0x90] sm:$0xf] }
  0x60   : > { %v4648_v36 = vrot.slane %v1244_v15, 5  ;;  %v1228_v15 = vrot.slane %v1227_v9, 4  ;;  %v1268_v58 = vshll.u32 %v4664_v33, 16  ;;  %v1272_v0 = vshrl.u32 %v4664_v33, 16 }
  0x61   : > { %v1199_v9 = vsel %vm4497_vm4, %v1194_v40, %v4621_v28  ;;  %v1223_v45 = vsel %vm4497_vm4, %v1218_v55, %v4626_v35  ;;  %v4701_v28 = vrot.slane %v1254_v61, 5  ;;  %v4711_v35 = vld [vmem:[%s4289_s28 + $0x8c] sm:$0x1]  ;;  %v1286_v40 = vshll.u32 %v973_v57, 16 }
  0x62   : > { %v1233_v46 = vsel %vm4497_vm4, %v1228_v15, %v1232_v56  ;;  %v4722_v55 = vrot.slane %v1268_v58, 5  ;;  %v4724_v15 = vrot.slane %v1272_v0, 4  ;;  %v5890_v56 = vrot.slane %v4399_v37, 5  ;;  %v4761_v0 = vld [vmem:[%s4289_s28 + $0xa0] sm:$0xf] }
  0x63   : > { %v1278_v61 = vshll.u32 %v4711_v35, 16  ;;  %v4758_v58 = vrot.slane %v1286_v40, 5 }
  0x64   : > { %3934 = vmatmul.mubr.msk.bf16.gmra.mxu0 %vm345_vm1, %v4352_v21 }
  0x65   : > { %3900 = vmatmul.mubr.msk.bf16.gmra.mxu1 %vm345_vm1, %v4333_v17  ;;  %3937 = vmatprep.mubr.msk.bf16.mxu0 %vm345_vm1, %v4366_v23  ;;  %v1184_v17 = vrot.slane %v1182_v49, 5  ;;  %v1204_v23 = vrot.slane %v1203_v26, 4  ;;  %v1261_v26 = vrot.slane %v1259_v13, 4  ;;  %v2129_v49 = vld [vmem:[%s4289_s28 + $0xc] sm:$0xe] }
  0x66   : > { %3903 = vmatprep.mubr.msk.bf16.mxu1 %vm345_vm1, %v4346_v19  ;;  %v1251_v19 = vor.u32 %v1250_v54, %v4648_v36  ;;  %v4697_v54 = vrot.slane %v1241_v53, 4  ;;  %v4704_v13 = vld [vmem:[%s4289_s28 + $0x94] sm:$0xf]  ;;  %v3531_v34 = vrot.slane %v2129_v49, 9 }
  0x67   : > { %v1185_v60 = vsel %vm4497_vm4, %v1180_v20, %v1184_v17  ;;  %v1209_v1 = vsel %vm4497_vm4, %v1204_v23, %v1208_v51  ;;  %v1265_v20 = vor.u32 %v1264_v38, %v1261_v26  ;;  %v1283_v17 = vshrl.u32 %v973_v57, 16  ;;  %v2133_v26 = vld [vmem:[%s4289_s28 + $0x3c] sm:$0xe]  ;;  %v2135_v57 = vld [vmem:[%s4289_s28 + $0x54] sm:$0xe] }
  0x68   : > { %v4699_v11 = vrot.slane %v1251_v19, 4  ;;  %v5889_v51 = vrot.slane %v4406_v44, 5  ;;  %v2207_v44 = vsel %vm4692_vm7, %v3531_v34, %v5890_v56  ;;  %v1296_v53 = vshrl.u32 %v4704_v13, 16 }
  0x69   : > { %v1247_v37 = vsel %vm4497_vm4, %v4697_v54, %v4648_v36  ;;  %v4754_v49 = vrot.slane %v1265_v20, 4  ;;  %v3535_v40 = vrot.slane %v2133_v26, 9  ;;  %v2241_v26 = vrot.slane %v4520_v22, 5 }
  0x6a   : > { %v2210_v23 = vsel %vm4692_vm7, %v4489_v2, %v5889_v51  ;;  %v1292_v2 = vshll.u32 %v4704_v13, 16  ;;  %v1257_v38 = vsel %vm4497_vm4, %v4699_v11, %v4701_v28  ;;  %v4770_v51 = vrot.slane %v1296_v53, 4 }
  0x6b   : > { %v4734_v19 = vcombine.low %v2207_v44, %v2210_v23  ;;  %v2234_v44 = vrot.slane %v4482_v63, 5  ;;  %v2237_v53 = vrot.slane %v4514_v39, 5  ;;  %v2136_v39 = vld [vmem:[%s4289_s28 + $0x60] sm:$0xe]  ;;  %v2137_v63 = vld [vmem:[%s4289_s28 + $0x6c] sm:$0xe] }
  0x6c   : > { %3938 = vmatmul.mubr.msk.bf16.gmra.mxu0 %vm345_vm1, %v4199_v31  ;;  %v4730_v31 = vcombine.low %v1175_v25, %v1185_v60  ;;  %v4747_v25 = vld [vmem:[%s4289_s28 + $0x9c] sm:$0xf]  ;;  %v4756_v60 = vrot.slane %v1283_v17, 4  ;;  %v4768_v34 = vrot.slane %v1292_v2, 5  ;;  %v4776_v17 = vld [vmem:[%s5874_s1 + $0xa] sm:$0x3] }
  0x6d   : > { %3904 = vmatmul.mubr.msk.bf16.gmra.mxu1 %vm345_vm1, %v4352_v21  ;;  %3977 = vmatprep.mubr.msk.bf16.mxu0 %vm345_vm1, %v4570_v7  ;;  %v4720_v21 = vcombine.low %v1151_v3, %v1161_v14  ;;  %v4737_v3 = vcombine.low %v1199_v9, %v1209_v1  ;;  %v4739_v14 = vcombine.low %v1223_v45, %v1233_v46  ;;  %v2227_v1 = vrot.slane %v4439_v62, 5  ;;  %v2134_v46 = vld [vmem:[%s4289_s28 + $0x48] sm:$0xe] }
  0x6e   : > { %3943 = vmatprep.mubr.msk.bf16.mxu1 %vm345_vm1, %v4559_v41  ;;  %v2132_v41 = vld [vmem:[%s4289_s28 + $0x30] sm:$0xe]  ;;  %v2230_v45 = vrot.slane %v4475_v18, 5  ;;  %v1307_v20 = vshrl.u32 %v4747_v25, 16  ;;  %v1310_v62 = vshll.u32 %v4747_v25, 16  ;;  %v1271_v25 = vsel %vm4497_vm4, %v4754_v49, %v4722_v55 }
  0x6f   : > { %v3534_v9 = vrot.slane %v2132_v41, 9  ;;  %v4784_v18 = vld [vmem:[%s5874_s1 + $0x10] sm:$0x3]  ;;  %v2229_v56 = vrot.slane %v2227_v1, 4  ;;  %v3536_v41 = vrot.slane %v2134_v46, 9 }
  0x70   : > { %v1309_v11 = vrot.slane %v1307_v20, 4  ;;  %v1312_v36 = vrot.slane %v1310_v62, 5  ;;  %v5895_v62 = vor.u32 %v4724_v15, %v4722_v55 }
  0x71   : > { %v2228_v23 = vsel %vm4692_vm7, %v3534_v9, %v2227_v1  ;;  %v2236_v9 = vrot.slane %v2234_v44, 4  ;;  %v2242_v22 = vsel %vm4692_vm7, %v3536_v41, %v2241_v26  ;;  %v2243_v1 = vrot.slane %v2241_v26, 4 }
  0x72   : > { %v3538_v26 = vrot.slane %v2136_v39, 9  ;;  %v2262_v39 = vrot.slane %v4591_v16, 5 }
  0x73   : > { %v2238_v46 = vsel %vm4692_vm7, %v2236_v9, %v2237_v53  ;;  %v3539_v9 = vrot.slane %v2137_v63, 9 }
  0x74   : > { %3978 = vmatmul.mubr.msk.bf16.vlgmr.msra.gmra.mxu0 %vm345_vm1, %v4572_v8 }
  0x75   : > { %3944 = vmatmul.mubr.msk.bf16.vlgmr.msra.gmra.mxu1 %vm345_vm1, %v4570_v7  ;;  %4044 = vmatpush3.bf16.msra.mxu0 %v4417_v48  ;;  %v2231_v7 = vsel %vm4692_vm7, %v2229_v56, %v2230_v45  ;;  %v2235_v48 = vsel %vm4692_vm7, %v3535_v40, %v2234_v44  ;;  %v2244_v45 = vrot.slane %v4562_v50, 5  ;;  %v3537_v40 = vrot.slane %v2135_v57, 9 }
  0x76   : > { %4010 = vmatpush3.bf16.msra.mxu1 %v4414_v47  ;;  %3947 = vmatprep.mubr.msk.bf16.mxu1 %vm345_vm1, %v4572_v8  ;;  %v4809_v47 = vcombine.low %v2228_v23, %v2231_v7  ;;  %v2248_v56 = vrot.slane %v4566_v6, 5  ;;  %v2251_v44 = vrot.slane %v4619_v10, 5  ;;  %v4821_v23 = vcombine.low %v2235_v48, %v2238_v46  ;;  %v2138_v7 = vld [vmem:[%s4289_s28 + $0x78] sm:$0xe] }
  0x77   : > { %3981 = vmatprep.mubr.msk.bf16.mxu0 %vm345_vm1, %v4574_v5  ;;  %4155 = vmatprep.subr.msk.bf16.mxu1 %vm394_vm0, %v4776_v17  ;;  %v2245_v41 = vsel %vm4692_vm7, %v2243_v1, %v2244_v45  ;;  %v2255_v50 = vrot.slane %v4578_v12, 5  ;;  %v2258_v6 = vrot.slane %v4624_v32, 5  ;;  %v3540_v1 = vrot.slane %v2138_v7, 9  ;;  %v2139_v32 = vld [vmem:[%s4289_s28 + $0x84] sm:$0xe] }
  0x78   : > { %4156 = vmatprep.subr.msk.bf16.mxu0 %vm394_vm0, %v4784_v18  ;;  %v4827_v2 = vcombine.low %v2242_v22, %v2245_v41  ;;  %v2249_v57 = vsel %vm4692_vm7, %v3537_v40, %v2248_v56  ;;  %v2250_v53 = vrot.slane %v2248_v56, 4  ;;  %v2265_v22 = vrot.slane %v4629_v43, 5  ;;  %v2140_v40 = vld [vmem:[%s4289_s28 + $0x90] sm:$0xe] }
  0x79   : > { %v2256_v10 = vsel %vm4692_vm7, %v3538_v26, %v2255_v50  ;;  %v2257_v48 = vrot.slane %v2255_v50, 4  ;;  %v2269_v45 = vrot.slane %v4614_v59, 5  ;;  %v2263_v43 = vsel %vm4692_vm7, %v3539_v9, %v2262_v39 }
  0x7a   : > { %v2252_v12 = vsel %vm4692_vm7, %v2250_v53, %v2251_v44  ;;  %v2264_v46 = vrot.slane %v2262_v39, 4  ;;  %v2272_v41 = vrot.slane %v4659_v27, 5  ;;  %v3541_v50 = vrot.slane %v2139_v32, 9  ;;  %v2141_v53 = vld [vmem:[%s4289_s28 + $0x9c] sm:$0xe] }
  0x7b   : > { %v4846_v16 = vcombine.low %v2249_v57, %v2252_v12  ;;  %v2259_v63 = vsel %vm4692_vm7, %v2257_v48, %v2258_v6  ;;  %v2270_v56 = vsel %vm4692_vm7, %v3540_v1, %v2269_v45  ;;  %v2271_v44 = vrot.slane %v2269_v45, 4  ;;  %v4866_v6 = vld [vmem:[%s4289_s28 + $0x98] sm:$0x1]  ;;  %v2142_v39 = vld [vmem:[%s4289_s28 + $0xa8] sm:$0xe] }
  0x7c   : > { %3982 = vmatmul.mubr.msk.bf16.gmra.mxu0 %vm345_vm1, %v4580_v24  ;;  %v4855_v59 = vcombine.low %v2256_v10, %v2259_v63  ;;  %v2266_v26 = vsel %vm4692_vm7, %v2264_v46, %v2265_v22  ;;  %v2276_v7 = vrot.slane %v4664_v33, 5  ;;  %v2279_v57 = vrot.slane %v4711_v35, 5  ;;  %v4875_v12 = vld [vmem:[%s4289_s28 + $0xa4] sm:$0x1]  ;;  %v4883_v32 = vld [vmem:[%s4289_s28 + $0xac] sm:$0xf] }
  0x7d   : > { %3948 = vmatmul.mubr.msk.bf16.gmra.mxu1 %vm345_vm1, %v4574_v5  ;;  %3985 = vmatprep.mubr.msk.bf16.mxu0 %vm345_vm1, %v4633_v42  ;;  %v4868_v10 = vcombine.low %v2263_v43, %v2266_v26  ;;  %v2273_v48 = vsel %vm4692_vm7, %v2271_v44, %v2272_v41  ;;  %v3542_v9 = vrot.slane %v2140_v40, 9  ;;  %v2283_v27 = vrot.slane %v4704_v13, 5  ;;  %v4895_v26 = vld [vmem:[%s4289_s28 + $0xb0] sm:$0x1] }
  0x7e   : > { %3951 = vmatprep.mubr.msk.bf16.mxu1 %vm345_vm1, %v4580_v24  ;;  %v4877_v22 = vcombine.low %v2270_v56, %v2273_v48  ;;  %v2277_v33 = vsel %vm4692_vm7, %v3541_v50, %v2276_v7  ;;  %v2278_v1 = vrot.slane %v2276_v7, 4  ;;  %v2286_v45 = vrot.slane %v4866_v6, 5 }
  0x7f   : > { %v2284_v63 = vsel %vm4692_vm7, %v3542_v9, %v2283_v27  ;;  %v2285_v43 = vrot.slane %v2283_v27, 4  ;;  %v3543_v46 = vrot.slane %v2141_v53, 9  ;;  %v2290_v13 = vrot.slane %v4761_v0, 5 }
  0x80   : > { %v2280_v40 = vsel %vm4692_vm7, %v2278_v1, %v2279_v57  ;;  %v2293_v56 = vrot.slane %v4875_v12, 5  ;;  %v3544_v44 = vrot.slane %v2142_v39, 9  ;;  %v2297_v41 = vrot.slane %v4883_v32, 5 }
  0x81   : > { %v4897_v50 = vcombine.low %v2277_v33, %v2280_v40  ;;  %v2287_v7 = vsel %vm4692_vm7, %v2285_v43, %v2286_v45  ;;  %v2291_v53 = vsel %vm4692_vm7, %v3543_v46, %v2290_v13  ;;  %v2292_v57 = vrot.slane %v2290_v13, 4  ;;  %v2143_v43 = vld [vmem:[%s4289_s28 + $0xb4] sm:$0xe]  ;;  %v983_v13 = vld [vmem:[%s4289_s28 + $0xb8] sm:$0xf] }
  0x82   : > { %v4907_v48 = vcombine.low %v2284_v63, %v2287_v7  ;;  %v2298_v9 = vsel %vm4692_vm7, %v3544_v44, %v2297_v41  ;;  %v2299_v27 = vrot.slane %v2297_v41, 4  ;;  %v2300_v39 = vrot.slane %v4895_v26, 5  ;;  %v4962_v40 = vld [vmem:[%s4289_s28 + $0xbc] sm:$0x1]  ;;  %v982_v41 = vld [vmem:[%s4289_s28 + $0xb4] sm:$0xf] }
  0x83   : > { %v4924_v33 = vcombine.low %v1247_v37, %v1257_v38  ;;  %v1280_v1 = vrot.slane %v1278_v61, 5  ;;  %v1289_v45 = vor.u32 %v4758_v58, %v4756_v60  ;;  %v2294_v63 = vsel %vm4692_vm7, %v2292_v57, %v2293_v56  ;;  %v979_v58 = vld [vmem:[%s4289_s28 + $0xa8] sm:$0xf] }
  0x84   : > { %3986 = vmatmul.mubr.msk.bf16.gmra.mxu0 %vm345_vm1, %v4720_v21  ;;  %v4937_v54 = vcombine.low %v2291_v53, %v2294_v63  ;;  %v2301_v28 = vsel %vm4692_vm7, %v2299_v27, %v2300_v39  ;;  %v1302_v35 = vshll.u32 %v4866_v6, 16  ;;  %v5892_v37 = vshll.u32 %v4761_v0, 16 }
  0x85   : > { %3952 = vmatmul.mubr.msk.bf16.gmra.mxu1 %vm345_vm1, %v4633_v42  ;;  %3989 = vmatprep.mubr.msk.bf16.mxu0 %vm345_vm1, %v4730_v31  ;;  %v5893_v38 = vshrl.u32 %v4761_v0, 16  ;;  %v4949_v20 = vcombine.low %v2298_v9, %v2301_v28  ;;  %v1276_v46 = vrot.slane %v5895_v62, 4  ;;  %v1299_v6 = vor.u32 %v4770_v51, %v4768_v34 }
  0x86   : > { %3955 = vmatprep.mubr.msk.bf16.mxu1 %vm345_vm1, %v4720_v21  ;;  %5891 = vst [vmem:[#allocation4_spill] sm:$0xff] %v4937_v54  ;;  %v4944_v61 = vrot.slane %v5892_v37, 5  ;;  %v3545_v0 = vrot.slane %v2143_v43, 9  ;;  %v1290_v56 = vrot.slane %v1289_v45, 4  ;;  %v1326_v44 = vshll.u32 %v4875_v12, 16 }
  0x87   : > { %v1322_v60 = vrot.slane %v5893_v38, 4  ;;  %5894 = vst [vmem:[#allocation5_spill] sm:$0xff] %v4949_v20  ;;  %v2304_v7 = vrot.slane %v983_v13, 5  ;;  %v2307_v53 = vrot.slane %v4962_v40, 5  ;;  %v1313_v57 = vor.u32 %v1312_v36, %v1309_v11  ;;  %v4990_v54 = vld [vmem:[%s4289_s28 + $0xc4] sm:$0xf] }
  0x88   : > { %v1331_v49 = vshrl.u32 %v979_v58, 16  ;;  %v1334_v9 = vshll.u32 %v979_v58, 16  ;;  %v1340_v55 = vshll.u32 %v4883_v32, 16  ;;  %v1344_v51 = vshrl.u32 %v4883_v32, 16 }
  0x89   : > { %v1323_v15 = vor.u32 %v1322_v60, %v4944_v61  ;;  %v2305_v27 = vsel %vm4692_vm7, %v3545_v0, %v2304_v7  ;;  %v2306_v12 = vrot.slane %v2304_v7, 4  ;;  %v1281_v39 = vsel %vm4497_vm4, %v1276_v46, %v1280_v1  ;;  %v985_v0 = vld [vmem:[%s4289_s28 + $0xc0] sm:$0xf] }
  0x8a   : > { %v1300_v45 = vrot.slane %v1299_v6, 4  ;;  %v1304_v63 = vrot.slane %v1302_v35, 5  ;;  %v1355_v43 = vshrl.u32 %v982_v41, 16  ;;  %v1358_v32 = vshll.u32 %v982_v41, 16 }
  0x8b   : > { %v1364_v11 = vshll.u32 %v983_v13, 16  ;;  %v1368_v36 = vshrl.u32 %v983_v13, 16  ;;  %v2308_v28 = vsel %vm4692_vm7, %v2306_v12, %v2307_v53  ;;  %v1314_v37 = vrot.slane %v1313_v57, 4 }
  0x8c   : > { %3990 = vmatmul.mubr.msk.bf16.gmra.mxu0 %vm345_vm1, %v4737_v3  ;;  %v1328_v38 = vrot.slane %v1326_v44, 5  ;;  %v1333_v60 = vrot.slane %v1331_v49, 4  ;;  %v4984_v58 = vcombine.low %v2305_v27, %v2308_v28  ;;  %v1324_v1 = vrot.slane %v1323_v15, 4 }
  0x8d   : > { %3956 = vmatmul.mubr.msk.bf16.gmra.mxu1 %vm345_vm1, %v4730_v31  ;;  %3993 = vmatprep.mubr.msk.bf16.mxu0 %vm345_vm1, %v4739_v14  ;;  %v1336_v62 = vrot.slane %v1334_v9, 5  ;;  %v1342_v35 = vrot.slane %v1340_v55, 5  ;;  %v1346_v46 = vrot.slane %v1344_v51, 4  ;;  %v4986_v6 = vcombine.low %v1271_v25, %v1281_v39 }
  0x8e   : > { %3959 = vmatprep.mubr.msk.bf16.mxu1 %vm345_vm1, %v4737_v3  ;;  %v1357_v7 = vrot.slane %v1355_v43, 4  ;;  %v1360_v41 = vrot.slane %v1358_v32, 5  ;;  %v1366_v20 = vrot.slane %v1364_v11, 5  ;;  %v1370_v13 = vrot.slane %v1368_v36, 4 }
  0x8f   : > { %v1295_v44 = vsel %vm4497_vm4, %v1290_v56, %v4768_v34  ;;  %v1305_v53 = vsel %vm4497_vm4, %v1300_v45, %v1304_v63  ;;  %v1350_v57 = vshll.u32 %v4895_v26, 16  ;;  %v1319_v25 = vsel %vm4497_vm4, %v1314_v37, %v4944_v61 }
  0x90   : > { %v1329_v49 = vsel %vm4497_vm4, %v1324_v1, %v1328_v38  ;;  %v1337_v9 = vor.u32 %v1336_v62, %v1333_v60  ;;  %v1347_v55 = vor.u32 %v1346_v46, %v1342_v35  ;;  %v1673_v34 = vshrl.u32 %v985_v0, 16  ;;  %v987_v1 = vld [vmem:[%s4289_s28 + $0xc8] sm:$0x1] }
  0x91   : > { %v1676_v26 = vshll.u32 %v985_v0, 16  ;;  %v1682_v56 = vshll.u32 %v4990_v54, 16  ;;  %v1686_v15 = vshrl.u32 %v4990_v54, 16  ;;  %v1361_v61 = vor.u32 %v1360_v41, %v1357_v7 }
  0x92   : > { %v1371_v51 = vor.u32 %v1370_v13, %v1366_v20  ;;  %v1374_v27 = vshll.u32 %v4962_v40, 16  ;;  %v5014_v12 = vcombine.low %v1295_v44, %v1305_v53  ;;  %v5016_v39 = vcombine.low %v1319_v25, %v1329_v49  ;;  %v2128_v44 = vld [vmem:[%s4289_s28] sm:$0xe] }
  0x93   : > { %v1338_v45 = vrot.slane %v1337_v9, 4  ;;  %v1348_v63 = vrot.slane %v1347_v55, 4  ;;  %v1352_v43 = vrot.slane %v1350_v57, 5  ;;  %v1675_v32 = vrot.slane %v1673_v34, 4 }
  0x94   : > { %3994 = vmatmul.mubr.msk.bf16.gmra.mxu0 %vm345_vm1, %v4924_v33  ;;  %v1678_v11 = vrot.slane %v1676_v26, 5  ;;  %v1684_v36 = vrot.slane %v1682_v56, 5  ;;  %v1688_v28 = vrot.slane %v1686_v15, 4  ;;  %v1362_v37 = vrot.slane %v1361_v61, 4  ;;  %v4200_v26 = vld [vmem:[%s4289_s28 + $0x8] sm:$0x1] }
  0x95   : > { %3960 = vmatmul.mubr.msk.bf16.gmra.mxu1 %vm345_vm1, %v4739_v14  ;;  %3997 = vmatprep.mubr.msk.bf16.mxu0 %vm345_vm1, %v4986_v6  ;;  %v1372_v38 = vrot.slane %v1371_v51, 4  ;;  %v1376_v60 = vrot.slane %v1374_v27, 5  ;;  %v1343_v40 = vsel %vm4497_vm4, %v1338_v45, %v1342_v35  ;;  %v1353_v62 = vsel %vm4497_vm4, %v1348_v63, %v1352_v43  ;;  %v5053_v15 = vld [vmem:[%s4289_s28 + $0xd0] sm:$0xf]  ;;  %v5056_v61 = vld [vmem:[%s4289_s28 + $0xd4] sm:$0x1] }
  0x96   : > { %3963 = vmatprep.mubr.msk.bf16.mxu1 %vm345_vm1, %v4924_v33  ;;  %v1679_v46 = vor.u32 %v1678_v11, %v1675_v32  ;;  %v1689_v0 = vor.u32 %v1688_v28, %v1684_v36  ;;  %v1692_v7 = vshll.u32 %v987_v1, 16  ;;  %v1367_v41 = vsel %vm4497_vm4, %v1362_v37, %v1366_v20  ;;  %v2144_v43 = vld [vmem:[%s4289_s28 + $0xc0] sm:$0xe]  ;;  %v2145_v37 = vld [vmem:[%s4289_s28 + $0xcc] sm:$0xe] }
  0x97   : > { %v1377_v35 = vsel %vm4497_vm4, %v1372_v38, %v1376_v60  ;;  %v2199_v13 = vrot.slane %v4385_v29, 5  ;;  %v5037_v53 = vcombine.low %v1343_v40, %v1353_v62  ;;  %v3530_v55 = vrot.slane %v2128_v44, 9 }
  0x98   : > { %v5039_v57 = vcombine.low %v1367_v41, %v1377_v35  ;;  %v1680_v25 = vrot.slane %v1679_v46, 4  ;;  %v1690_v49 = vrot.slane %v1689_v0, 4  ;;  %v1694_v9 = vrot.slane %v1692_v7, 5  ;;  %v2130_v46 = vld [vmem:[%s4289_s28 + $0x18] sm:$0xe] }
  0x99   : > { %v2201_v34 = vrot.slane %v2199_v13, 4  ;;  %v2202_v20 = vrot.slane %v4200_v26, 5  ;;  %v2608_v51 = vrot.slane %v4990_v54, 5  ;;  %v2200_v27 = vsel %vm4692_vm7, %v3530_v55, %v2199_v13 }
  0x9a   : > { %v1685_v29 = vsel %vm4497_vm4, %v1680_v25, %v1684_v36  ;;  %v1695_v56 = vsel %vm4497_vm4, %v1690_v49, %v1694_v9  ;;  %v2825_v63 = vrot.slane %v5056_v61, 5  ;;  %v2822_v32 = vrot.slane %v5053_v15, 5  ;;  %v5896_v25 = vld [vmem:[#allocation2_spill] sm:$0xff]  ;;  %v4201_v9 = vld [vmem:[%s4289_s28 + $0x28] sm:$0xf] }
  0x9b   : > { %v2203_v45 = vsel %vm4692_vm7, %v2201_v34, %v2202_v20  ;;  %v3579_v11 = vrot.slane %v2144_v43, 9  ;;  %v2610_v36 = vrot.slane %v2608_v51, 4  ;;  %v2611_v28 = vrot.slane %v987_v1, 5  ;;  %v2131_v34 = vld [vmem:[%s4289_s28 + $0x24] sm:$0xe] }
  0x9c   : > { %3998 = vmatmul.mubr.msk.bf16.gmra.mxu0 %vm345_vm1, %v5014_v12  ;;  %v5069_v54 = vcombine.low %v1685_v29, %v1695_v56  ;;  %v2213_v38 = vrot.slane %v4426_v52, 5  ;;  %v3598_v60 = vrot.slane %v2145_v37, 9  ;;  %v2824_v40 = vrot.slane %v2822_v32, 4 }
  0x9d   : > { %3964 = vmatmul.mubr.msk.bf16.gmra.mxu1 %vm345_vm1, %v4986_v6  ;;  %4001 = vmatprep.mubr.msk.bf16.mxu0 %vm345_vm1, %v5016_v39  ;;  %v3547_v62 = vcombine.low %v2200_v27, %v2203_v45  ;;  %v2609_v0 = vsel %vm4692_vm7, %v3579_v11, %v2608_v51  ;;  %v2612_v7 = vsel %vm4692_vm7, %v2610_v36, %v2611_v28  ;;  %v3532_v13 = vrot.slane %v2130_v46, 9  ;;  %v5897_v51 = vld [vmem:[#allocation3_spill] sm:$0xff] }
  0x9e   : > { %3967 = vmatprep.mubr.msk.bf16.mxu1 %vm345_vm1, %v5014_v12  ;;  %v5077_v41 = vcombine.low %v2609_v0, %v2612_v7  ;;  %v5081_v1 = vsel %vm4692_vm7, %v3598_v60, %v2822_v32  ;;  %v5085_v52 = vsel %vm4692_vm7, %v2824_v40, %v2825_v63  ;;  %v2215_v44 = vrot.slane %v2213_v38, 4 }
  0x9f   : > { %v3600_v35 = vcombine.low %v5081_v1, %v5085_v52  ;;  %v2216_v49 = vrot.slane %v5896_v25, 5  ;;  %v2220_v55 = vrot.slane %v4201_v9, 5  ;;  %v2214_v26 = vsel %vm4692_vm7, %v3532_v13, %v2213_v38 }
  0xa0   : > { %v3533_v29 = vrot.slane %v2131_v34, 9  ;;  %v2223_v27 = vrot.slane %v5897_v51, 5  ;;  %v2836_v45 = vsel %vm394_vm0, %v4784_v18, 0  ;;  %v2622_v63 = vsel %vm394_vm0, %v4776_v17, 0 }
  0xa1   : > { %v2217_v20 = vsel %vm4692_vm7, %v2215_v44, %v2216_v49  ;;  %v2222_v56 = vrot.slane %v2220_v55, 4  ;;  %v1920_v0 = vshll.u32 %v5056_v61, 16  ;;  %v5899_v61 = vld [vmem:[#allocation5_spill] sm:$0xff] }
  0xa2   : > { %v5108_v43 = vcombine.low %v2214_v26, %v2217_v20 }
  0xa3   : > { %v2224_v32 = vsel %vm4692_vm7, %v2222_v56, %v2223_v27  ;;  %v1922_v9 = vrot.slane %v1920_v0, 5 }
  0xa4   : > { %4002 = vmatmul.mubr.msk.bf16.gmra.mxu0 %vm345_vm1, %v5037_v53 }
  0xa5   : > { %3968 = vmatmul.mubr.msk.bf16.gmra.mxu1 %vm345_vm1, %v5016_v39  ;;  %4005 = vmatprep.mubr.msk.bf16.mxu0 %vm345_vm1, %v5039_v57 }
  0xa6   : > { %3971 = vmatprep.mubr.msk.bf16.mxu1 %vm345_vm1, %v5037_v53 }
  0xac   : > { %4006 = vmatmul.mubr.msk.bf16.gmra.mxu0 %vm345_vm1, %v5069_v54 }
  0xad   : > { %3972 = vmatmul.mubr.msk.bf16.gmra.mxu1 %vm345_vm1, %v5039_v57  ;;  %4045 = vmatprep.mubr.msk.bf16.mxu0 %vm345_vm1, %v3547_v62 }
  0xae   : > { %4011 = vmatprep.mubr.msk.bf16.mxu1 %vm345_vm1, %v4572_v8  ;;  %v2221_v8 = vsel %vm4692_vm7, %v3533_v29, %v2220_v55 }
  0xaf   : > { %v5122_v17 = vcombine.low %v2221_v8, %v2224_v32 }
  0xb4   : > { %4046 = vmatmul.mubr.msk.bf16.vlgmr.msra.gmra.mxu0 %vm345_vm1, %v4734_v19 }
  0xb5   : > { %4012 = vmatmul.mubr.msk.bf16.vlgmr.msra.gmra.mxu1 %vm345_vm1, %v4574_v5  ;;  %4112 = vmatpush3.bf16.msra.mxu0 %v2836_v45  ;;  %v988_v5 = vld [vmem:[%s4289_s28 + $0xcc] sm:$0xf] }
  0xb6   : > { %4078 = vmatpush3.bf16.msra.mxu1 %v2622_v63  ;;  %4015 = vmatprep.mubr.msk.bf16.mxu1 %vm345_vm1, %v4580_v24 }
  0xb7   : > { %4049 = vmatprep.mubr.msk.bf16.mxu0 %vm345_vm1, %v5108_v43 }
  0xbc   : > { %4050 = vmatmul.mubr.msk.bf16.gmra.mxu0 %vm345_vm1, %v5122_v17 }
  0xbd   : > { %4016 = vmatmul.mubr.msk.bf16.gmra.mxu1 %vm345_vm1, %v4633_v42  ;;  %4053 = vmatprep.mubr.msk.bf16.mxu0 %vm345_vm1, %v4809_v47 }
  0xbe   : > { %4019 = vmatprep.mubr.msk.bf16.mxu1 %vm345_vm1, %v4720_v21  ;;  %v1901_v21 = vshrl.u32 %v988_v5, 16 }
  0xc0   : > { %v1903_v36 = vrot.slane %v1901_v21, 4 }
  0xc4   : > { %4054 = vmatmul.mubr.msk.bf16.gmra.mxu0 %vm345_vm1, %v4821_v23 }
  0xc5   : > { %4020 = vmatmul.mubr.msk.bf16.gmra.mxu1 %vm345_vm1, %v4730_v31  ;;  %4057 = vmatprep.mubr.msk.bf16.mxu0 %vm345_vm1, %v4827_v2  ;;  %v1904_v31 = vshll.u32 %v988_v5, 16 }
  0xc6   : > { %4023 = vmatprep.mubr.msk.bf16.mxu1 %vm345_vm1, %v4737_v3  ;;  %v1910_v3 = vshll.u32 %v5053_v15, 16 }
  0xc7   : > { %v1906_v28 = vrot.slane %v1904_v31, 5 }
  0xc8   : > { %v1912_v37 = vrot.slane %v1910_v3, 5 }
  0xc9   : > { %v1907_v62 = vor.u32 %v1906_v28, %v1903_v36 }
  0xcc   : > { %4058 = vmatmul.mubr.msk.bf16.gmra.mxu0 %vm345_vm1, %v4846_v16 }
  0xcd   : > { %4024 = vmatmul.mubr.msk.bf16.gmra.mxu1 %vm345_vm1, %v4739_v14  ;;  %4061 = vmatprep.mubr.msk.bf16.mxu0 %vm345_vm1, %v4855_v59  ;;  %v1914_v14 = vshrl.u32 %v5053_v15, 16 }
  0xce   : > { %4027 = vmatprep.mubr.msk.bf16.mxu1 %vm345_vm1, %v4924_v33 }
  0xcf   : > { %v1916_v38 = vrot.slane %v1914_v14, 4 }
  0xd1   : > { %v1917_v46 = vor.u32 %v1916_v38, %v1912_v37 }
  0xd3   : > { %v1918_v49 = vrot.slane %v1917_v46, 4 }
  0xd4   : > { %v5149_v24 = vpop.f32.mrf.mxu0  ;;  %4062 = vmatmul.mubr.msk.bf16.gmra.mxu0 %vm345_vm1, %v4868_v10 }
  0xd5   : > { %v5153_v42 = vpop.f32.mrf.mxu1  ;;  %4028 = vmatmul.mubr.msk.bf16.gmra.mxu1 %vm345_vm1, %v4986_v6  ;;  %4065 = vmatprep.mubr.msk.bf16.mxu0 %vm345_vm1, %v4877_v22  ;;  %v1923_v56 = vsel %vm4497_vm4, %v1918_v49, %v1922_v9 }
  0xd6   : > { %v5159_v30 = vpop.f32.mrf.mxu0  ;;  %4031 = vmatprep.mubr.msk.bf16.mxu1 %vm345_vm1, %v5014_v12 }
  0xd7   : > { %v5165_v18 = vpop.f32.mrf.mxu1 }
  0xd8   : > { %v5167_v33 = vpop.f32.mrf.mxu0 }
  0xd9   : > { %v5169_v11 = vpop.f32.mrf.mxu1 }
  0xda   : > { %v5171_v6 = vpop.f32.mrf.mxu0 }
  0xdb   : > { %v5173_v60 = vpop.f32.mrf.mxu1 }
  0xdc   : > { %v5175_v12 = vpop.f32.mrf.mxu0  ;;  %4066 = vmatmul.mubr.msk.bf16.gmra.mxu0 %vm345_vm1, %v4897_v50 }
  0xdd   : > { %v5179_v15 = vpop.f32.mrf.mxu1  ;;  %4032 = vmatmul.mubr.msk.bf16.gmra.mxu1 %vm345_vm1, %v5016_v39  ;;  %4069 = vmatprep.mubr.msk.bf16.mxu0 %vm345_vm1, %v4907_v48  ;;  %v1908_v39 = vrot.slane %v1907_v62, 4 }
  0xde   : > { %v5185_v40 = vpop.f32.mrf.mxu0  ;;  %4035 = vmatprep.mubr.msk.bf16.mxu1 %vm345_vm1, %v5037_v53  ;;  %v5898_v53 = vld [vmem:[#allocation4_spill] sm:$0xff] }
  0xdf   : > { %v5190_v7 = vpop.f32.mrf.mxu1  ;;  %v1913_v29 = vsel %vm4497_vm4, %v1908_v39, %v1912_v37 }
  0xe0   : > { %v5192_v13 = vpop.f32.mrf.mxu0 }
  0xe1   : > { %v5194_v44 = vpop.f32.mrf.mxu1 }
  0xe2   : > { %v5196_v25 = vpop.f32.mrf.mxu0 }
  0xe3   : > { %v5198_v55 = vpop.f32.mrf.mxu1 }
  0xe4   : > { %v5200_v34 = vpop.f32.mrf.mxu0  ;;  %4070 = vmatmul.mubr.msk.bf16.gmra.mxu0 %vm345_vm1, %v5898_v53 }
  0xe5   : > { %v5204_v26 = vpop.f32.mrf.mxu1  ;;  %4036 = vmatmul.mubr.msk.bf16.gmra.mxu1 %vm345_vm1, %v5039_v57  ;;  %4073 = vmatprep.mubr.msk.bf16.mxu0 %vm345_vm1, %v5899_v61  ;;  %v3513_v57 = vcombine.low %v1913_v29, %v1923_v56 }
  0xe6   : > { %v5210_v20 = vpop.f32.mrf.mxu0  ;;  %4039 = vmatprep.mubr.msk.bf16.mxu1 %vm345_vm1, %v5069_v54 }
  0xe7   : > { %v5218_v51 = vpop.f32.mrf.mxu1 }
  0xe8   : > { %v5220_v27 = vpop.f32.mrf.mxu0 }
  0xe9   : > { %v5222_v45 = vpop.f32.mrf.mxu1 }
  0xea   : > { %v5224_v63 = vpop.f32.mrf.mxu0 }
  0xeb   : > { %v5226_v8 = vpop.f32.mrf.mxu1 }
  0xec   : > { %v5228_v32 = vpop.f32.mrf.mxu0  ;;  %4074 = vmatmul.mubr.msk.bf16.gmra.mxu0 %vm345_vm1, %v4984_v58 }
  0xed   : > { %v5232_v54 = vpop.f32.mrf.mxu1  ;;  %4040 = vmatmul.mubr.msk.bf16.gmra.mxu1 %vm345_vm1, %v3513_v57  ;;  %4113 = vmatprep.mubr.msk.bf16.mxu0 %vm345_vm1, %v5108_v43 }
  0xee   : > { %v5237_v4 = vpop.f32.mrf.mxu0  ;;  %4079 = vmatprep.mubr.msk.bf16.mxu1 %vm345_vm1, %v4734_v19 }
  0xef   : > { %v5241_v5 = vpop.f32.mrf.mxu1 }
  0xf0   : > { %v5243_v21 = vpop.f32.mrf.mxu0 }
  0xf1   : > { %v5245_v31 = vpop.f32.mrf.mxu1 }
  0xf2   : > { %v5247_v3 = vpop.f32.mrf.mxu0 }
  0xf3   : > { %v5249_v14 = vpop.f32.mrf.mxu1 }
  0xf4   : > { %v3911_v36 = vpop.f32.mrf.mxu0  ;;  %4114 = vmatmul.mubr.msk.bf16.vlgmr.msra.gmra.mxu0 %vm345_vm1, %v5122_v17 }
  0xf5   : > { %v3877_v28 = vpop.f32.mrf.mxu1  ;;  %4080 = vmatmul.mubr.msk.bf16.vlgmr.msra.gmra.mxu1 %vm345_vm1, %v5108_v43  ;;  %4117 = vmatprep.mubr.msk.bf16.mxu0 %vm345_vm1, %v4809_v47 }
  0xf6   : > { %v613_v19 = vadd.f32 %v3877_v28, %v5149_v24  ;;  %v778_v37 = vpop.f32.mrf.mxu0  ;;  %4083 = vmatprep.mubr.msk.bf16.mxu1 %vm345_vm1, %v5122_v17 }
  0xf7   : > { %v604_v38 = vpop.f32.mrf.mxu1 }
  0xf8   : > { %v5260_v62 = vadd.f32 %v3911_v36, %v613_v19  ;;  %v605_v46 = vadd.f32 %v604_v38, %v5159_v30  ;;  %v3912_v0 = vpop.f32.mrf.mxu0 }
  0xf9   : > { %v3878_v39 = vpop.f32.mrf.mxu1 }
  0xfa   : > { %v5263_v49 = vadd.f32 %v778_v37, %v605_v46  ;;  %v616_v43 = vadd.f32 %v3878_v39, %v5167_v33  ;;  %v781_v9 = vpop.f32.mrf.mxu0 }
  0xfb   : > { %v607_v29 = vpop.f32.mrf.mxu1 }
  0xfc   : > { %v5266_v56 = vadd.f32 %v3912_v0, %v616_v43  ;;  %v608_v24 = vadd.f32 %v607_v29, %v5171_v6  ;;  %v3915_v57 = vpop.f32.mrf.mxu0  ;;  %4118 = vmatmul.mubr.msk.bf16.gmra.mxu0 %vm345_vm1, %v4821_v23 }
  0xfd   : > { %v3881_v17 = vpop.f32.mrf.mxu1  ;;  %4084 = vmatmul.mubr.msk.bf16.gmra.mxu1 %vm345_vm1, %v4809_v47  ;;  %4121 = vmatprep.mubr.msk.bf16.mxu0 %vm345_vm1, %v4827_v2 }
  0xfe   : > { %v5275_v30 = vadd.f32 %v781_v9, %v608_v24  ;;  %v629_v33 = vadd.f32 %v3881_v17, %v5175_v12  ;;  %v794_v36 = vpop.f32.mrf.mxu0  ;;  %4087 = vmatprep.mubr.msk.bf16.mxu1 %vm345_vm1, %v4821_v23 }
  0xff   : > { %v620_v6 = vpop.f32.mrf.mxu1 }
 0x100   : > { %v5280_v28 = vadd.f32 %v3915_v57, %v629_v33  ;;  %v621_v19 = vadd.f32 %v620_v6, %v5185_v40  ;;  %v3916_v37 = vpop.f32.mrf.mxu0 }
 0x101   : > { %v3882_v38 = vpop.f32.mrf.mxu1 }
 0x102   : > { %v5283_v46 = vadd.f32 %v794_v36, %v621_v19  ;;  %v632_v47 = vadd.f32 %v3882_v38, %v5192_v13  ;;  %v797_v0 = vpop.f32.mrf.mxu0 }
 0x103   : > { %v623_v39 = vpop.f32.mrf.mxu1 }
 0x104   : > { %v5286_v43 = vadd.f32 %v3916_v37, %v632_v47  ;;  %v624_v12 = vadd.f32 %v623_v39, %v5196_v25  ;;  %v3919_v9 = vpop.f32.mrf.mxu0  ;;  %4122 = vmatmul.mubr.msk.bf16.gmra.mxu0 %vm345_vm1, %v4846_v16 }
 0x105   : > { %v3885_v23 = vpop.f32.mrf.mxu1  ;;  %4088 = vmatmul.mubr.msk.bf16.gmra.mxu1 %vm345_vm1, %v4827_v2  ;;  %4125 = vmatprep.mubr.msk.bf16.mxu0 %vm345_vm1, %v4855_v59 }
 0x106   : > { %v5295_v40 = vadd.f32 %v797_v0, %v624_v12  ;;  %v645_v13 = vadd.f32 %v3885_v23, %v5200_v34  ;;  %v810_v29 = vpop.f32.mrf.mxu0  ;;  %4091 = vmatprep.mubr.msk.bf16.mxu1 %vm345_vm1, %v4846_v16 }
 0x107   : > { %v636_v25 = vpop.f32.mrf.mxu1 }
 0x108   : > { %v5300_v24 = vadd.f32 %v3919_v9, %v645_v13  ;;  %v637_v57 = vadd.f32 %v636_v25, %v5210_v20  ;;  %v3920_v17 = vpop.f32.mrf.mxu0 }
 0x109   : > { %v3886_v33 = vpop.f32.mrf.mxu1 }
 0x10a   : > { %v5303_v36 = vadd.f32 %v810_v29, %v637_v57  ;;  %v648_v2 = vadd.f32 %v3886_v33, %v5220_v27  ;;  %v813_v6 = vpop.f32.mrf.mxu0 }
 0x10b   : > { %v639_v19 = vpop.f32.mrf.mxu1 }
 0x10c   : > { %v5306_v37 = vadd.f32 %v3920_v17, %v648_v2  ;;  %v640_v34 = vadd.f32 %v639_v19, %v5224_v63  ;;  %v3923_v38 = vpop.f32.mrf.mxu0  ;;  %4126 = vmatmul.mubr.msk.bf16.gmra.mxu0 %vm345_vm1, %v4868_v10 }
 0x10d   : > { %v3889_v16 = vpop.f32.mrf.mxu1  ;;  %4092 = vmatmul.mubr.msk.bf16.gmra.mxu1 %vm345_vm1, %v4855_v59  ;;  %4129 = vmatprep.mubr.msk.bf16.mxu0 %vm345_vm1, %v4877_v22 }
 0x10e   : > { %v5315_v20 = vadd.f32 %v813_v6, %v640_v34  ;;  %v661_v27 = vadd.f32 %v3889_v16, %v5228_v32  ;;  %v826_v47 = vpop.f32.mrf.mxu0  ;;  %4095 = vmatprep.mubr.msk.bf16.mxu1 %vm345_vm1, %v4868_v10 }
 0x10f   : > { %v652_v63 = vpop.f32.mrf.mxu1 }
 0x110   : > { %v5320_v0 = vadd.f32 %v3923_v38, %v661_v27  ;;  %v653_v39 = vadd.f32 %v652_v63, %v5237_v4  ;;  %v3924_v12 = vpop.f32.mrf.mxu0 }
 0x111   : > { %v3890_v9 = vpop.f32.mrf.mxu1 }
 0x112   : > { %v5323_v23 = vadd.f32 %v826_v47, %v653_v39  ;;  %v664_v59 = vadd.f32 %v3890_v9, %v5243_v21  ;;  %v829_v13 = vpop.f32.mrf.mxu0 }
 0x113   : > { %v655_v29 = vpop.f32.mrf.mxu1 }
 0x114   : > { %v5326_v25 = vadd.f32 %v3924_v12, %v664_v59  ;;  %v656_v32 = vadd.f32 %v655_v29, %v5247_v3  ;;  %v3927_v57 = vpop.f32.mrf.mxu0  ;;  %4130 = vmatmul.mubr.msk.bf16.gmra.mxu0 %vm345_vm1, %v4897_v50 }
 0x115   : > { %v3893_v10 = vpop.f32.mrf.mxu1  ;;  %4096 = vmatmul.mubr.msk.bf16.gmra.mxu1 %vm345_vm1, %v4877_v22  ;;  %4133 = vmatprep.mubr.msk.bf16.mxu0 %vm345_vm1, %v4907_v48 }
 0x116   : > { %v5335_v4 = vadd.f32 %v829_v13, %v656_v32  ;;  %v677_v21 = vadd.f32 %v3893_v10, %v5153_v42  ;;  %v842_v17 = vpop.f32.mrf.mxu0  ;;  %4099 = vmatprep.mubr.msk.bf16.mxu1 %vm345_vm1, %v4897_v50 }
 0x117   : > { %v668_v3 = vpop.f32.mrf.mxu1 }
 0x118   : > { %v5340_v33 = vadd.f32 %v3927_v57, %v677_v21  ;;  %v669_v2 = vadd.f32 %v668_v3, %v5165_v18  ;;  %v3928_v6 = vpop.f32.mrf.mxu0 }
 0x119   : > { %v3894_v19 = vpop.f32.mrf.mxu1 }
 0x11a   : > { %v5343_v34 = vadd.f32 %v842_v17, %v669_v2  ;;  %v680_v22 = vadd.f32 %v3894_v19, %v5169_v11  ;;  %v845_v38 = vpop.f32.mrf.mxu0 }
 0x11b   : > { %v671_v16 = vpop.f32.mrf.mxu1 }
 0x11c   : > { %v5346_v27 = vadd.f32 %v3928_v6, %v680_v22  ;;  %v672_v42 = vadd.f32 %v671_v16, %v5173_v60  ;;  %v3931_v47 = vpop.f32.mrf.mxu0  ;;  %4134 = vmatmul.mubr.msk.bf16.gmra.mxu0 %vm345_vm1, %v5898_v53 }
 0x11d   : > { %v3897_v50 = vpop.f32.mrf.mxu1  ;;  %4100 = vmatmul.mubr.msk.bf16.gmra.mxu1 %vm345_vm1, %v4907_v48  ;;  %4137 = vmatprep.mubr.msk.bf16.mxu0 %vm345_vm1, %v5899_v61 }
 0x11e   : > { %v5355_v18 = vadd.f32 %v845_v38, %v672_v42  ;;  %v693_v11 = vadd.f32 %v3897_v50, %v5179_v15  ;;  %v858_v63 = vpop.f32.mrf.mxu0  ;;  %4103 = vmatprep.mubr.msk.bf16.mxu1 %vm345_vm1, %v5898_v53 }
 0x11f   : > { %v684_v60 = vpop.f32.mrf.mxu1 }
 0x120   : > { %v5360_v39 = vadd.f32 %v3931_v47, %v693_v11  ;;  %v685_v12 = vadd.f32 %v684_v60, %v5190_v7  ;;  %v3932_v9 = vpop.f32.mrf.mxu0 }
 0x121   : > { %v3898_v59 = vpop.f32.mrf.mxu1 }
 0x122   : > { %v5363_v13 = vadd.f32 %v858_v63, %v685_v12  ;;  %v696_v48 = vadd.f32 %v3898_v59, %v5194_v44  ;;  %v861_v29 = vpop.f32.mrf.mxu0 }
 0x123   : > { %v687_v32 = vpop.f32.mrf.mxu1 }
 0x124   : > { %v5366_v57 = vadd.f32 %v3932_v9, %v696_v48  ;;  %v688_v15 = vadd.f32 %v687_v32, %v5198_v55  ;;  %v3935_v10 = vpop.f32.mrf.mxu0  ;;  %4138 = vmatmul.mubr.msk.bf16.gmra.mxu0 %vm345_vm1, %v4984_v58 }
 0x125   : > { %v3901_v53 = vpop.f32.mrf.mxu1  ;;  %4104 = vmatmul.mubr.msk.bf16.gmra.mxu1 %vm345_vm1, %v5899_v61  ;;  %4141 = vmatprep.mubr.msk.bf16.mxu0 %vm345_vm1, %v5077_v41 }
 0x126   : > { %v5375_v7 = vadd.f32 %v861_v29, %v688_v15  ;;  %v709_v44 = vadd.f32 %v3901_v53, %v5204_v26  ;;  %v874_v21 = vpop.f32.mrf.mxu0  ;;  %4107 = vmatprep.mubr.msk.bf16.mxu1 %vm345_vm1, %v4984_v58 }
 0x127   : > { %v700_v55 = vpop.f32.mrf.mxu1 }
 0x128   : > { %v5380_v17 = vadd.f32 %v3935_v10, %v709_v44  ;;  %v701_v3 = vadd.f32 %v700_v55, %v5218_v51  ;;  %v3936_v2 = vpop.f32.mrf.mxu0 }
 0x129   : > { %v3902_v6 = vpop.f32.mrf.mxu1 }
 0x12a   : > { %v5383_v19 = vadd.f32 %v874_v21, %v701_v3  ;;  %v712_v61 = vadd.f32 %v3902_v6, %v5222_v45  ;;  %v877_v22 = vpop.f32.mrf.mxu0 }
 0x12b   : > { %v703_v38 = vpop.f32.mrf.mxu1 }
 0x12c   : > { %v5386_v16 = vadd.f32 %v3936_v2, %v712_v61  ;;  %v704_v26 = vadd.f32 %v703_v38, %v5226_v8  ;;  %v3939_v42 = vpop.f32.mrf.mxu0  ;;  %4142 = vmatmul.mubr.msk.bf16.gmra.mxu0 %vm345_vm1, %v3600_v35 }
 0x12d   : > { %v3905_v58 = vpop.f32.mrf.mxu1  ;;  %4108 = vmatmul.mubr.msk.bf16.gmra.mxu1 %vm345_vm1, %v5077_v41 }
 0x12e   : > { %v5395_v51 = vadd.f32 %v877_v22, %v704_v26  ;;  %v725_v45 = vadd.f32 %v3905_v58, %v5232_v54  ;;  %v890_v47 = vpop.f32.mrf.mxu0 }
 0x12f   : > { %v716_v50 = vpop.f32.mrf.mxu1 }
 0x130   : > { %v5398_v11 = vadd.f32 %v3939_v42, %v725_v45  ;;  %v717_v8 = vadd.f32 %v716_v50, %v5241_v5  ;;  %v3940_v63 = vpop.f32.mrf.mxu0 }
 0x131   : > { %v3906_v60 = vpop.f32.mrf.mxu1 }
 0x132   : > { %v5401_v12 = vadd.f32 %v890_v47, %v717_v8  ;;  %v728_v1 = vadd.f32 %v3906_v60, %v5245_v31  ;;  %v893_v52 = vpop.f32.mrf.mxu0 }
 0x133   : > { %v719_v35 = vpop.f32.mrf.mxu1 }
 0x134   : > { %v5404_v9 = vadd.f32 %v3940_v63, %v728_v1  ;;  %v720_v41 = vadd.f32 %v719_v35, %v5249_v14  ;;  %v3979_v59 = vpop.f32.mrf.mxu0 }
 0x135   : > { %v3945_v54 = vpop.f32.mrf.mxu1 }
 0x136   : > { %v5407_v48 = vadd.f32 %v893_v52, %v720_v41  ;;  %v1642_v29 = vadd.f32 %v3945_v54, %v5260_v62  ;;  %v1741_v32 = vpop.f32.mrf.mxu0 }
 0x137   : > { %v1513_v5 = vpop.f32.mrf.mxu1 }
 0x138   : > { %v5410_v15 = vadd.f32 %v3979_v59, %v1642_v29  ;;  %v1640_v10 = vadd.f32 %v1513_v5, %v5263_v49  ;;  %v3980_v53 = vpop.f32.mrf.mxu0 }
 0x139   : > { %v3946_v31 = vpop.f32.mrf.mxu1 }
 0x13a   : > { %v5413_v44 = vadd.f32 %v1741_v32, %v1640_v10  ;;  %v1643_v21 = vadd.f32 %v3946_v31, %v5266_v56  ;;  %v1744_v55 = vpop.f32.mrf.mxu0 }
 0x13b   : > { %v1516_v14 = vpop.f32.mrf.mxu1 }
 0x13c   : > { %v5416_v3 = vadd.f32 %v3980_v53, %v1643_v21  ;;  %v1641_v2 = vadd.f32 %v1516_v14, %v5275_v30  ;;  %v3983_v6 = vpop.f32.mrf.mxu0 }
 0x13d   : > { %v3949_v62 = vpop.f32.mrf.mxu1 }
 0x13e   : > { %v5419_v61 = vadd.f32 %v1744_v55, %v1641_v2  ;;  %v1646_v22 = vadd.f32 %v3949_v62, %v5280_v28  ;;  %v1757_v38 = vpop.f32.mrf.mxu0 }
 0x13f   : > { %v1529_v49 = vpop.f32.mrf.mxu1 }
 0x140   : > { %v5422_v26 = vadd.f32 %v3983_v6, %v1646_v22  ;;  %v1644_v42 = vadd.f32 %v1529_v49, %v5283_v46  ;;  %v3984_v58 = vpop.f32.mrf.mxu0 }
 0x141   : > { %v3950_v56 = vpop.f32.mrf.mxu1 }
 0x142   : > { %v5425_v45 = vadd.f32 %v1757_v38, %v1644_v42  ;;  %v1647_v47 = vadd.f32 %v3950_v56, %v5286_v43  ;;  %v1760_v50 = vpop.f32.mrf.mxu0 }
 0x143   : > { %v1532_v30 = vpop.f32.mrf.mxu1 }
 0x144   : > { %v5428_v8 = vadd.f32 %v3984_v58, %v1647_v47  ;;  %v1645_v63 = vadd.f32 %v1532_v30, %v5295_v40  ;;  %v3987_v60 = vpop.f32.mrf.mxu0 }
 0x145   : > { %v3953_v28 = vpop.f32.mrf.mxu1 }
 0x146   : > { %v5431_v1 = vadd.f32 %v1760_v50, %v1645_v63  ;;  %v1650_v52 = vadd.f32 %v3953_v28, %v5300_v24  ;;  %v1773_v35 = vpop.f32.mrf.mxu0 }
 0x147   : > { %v1545_v46 = vpop.f32.mrf.mxu1 }
 0x148   : > { %v5434_v41 = vadd.f32 %v3987_v60, %v1650_v52  ;;  %v1648_v59 = vadd.f32 %v1545_v46, %v5303_v36  ;;  %v3988_v54 = vpop.f32.mrf.mxu0 }
 0x149   : > { %v3954_v43 = vpop.f32.mrf.mxu1 }
 0x14a   : > { %v5437_v29 = vadd.f32 %v1773_v35, %v1648_v59  ;;  %v1651_v32 = vadd.f32 %v3954_v43, %v5306_v37  ;;  %v1776_v5 = vpop.f32.mrf.mxu0 }
 0x14b   : > { %v1548_v40 = vpop.f32.mrf.mxu1 }
 0x14c   : > { %v5440_v10 = vadd.f32 %v3988_v54, %v1651_v32  ;;  %v1649_v53 = vadd.f32 %v1548_v40, %v5315_v20  ;;  %v3991_v31 = vpop.f32.mrf.mxu0 }
 0x14d   : > { %v3957_v24 = vpop.f32.mrf.mxu1 }
 0x14e   : > { %v5443_v21 = vadd.f32 %v1776_v5, %v1649_v53  ;;  %v1654_v55 = vadd.f32 %v3957_v24, %v5320_v0  ;;  %v1789_v14 = vpop.f32.mrf.mxu0 }
 0x14f   : > { %v1561_v36 = vpop.f32.mrf.mxu1 }
 0x150   : > { %v5446_v2 = vadd.f32 %v3991_v31, %v1654_v55  ;;  %v1652_v6 = vadd.f32 %v1561_v36, %v5323_v23  ;;  %v3992_v62 = vpop.f32.mrf.mxu0 }
 0x151   : > { %v3958_v37 = vpop.f32.mrf.mxu1 }
 0x152   : > { %v5449_v22 = vadd.f32 %v1789_v14, %v1652_v6  ;;  %v1655_v38 = vadd.f32 %v3958_v37, %v5326_v25  ;;  %v1792_v49 = vpop.f32.mrf.mxu0 }
 0x153   : > { %v1564_v20 = vpop.f32.mrf.mxu1 }
 0x154   : > { %v5452_v42 = vadd.f32 %v3992_v62, %v1655_v38  ;;  %v1653_v58 = vadd.f32 %v1564_v20, %v5335_v4  ;;  %v3995_v56 = vpop.f32.mrf.mxu0 }
 0x155   : > { %v3961_v0 = vpop.f32.mrf.mxu1 }
 0x156   : > { %v5455_v47 = vadd.f32 %v1792_v49, %v1653_v58  ;;  %v1658_v50 = vadd.f32 %v3961_v0, %v5340_v33  ;;  %v1805_v30 = vpop.f32.mrf.mxu0 }
 0x157   : > { %v1577_v23 = vpop.f32.mrf.mxu1 }
 0x158   : > { %v5458_v63 = vadd.f32 %v3995_v56, %v1658_v50  ;;  %v1656_v60 = vadd.f32 %v1577_v23, %v5343_v34  ;;  %v3996_v28 = vpop.f32.mrf.mxu0 }
 0x159   : > { %v3962_v25 = vpop.f32.mrf.mxu1 }
 0x15a   : > { %v5461_v52 = vadd.f32 %v1805_v30, %v1656_v60  ;;  %v1659_v35 = vadd.f32 %v3962_v25, %v5346_v27  ;;  %v1808_v46 = vpop.f32.mrf.mxu0 }
 0x15b   : > { %v1580_v4 = vpop.f32.mrf.mxu1 }
 0x15c   : > { %v5464_v59 = vadd.f32 %v3996_v28, %v1659_v35  ;;  %v1657_v54 = vadd.f32 %v1580_v4, %v5355_v18  ;;  %v3999_v43 = vpop.f32.mrf.mxu0 }
 0x15d   : > { %v3965_v33 = vpop.f32.mrf.mxu1 }
 0x15e   : > { %5900 = vst [vmem:[#allocation2_spill] sm:$0xff] %v5464_v59  ;;  %v5467_v32 = vadd.f32 %v1808_v46, %v1657_v54  ;;  %v1662_v5 = vadd.f32 %v3965_v33, %v5360_v39  ;;  %v1821_v40 = vpop.f32.mrf.mxu0 }
 0x15f   : > { %v1593_v34 = vpop.f32.mrf.mxu1 }
 0x160   : > { %5901 = vst [vmem:[#allocation3_spill] sm:$0xff] %v5467_v32  ;;  %v5470_v53 = vadd.f32 %v3999_v43, %v1662_v5  ;;  %v1660_v31 = vadd.f32 %v1593_v34, %v5363_v13  ;;  %v4000_v24 = vpop.f32.mrf.mxu0 }
 0x161   : > { %v3966_v27 = vpop.f32.mrf.mxu1 }
 0x162   : > { %5902 = vst [vmem:[#allocation4_spill] sm:$0xff] %v5470_v53  ;;  %v5473_v55 = vadd.f32 %v1821_v40, %v1660_v31  ;;  %v1663_v14 = vadd.f32 %v3966_v27, %v5366_v57  ;;  %v1824_v36 = vpop.f32.mrf.mxu0 }
 0x163   : > { %v1596_v18 = vpop.f32.mrf.mxu1 }
 0x164   : > { %5903 = vst [vmem:[#allocation5_spill] sm:$0xff] %v5473_v55  ;;  %v5476_v6 = vadd.f32 %v4000_v24, %v1663_v14  ;;  %v1661_v62 = vadd.f32 %v1596_v18, %v5375_v7  ;;  %v4003_v37 = vpop.f32.mrf.mxu0 }
 0x165   : > { %v3969_v39 = vpop.f32.mrf.mxu1 }
 0x166   : > { %5904 = vst [vmem:[#allocation6_spill] sm:$0xff] %v5476_v6  ;;  %v5479_v38 = vadd.f32 %v1824_v36, %v1661_v62  ;;  %v1666_v49 = vadd.f32 %v3969_v39, %v5380_v17  ;;  %v1837_v20 = vpop.f32.mrf.mxu0 }
 0x167   : > { %v1609_v13 = vpop.f32.mrf.mxu1 }
 0x168   : > { %5905 = vst [vmem:[#allocation7_spill] sm:$0xff] %v5479_v38  ;;  %v5482_v58 = vadd.f32 %v4003_v37, %v1666_v49  ;;  %v1664_v56 = vadd.f32 %v1609_v13, %v5383_v19  ;;  %v4004_v0 = vpop.f32.mrf.mxu0 }
 0x169   : > { %v3970_v57 = vpop.f32.mrf.mxu1 }
 0x16a   : > { %5906 = vst [vmem:[#allocation8_spill] sm:$0xff] %v5482_v58  ;;  %v5485_v50 = vadd.f32 %v1837_v20, %v1664_v56  ;;  %v1667_v30 = vadd.f32 %v3970_v57, %v5386_v16  ;;  %v1840_v23 = vpop.f32.mrf.mxu0 }
 0x16b   : > { %v1612_v7 = vpop.f32.mrf.mxu1 }
 0x16c   : > { %5907 = vst [vmem:[#allocation9_spill] sm:$0xff] %v5485_v50  ;;  %v5488_v60 = vadd.f32 %v4004_v0, %v1667_v30  ;;  %v1665_v28 = vadd.f32 %v1612_v7, %v5395_v51  ;;  %v4007_v25 = vpop.f32.mrf.mxu0 }
 0x16d   : > { %v3973_v17 = vpop.f32.mrf.mxu1 }
 0x16e   : > { %5908 = vst [vmem:[#allocation10_spill] sm:$0xff] %v5488_v60  ;;  %v5491_v35 = vadd.f32 %v1840_v23, %v1665_v28  ;;  %v1670_v46 = vadd.f32 %v3973_v17, %v5398_v11  ;;  %v1853_v4 = vpop.f32.mrf.mxu0 }
 0x16f   : > { %v1625_v19 = vpop.f32.mrf.mxu1 }
 0x170   : > { %5909 = vst [vmem:[#allocation11_spill] sm:$0xff] %v5491_v35  ;;  %v5494_v54 = vadd.f32 %v4007_v25, %v1670_v46  ;;  %v1668_v43 = vadd.f32 %v1625_v19, %v5401_v12  ;;  %v4008_v33 = vpop.f32.mrf.mxu0 }
 0x171   : > { %v3974_v16 = vpop.f32.mrf.mxu1 }
 0x172   : > { %5910 = vst [vmem:[#allocation12_spill] sm:$0xff] %v5494_v54  ;;  %v5497_v5 = vadd.f32 %v1853_v4, %v1668_v43  ;;  %v1671_v40 = vadd.f32 %v3974_v16, %v5404_v9  ;;  %v1856_v34 = vpop.f32.mrf.mxu0 }
 0x173   : > { %v1628_v51 = vpop.f32.mrf.mxu1 }
 0x174   : > { %5911 = vst [vmem:[#allocation13_spill] sm:$0xff] %v5497_v5  ;;  %v5500_v31 = vadd.f32 %v4008_v33, %v1671_v40  ;;  %v1669_v24 = vadd.f32 %v1628_v51, %v5407_v48  ;;  %v5503_v27 = vpop.f32.mrf.mxu0 }
 0x175   : > { %v4013_v11 = vpop.f32.mrf.mxu1 }
 0x176   : > { %5912 = vst [vmem:[#allocation14_spill] sm:$0xff] %v5500_v31  ;;  %v5505_v14 = vadd.f32 %v1856_v34, %v1669_v24  ;;  %v5507_v36 = vpop.f32.mrf.mxu0 }
 0x177   : > { %v1969_v12 = vpop.f32.mrf.mxu1 }
 0x178   : > { %5913 = vst [vmem:[#allocation15_spill] sm:$0xff] %v5505_v14  ;;  %v5509_v18 = vpop.f32.mrf.mxu0 }
 0x179   : > { %v4014_v62 = vpop.f32.mrf.mxu1 }
 0x17a   : > { %v5511_v37 = vpop.f32.mrf.mxu0 }
 0x17b   : > { %v5513_v9 = vpop.f32.mrf.mxu1 }
 0x17c   : > { %v5515_v39 = vpop.f32.mrf.mxu0 }
 0x17d   : > { %v5517_v49 = vpop.f32.mrf.mxu1 }
 0x17e   : > { %v5519_v48 = vpop.f32.mrf.mxu0 }
 0x17f   : > { %v5521_v20 = vpop.f32.mrf.mxu1 }
 0x180   : > { %v5523_v13 = vpop.f32.mrf.mxu0 }
 0x181   : > { %v5525_v56 = vpop.f32.mrf.mxu1 }
 0x182   : > { %v5527_v0 = vpop.f32.mrf.mxu0 }
 0x183   : > { %v5529_v57 = vpop.f32.mrf.mxu1 }
 0x184   : > { %v5531_v30 = vpop.f32.mrf.mxu0 }
 0x185   : > { %v5533_v23 = vpop.f32.mrf.mxu1 }
 0x186   : > { %v5535_v7 = vpop.f32.mrf.mxu0 }
 0x187   : > { %v5537_v28 = vpop.f32.mrf.mxu1 }
 0x188   : > { %v5539_v25 = vpop.f32.mrf.mxu0 }
 0x189   : > { %v5541_v17 = vpop.f32.mrf.mxu1 }
 0x18a   : > { %v5543_v46 = vpop.f32.mrf.mxu0 }
 0x18b   : > { %v5545_v4 = vpop.f32.mrf.mxu1 }
 0x18c   : > { %v5547_v19 = vpop.f32.mrf.mxu0 }
 0x18d   : > { %v5549_v43 = vpop.f32.mrf.mxu1 }
 0x18e   : > { %v5551_v33 = vpop.f32.mrf.mxu0 }
 0x18f   : > { %v5553_v16 = vpop.f32.mrf.mxu1 }
 0x190   : > { %v5555_v40 = vpop.f32.mrf.mxu0 }
 0x191   : > { %v5557_v34 = vpop.f32.mrf.mxu1 }
 0x192   : > { %v5559_v51 = vpop.f32.mrf.mxu0 }
 0x193   : > { %v5561_v24 = vpop.f32.mrf.mxu1 }
 0x194   : > { %v5563_v14 = vpop.f32.mrf.mxu0 }
 0x195   : > { %v5565_v31 = vpop.f32.mrf.mxu1 }
 0x196   : > { %v5567_v5 = vpop.f32.mrf.mxu0 }
 0x197   : > { %5914 = vst [vmem:[#allocation16_spill] sm:$0xff] %v5567_v5  ;;  %v5569_v54 = vpop.f32.mrf.mxu1 }
 0x198   : > { %v5571_v35 = vpop.f32.mrf.mxu0 }
 0x199   : > { %5915 = vst [vmem:[#allocation17_spill] sm:$0xff] %v5571_v35  ;;  %v5573_v60 = vpop.f32.mrf.mxu1 }
 0x19a   : > { %5916 = vst [vmem:[#allocation18_spill] sm:$0xff] %v5573_v60  ;;  %v5575_v50 = vpop.f32.mrf.mxu0 }
 0x19b   : > { %5917 = vst [vmem:[#allocation19_spill] sm:$0xff] %v5575_v50  ;;  %v5577_v58 = vpop.f32.mrf.mxu1 }
 0x19c   : > { %5918 = vst [vmem:[#allocation20_spill] sm:$0xff] %v5577_v58  ;;  %v5579_v38 = vpop.f32.mrf.mxu0 }
 0x19d   : > { %5919 = vst [vmem:[#allocation21_spill] sm:$0xff] %v5579_v38  ;;  %v5581_v6 = vpop.f32.mrf.mxu1 }
 0x19e   : > { %5920 = vst [vmem:[#allocation22_spill] sm:$0xff] %v5581_v6  ;;  %v5583_v55 = vpop.f32.mrf.mxu0 }
 0x19f   : > { %5921 = vst [vmem:[#allocation23_spill] sm:$0xff] %v5583_v55  ;;  %v5585_v53 = vpop.f32.mrf.mxu1 }
 0x1a0   : > { %5922 = vst [vmem:[#allocation24_spill] sm:$0xff] %v5585_v53  ;;  %v5587_v32 = vpop.f32.mrf.mxu0 }
 0x1a1   : > { %5923 = vst [vmem:[#allocation25_spill] sm:$0xff] %v5587_v32  ;;  %v5589_v5 = vpop.f32.mrf.mxu1 }
 0x1a2   : > { %5924 = vst [vmem:[#allocation26_spill] sm:$0xff] %v5589_v5  ;;  %v5591_v59 = vpop.f32.mrf.mxu0 }
 0x1a3   : > { %5925 = vst [vmem:[#allocation27_spill] sm:$0xff] %v5591_v59  ;;  %v5593_v35 = vpop.f32.mrf.mxu1 }
 0x1a4   : > { %5926 = vst [vmem:[#allocation28_spill] sm:$0xff] %v5593_v35  ;;  %v5595_v60 = vpop.f32.mrf.mxu0 }
 0x1a5   : > { %5927 = vst [vmem:[#allocation29_spill] sm:$0xff] %v5595_v60  ;;  %v5597_v50 = vpop.f32.mrf.mxu1 }
 0x1a6   : > { %5928 = vst [vmem:[#allocation30_spill] sm:$0xff] %v5597_v50  ;;  %v5599_v58 = vpop.f32.mrf.mxu0 }
 0x1a7   : > { %5929 = vst [vmem:[#allocation31_spill] sm:$0xff] %v5599_v58  ;;  %v5601_v38 = vpop.f32.mrf.mxu1  ;;  %v2098_v58 = vadd.f32 %v4013_v11, %v5410_v15  ;;  %v2097_v15 = vadd.f32 %v5513_v9, %v5419_v61  ;;  %v5645_v61 = vld [vmem:[%s5876_s3] ss:$0 sm:$0xff] }
 0x1a8   : > { %5930 = vst [vmem:[#allocation32_spill] sm:$0xff] %v5601_v38  ;;  %v5603_v6 = vpop.f32.mrf.mxu0 }
 0x1a9   : > { %5931 = vst [vmem:[#allocation33_spill] sm:$0xff] %v5603_v6  ;;  %v5605_v55 = vpop.f32.mrf.mxu1  ;;  %v2096_v6 = vadd.f32 %v1969_v12, %v5413_v44  ;;  %v5637_v44 = vld [vmem:[%s5875_s2] ss:$0 sm:$0xff] }
 0x1aa   : > { %5932 = vst [vmem:[#allocation34_spill] sm:$0xff] %v5605_v55  ;;  %v5607_v53 = vpop.f32.mrf.mxu0 }
 0x1ab   : > { %5933 = vst [vmem:[#allocation35_spill] sm:$0xff] %v5607_v53  ;;  %v5609_v32 = vpop.f32.mrf.mxu1 }
 0x1ac   : > { %5934 = vst [vmem:[#allocation36_spill] sm:$0xff] %v5609_v32  ;;  %v5611_v5 = vpop.f32.mrf.mxu0 }
 0x1ad   : > { %5935 = vst [vmem:[#allocation37_spill] sm:$0xff] %v5611_v5  ;;  %v5613_v59 = vpop.f32.mrf.mxu1  ;;  %v2573_v5 = vadd.f32 %v5503_v27, %v2098_v58 }
 0x1ae   : > { %5936 = vst [vmem:[#allocation38_spill] sm:$0xff] %v5613_v59  ;;  %v5615_v35 = vpop.f32.mrf.mxu0  ;;  %v2099_v59 = vadd.f32 %v4014_v62, %v5416_v3 }
 0x1af   : > { %5937 = vst [vmem:[#allocation39_spill] sm:$0xff] %v5615_v35  ;;  %v5617_v60 = vpop.f32.mrf.mxu1 }
 0x1b0   : > { %5938 = vst [vmem:[#allocation40_spill] sm:$0xff] %v5617_v60  ;;  %v5620_v50 = vpop.f32.mrf.mxu0  ;;  %v2571_v60 = vadd.f32 %v5507_v36, %v2096_v6  ;;  %v2574_v58 = vadd.f32 %v5509_v18, %v2099_v59  ;;  %v2102_v6 = vadd.f32 %v5517_v49, %v5422_v26  ;;  %v2100_v59 = vadd.f32 %v5521_v20, %v5425_v45 }
 0x1b1   : > { %5939 = vst [vmem:[#allocation41_spill] sm:$0xff] %v5620_v50  ;;  %v5622_v38 = vpop.f32.mrf.mxu1 }
 0x1b2   : > { %v5625_v55 = vpop.f32.mrf.mxu0 }
 0x1b3   : > { %5940 = vst [vmem:[#allocation42_spill] sm:$0xff] %v5625_v55  ;;  %v5627_v53 = vpop.f32.mrf.mxu1 }
 0x1b4   : > { %5941 = vst [vmem:[#allocation43_spill] sm:$0xff] %v5627_v53  ;;  %v4115_v32 = vpop.f32.mrf.mxu0 }
 0x1b5   : > { %v4081_v35 = vpop.f32.mrf.mxu1 }
 0x1b6   : > { %v2787_v11 = vadd.f32 %v4081_v35, %v2573_v5  ;;  %v2872_v50 = vpop.f32.mrf.mxu0  ;;  %v2572_v5 = vadd.f32 %v5511_v37, %v2097_v15  ;;  %v2577_v15 = vadd.f32 %v5515_v39, %v2102_v6 }
 0x1b7   : > { %v2658_v12 = vpop.f32.mrf.mxu1 }
 0x1b8   : > { %v3001_v27 = vadd.f32 %v4115_v32, %v2787_v11  ;;  %v2785_v3 = vadd.f32 %v2658_v12, %v2571_v60  ;;  %v4116_v62 = vpop.f32.mrf.mxu0  ;;  %v2103_v32 = vadd.f32 %v5525_v56, %v5428_v8 }
 0x1b9   : > { %v4082_v35 = vpop.f32.mrf.mxu1 }
 0x1ba   : > { %v3040_v36 = vmul.f32 %v5637_v44, %v3001_v27  ;;  %v2999_v9 = vadd.f32 %v2872_v50, %v2785_v3  ;;  %v2788_v55 = vadd.f32 %v4082_v35, %v2574_v58  ;;  %v2875_v53 = vpop.f32.mrf.mxu0  ;;  %v2101_v50 = vadd.f32 %v5529_v57, %v5431_v1 }
 0x1bb   : > { %v2661_v26 = vpop.f32.mrf.mxu1  ;;  %v2575_v27 = vadd.f32 %v5519_v48, %v2100_v59  ;;  %v2106_v3 = vadd.f32 %v5533_v23, %v5434_v41  ;;  %v2104_v41 = vadd.f32 %v5537_v28, %v5437_v29 }
 0x1bc   : > { %v3079_v60 = vadd.f32 %v5645_v61, %v3040_v36  ;;  %v3038_v18 = vmul.f32 %v5637_v44, %v2999_v9  ;;  %v3002_v49 = vadd.f32 %v4116_v62, %v2788_v55  ;;  %v2786_v11 = vadd.f32 %v2661_v26, %v2572_v5  ;;  %v4119_v37 = vpop.f32.mrf.mxu0 }
 0x1bd   : > { %v4085_v12 = vpop.f32.mrf.mxu1  ;;  %v2578_v55 = vadd.f32 %v5523_v13, %v2103_v32  ;;  %v2576_v13 = vadd.f32 %v5527_v0, %v2101_v50  ;;  %v2107_v0 = vadd.f32 %v5541_v17, %v5440_v10 }
 0x1be   : > { %v3111_v45 = vmax.f32 %v3079_v60, 0.0  ;;  %v3077_v20 = vadd.f32 %v5645_v61, %v3038_v18  ;;  %v3041_v8 = vmul.f32 %v5637_v44, %v3002_v49  ;;  %v3000_v56 = vadd.f32 %v2875_v53, %v2786_v11  ;;  %v2888_v58 = vpop.f32.mrf.mxu0 }
 0x1bf   : > { %v2791_v1 = vadd.f32 %v4085_v12, %v2577_v15  ;;  %v2674_v39 = vpop.f32.mrf.mxu1  ;;  %v2581_v60 = vadd.f32 %v5531_v30, %v2106_v3  ;;  %v2579_v12 = vadd.f32 %v5535_v7, %v2104_v41  ;;  %v2105_v30 = vadd.f32 %v5545_v4, %v5443_v21 }
 0x1c0   : > { %v3656_v57 = vpack.c.bf16 %v3111_v45, %v3111_v45  ;;  %v3109_v62 = vmax.f32 %v3077_v20, 0.0  ;;  %v3080_v53 = vadd.f32 %v5645_v61, %v3041_v8  ;;  %v3039_v6 = vmul.f32 %v5637_v44, %v3000_v56  ;;  %v4120_v48 = vpop.f32.mrf.mxu0 }
 0x1c1   : > { %v3005_v23 = vadd.f32 %v4119_v37, %v2791_v1  ;;  %v2789_v35 = vadd.f32 %v2674_v39, %v2575_v27  ;;  %v4086_v5 = vpop.f32.mrf.mxu1  ;;  %v2110_v7 = vadd.f32 %v5549_v43, %v5446_v2 }
 0x1c2   : > { %3272 = vst.msk [vmem:[%s5668_s25 + $0x8] sm:$0xf] %vm3269_vm8, %v3656_v57  ;;  %v3654_v36 = vpack.c.bf16 %v3109_v62, %v3109_v62  ;;  %v3112_v9 = vmax.f32 %v3080_v53, 0.0  ;;  %v3078_v59 = vadd.f32 %v5645_v61, %v3039_v6  ;;  %v2792_v32 = vadd.f32 %v4086_v5, %v2578_v55  ;;  %v2891_v26 = vpop.f32.mrf.mxu0 }
 0x1c3   : > { %v3044_v18 = vmul.f32 %v5637_v44, %v3005_v23  ;;  %v3003_v29 = vadd.f32 %v2888_v58, %v2789_v35  ;;  %v2677_v28 = vpop.f32.mrf.mxu1  ;;  %v2582_v55 = vadd.f32 %v5539_v25, %v2107_v0  ;;  %v2580_v6 = vadd.f32 %v5543_v46, %v2105_v30 }
 0x1c4   : > { %3270 = vst.msk [vmem:[%s5668_s25] sm:$0xf] %vm3269_vm8, %v3654_v36  ;;  %v3657_v49 = vpack.c.bf16 %v3112_v9, %v3112_v9  ;;  %v3110_v11 = vmax.f32 %v3078_v59, 0.0  ;;  %v3006_v37 = vadd.f32 %v4120_v48, %v2792_v32  ;;  %v2790_v15 = vadd.f32 %v2677_v28, %v2576_v13  ;;  %v4123_v50 = vpop.f32.mrf.mxu0 }
 0x1c5   : > { %v3083_v45 = vadd.f32 %v5645_v61, %v3044_v18  ;;  %v3042_v10 = vmul.f32 %v5637_v44, %v3003_v29  ;;  %v4089_v17 = vpop.f32.mrf.mxu1  ;;  %v2108_v25 = vadd.f32 %v5553_v16, %v5449_v22  ;;  %v2585_v36 = vadd.f32 %v5547_v19, %v2110_v7 }
 0x1c6   : > { %3273 = vst.msk [vmem:[%s5668_s25 + $0xc] sm:$0xf] %vm3269_vm8, %v3657_v49  ;;  %v3655_v20 = vpack.c.bf16 %v3110_v11, %v3110_v11  ;;  %v3045_v8 = vmul.f32 %v5637_v44, %v3006_v37  ;;  %v3004_v56 = vadd.f32 %v2891_v26, %v2790_v15  ;;  %v2795_v58 = vadd.f32 %v4089_v17, %v2581_v60  ;;  %v2904_v27 = vpop.f32.mrf.mxu0 }
 0x1c7   : > { %v3115_v3 = vmax.f32 %v3083_v45, 0.0  ;;  %v3081_v21 = vadd.f32 %v5645_v61, %v3042_v10  ;;  %v2690_v4 = vpop.f32.mrf.mxu1  ;;  %v2111_v9 = vadd.f32 %v5557_v34, %v5452_v42  ;;  %v2583_v18 = vadd.f32 %v5551_v33, %v2108_v25 }
 0x1c8   : > { %3271 = vst.msk [vmem:[%s5668_s25 + $0x4] sm:$0xf] %vm3269_vm8, %v3655_v20  ;;  %v3084_v1 = vadd.f32 %v5645_v61, %v3045_v8  ;;  %v3043_v39 = vmul.f32 %v5637_v44, %v3004_v56  ;;  %v3009_v57 = vadd.f32 %v4123_v50, %v2795_v58  ;;  %v2793_v62 = vadd.f32 %v2690_v4, %v2579_v12  ;;  %v4124_v53 = vpop.f32.mrf.mxu0  ;;  %v5943_v4 = vld [vmem:[#allocation18_spill] sm:$0xff] }
 0x1c9   : > { %v3660_v2 = vpack.c.bf16 %v3115_v3, %v3115_v3  ;;  %v3113_v43 = vmax.f32 %v3081_v21, 0.0  ;;  %v4090_v48 = vpop.f32.mrf.mxu1  ;;  %v2109_v19 = vadd.f32 %v5561_v24, %v5455_v47  ;;  %v2586_v50 = vadd.f32 %v5555_v40, %v2111_v9 }
 0x1ca   : > { %v3116_v13 = vmax.f32 %v3084_v1, 0.0  ;;  %v3082_v41 = vadd.f32 %v5645_v61, %v3043_v39  ;;  %v3048_v23 = vmul.f32 %v5637_v44, %v3009_v57  ;;  %v3007_v35 = vadd.f32 %v2904_v27, %v2793_v62  ;;  %v2907_v5 = vpop.f32.mrf.mxu0 }
 0x1cb   : > { %3276 = vst.msk [vmem:[%s5668_s25 + $0x18] sm:$0xf] %vm3269_vm8, %v3660_v2  ;;  %v3658_v22 = vpack.c.bf16 %v3113_v43, %v3113_v43  ;;  %v2796_v46 = vadd.f32 %v4090_v48, %v2582_v55  ;;  %v2693_v16 = vpop.f32.mrf.mxu1  ;;  %v2114_v47 = vadd.f32 %v5565_v31, %v5458_v63  ;;  %v2584_v8 = vadd.f32 %v5559_v51, %v2109_v19  ;;  %v5942_v51 = vld [vmem:[#allocation2_spill] sm:$0xff]  ;;  %v5944_v2 = vld [vmem:[#allocation16_spill] sm:$0xff] }
 0x1cc   : > { %v3661_v59 = vpack.c.bf16 %v3116_v13, %v3116_v13  ;;  %v3114_v32 = vmax.f32 %v3082_v41, 0.0  ;;  %v3087_v26 = vadd.f32 %v5645_v61, %v3048_v23  ;;  %v3046_v60 = vmul.f32 %v5637_v44, %v3007_v35  ;;  %v4127_v0 = vpop.f32.mrf.mxu0  ;;  %v5946_v48 = vld [vmem:[#allocation20_spill] sm:$0xff] }
 0x1cd   : > { %3274 = vst.msk [vmem:[%s5668_s25 + $0x10] sm:$0xf] %vm3269_vm8, %v3658_v22  ;;  %v3010_v42 = vadd.f32 %v4124_v53, %v2796_v46  ;;  %v2794_v34 = vadd.f32 %v2693_v16, %v2580_v6  ;;  %v4093_v29 = vpop.f32.mrf.mxu1  ;;  %v2112_v40 = vadd.f32 %v5569_v54, %v5461_v52  ;;  %v2589_v21 = vadd.f32 %v5563_v14, %v2114_v47  ;;  %v5945_v14 = vld [vmem:[#allocation3_spill] sm:$0xff]  ;;  %v5947_v16 = vld [vmem:[#allocation17_spill] sm:$0xff] }
 0x1ce   : > { %3277 = vst.msk [vmem:[%s5668_s25 + $0x1c] sm:$0xf] %vm3269_vm8, %v3661_v59  ;;  %v3659_v28 = vpack.c.bf16 %v3114_v32, %v3114_v32  ;;  %v3119_v49 = vmax.f32 %v3087_v26, 0.0  ;;  %v3085_v11 = vadd.f32 %v5645_v61, %v3046_v60  ;;  %v2799_v37 = vadd.f32 %v4093_v29, %v2585_v36  ;;  %v2920_v15 = vpop.f32.mrf.mxu0  ;;  %v5948_v32 = vld [vmem:[#allocation4_spill] sm:$0xff]  ;;  %v5949_v26 = vld [vmem:[#allocation22_spill] sm:$0xff] }
 0x1cf   : > { %v3049_v33 = vmul.f32 %v5637_v44, %v3010_v42  ;;  %v3008_v24 = vadd.f32 %v2907_v5, %v2794_v34  ;;  %v2706_v12 = vpop.f32.mrf.mxu1  ;;  %v2115_v1 = vadd.f32 %v5943_v4, %v5942_v51  ;;  %v2587_v43 = vadd.f32 %v5944_v2, %v2112_v40 }
 0x1d0   : > { %3275 = vst.msk [vmem:[%s5668_s25 + $0x14] sm:$0xf] %vm3269_vm8, %v3659_v28  ;;  %v3664_v30 = vpack.c.bf16 %v3119_v49, %v3119_v49  ;;  %v3117_v45 = vmax.f32 %v3085_v11, 0.0  ;;  %v3013_v10 = vadd.f32 %v4127_v0, %v2799_v37  ;;  %v2797_v17 = vadd.f32 %v2706_v12, %v2583_v18  ;;  %v4128_v20 = vpop.f32.mrf.mxu0  ;;  %v5950_v11 = vld [vmem:[#allocation19_spill] sm:$0xff] }
 0x1d1   : > { %v3088_v56 = vadd.f32 %v5645_v61, %v3049_v33  ;;  %v3047_v63 = vmul.f32 %v5637_v44, %v3008_v24  ;;  %v4094_v31 = vpop.f32.mrf.mxu1  ;;  %v2113_v13 = vadd.f32 %v5946_v48, %v5945_v14  ;;  %v2590_v59 = vadd.f32 %v5947_v16, %v2115_v1  ;;  %v5956_v1 = vld [vmem:[#allocation23_spill] sm:$0xff] }
 0x1d2   : > { %3280 = vst.msk [vmem:[%s5668_s25 + $0x28] sm:$0xf] %vm3269_vm8, %v3664_v30  ;;  %v3662_v58 = vpack.c.bf16 %v3117_v45, %v3117_v45  ;;  %v3052_v27 = vmul.f32 %v5637_v44, %v3013_v10  ;;  %v3011_v55 = vadd.f32 %v2920_v15, %v2797_v17  ;;  %v2800_v7 = vadd.f32 %v4094_v31, %v2586_v50  ;;  %v2923_v3 = vpop.f32.mrf.mxu0  ;;  %v5951_v15 = vld [vmem:[#allocation5_spill] sm:$0xff]  ;;  %v5952_v50 = vld [vmem:[#allocation24_spill] sm:$0xff] }
 0x1d3   : > { %v3120_v39 = vmax.f32 %v3088_v56, 0.0  ;;  %v3086_v52 = vadd.f32 %v5645_v61, %v3047_v63  ;;  %v2709_v54 = vpop.f32.mrf.mxu1  ;;  %v2118_v60 = vadd.f32 %v5949_v26, %v5948_v32  ;;  %v2588_v37 = vadd.f32 %v5950_v11, %v2113_v13  ;;  %v5954_v56 = vld [vmem:[#allocation6_spill] sm:$0xff]  ;;  %v5959_v13 = vld [vmem:[#allocation25_spill] sm:$0xff] }
 0x1d4   : > { %3278 = vst.msk [vmem:[%s5668_s25 + $0x20] sm:$0xf] %vm3269_vm8, %v3662_v58  ;;  %v3091_v57 = vadd.f32 %v5645_v61, %v3052_v27  ;;  %v3050_v62 = vmul.f32 %v5637_v44, %v3011_v55  ;;  %v3014_v53 = vadd.f32 %v4128_v20, %v2800_v7  ;;  %v2798_v6 = vadd.f32 %v2709_v54, %v2584_v8  ;;  %v4131_v25 = vpop.f32.mrf.mxu0  ;;  %v5953_v8 = vld [vmem:[#allocation21_spill] sm:$0xff]  ;;  %v5955_v63 = vld [vmem:[#allocation26_spill] sm:$0xff]  ;;  %v5958_v54 = vld [vmem:[#allocation28_spill] sm:$0xff] }
 0x1d5   : > { %v3665_v41 = vpack.c.bf16 %v3120_v39, %v3120_v39  ;;  %v3118_v23 = vmax.f32 %v3086_v52, 0.0  ;;  %v4097_v35 = vpop.f32.mrf.mxu1  ;;  %v2116_v47 = vadd.f32 %v5952_v50, %v5951_v15  ;;  %v2593_v40 = vadd.f32 %v5953_v8, %v2118_v60  ;;  %v5957_v52 = vld [vmem:[#allocation7_spill] sm:$0xff] }
 0x1d6   : > { %v3123_v5 = vmax.f32 %v3091_v57, 0.0  ;;  %v3089_v36 = vadd.f32 %v5645_v61, %v3050_v62  ;;  %v3053_v9 = vmul.f32 %v5637_v44, %v3014_v53  ;;  %v3012_v22 = vadd.f32 %v2923_v3, %v2798_v6  ;;  %v2936_v46 = vpop.f32.mrf.mxu0  ;;  %v5962_v60 = vld [vmem:[#allocation27_spill] sm:$0xff] }
 0x1d7   : > { %3281 = vst.msk [vmem:[%s5668_s25 + $0x2c] sm:$0xf] %vm3269_vm8, %v3665_v41  ;;  %v3663_v0 = vpack.c.bf16 %v3118_v23, %v3118_v23  ;;  %v2803_v18 = vadd.f32 %v4097_v35, %v2589_v21  ;;  %v2722_v19 = vpop.f32.mrf.mxu1  ;;  %v2119_v31 = vadd.f32 %v5955_v63, %v5954_v56  ;;  %v2591_v39 = vadd.f32 %v5956_v1, %v2116_v47  ;;  %v5960_v23 = vld [vmem:[#allocation8_spill] sm:$0xff]  ;;  %v5961_v35 = vld [vmem:[#allocation30_spill] sm:$0xff]  ;;  %v5965_v47 = vld [vmem:[#allocation29_spill] sm:$0xff] }
 0x1d8   : > { %v3668_v42 = vpack.c.bf16 %v3123_v5, %v3123_v5  ;;  %v3121_v34 = vmax.f32 %v3089_v36, 0.0  ;;  %v3092_v29 = vadd.f32 %v5645_v61, %v3053_v9  ;;  %v3051_v28 = vmul.f32 %v5637_v44, %v3012_v22  ;;  %v4132_v49 = vpop.f32.mrf.mxu0 }
 0x1d9   : > { %3279 = vst.msk [vmem:[%s5668_s25 + $0x24] sm:$0xf] %vm3269_vm8, %v3663_v0  ;;  %v3017_v33 = vadd.f32 %v4131_v25, %v2803_v18  ;;  %v2801_v24 = vadd.f32 %v2722_v19, %v2587_v43  ;;  %v4098_v12 = vpop.f32.mrf.mxu1  ;;  %v2117_v57 = vadd.f32 %v5958_v54, %v5957_v52  ;;  %v2594_v41 = vadd.f32 %v5959_v13, %v2119_v31  ;;  %v5963_v18 = vld [vmem:[#allocation9_spill] sm:$0xff]  ;;  %v5964_v19 = vld [vmem:[#allocation32_spill] sm:$0xff]  ;;  %v5968_v31 = vld [vmem:[#allocation31_spill] sm:$0xff] }
 0x1da   : > { %3284 = vst.msk [vmem:[%s5668_s25 + $0x38] sm:$0xf] %vm3269_vm8, %v3668_v42  ;;  %v3666_v30 = vpack.c.bf16 %v3121_v34, %v3121_v34  ;;  %v3124_v45 = vmax.f32 %v3092_v29, 0.0  ;;  %v3090_v10 = vadd.f32 %v5645_v61, %v3051_v28  ;;  %v2804_v17 = vadd.f32 %v4098_v12, %v2590_v59  ;;  %v2939_v20 = vpop.f32.mrf.mxu0  ;;  %v5967_v12 = vld [vmem:[#allocation34_spill] sm:$0xff] }
 0x1db   : > { %v3056_v58 = vmul.f32 %v5637_v44, %v3017_v33  ;;  %v3015_v27 = vadd.f32 %v2936_v46, %v2801_v24  ;;  %v2725_v55 = vpop.f32.mrf.mxu1  ;;  %v2122_v5 = vadd.f32 %v5961_v35, %v5960_v23  ;;  %v2592_v0 = vadd.f32 %v5962_v60, %v2117_v57  ;;  %v5966_v24 = vld [vmem:[#allocation10_spill] sm:$0xff]  ;;  %v5971_v57 = vld [vmem:[#allocation33_spill] sm:$0xff]  ;;  %v5973_v35 = vld [vmem:[#allocation12_spill] sm:$0xff] }
 0x1dc   : > { %3282 = vst.msk [vmem:[%s5668_s25 + $0x30] sm:$0xf] %vm3269_vm8, %v3666_v30  ;;  %v3669_v7 = vpack.c.bf16 %v3124_v45, %v3124_v45  ;;  %v3122_v3 = vmax.f32 %v3090_v10, 0.0  ;;  %v3018_v21 = vadd.f32 %v4132_v49, %v2804_v17  ;;  %v2802_v51 = vadd.f32 %v2725_v55, %v2588_v37  ;;  %v4135_v4 = vpop.f32.mrf.mxu0  ;;  %v5970_v55 = vld [vmem:[#allocation36_spill] sm:$0xff] }
 0x1dd   : > { %v3095_v62 = vadd.f32 %v5645_v61, %v3056_v58  ;;  %v3054_v53 = vmul.f32 %v5637_v44, %v3015_v27  ;;  %v4101_v6 = vpop.f32.mrf.mxu1  ;;  %v2120_v42 = vadd.f32 %v5964_v19, %v5963_v18  ;;  %v2597_v33 = vadd.f32 %v5965_v47, %v2122_v5  ;;  %v5969_v27 = vld [vmem:[#allocation11_spill] sm:$0xff]  ;;  %v5974_v5 = vld [vmem:[#allocation38_spill] sm:$0xff]  ;;  %v5976_v18 = vld [vmem:[#allocation40_spill] sm:$0xff] }
 0x1de   : > { %3285 = vst.msk [vmem:[%s5668_s25 + $0x3c] sm:$0xf] %vm3269_vm8, %v3669_v7  ;;  %v3667_v25 = vpack.c.bf16 %v3122_v3, %v3122_v3  ;;  %v3057_v2 = vmul.f32 %v5637_v44, %v3018_v21  ;;  %v3016_v43 = vadd.f32 %v2939_v20, %v2802_v51  ;;  %v2807_v14 = vadd.f32 %v4101_v6, %v2593_v40  ;;  %v2952_v48 = vpop.f32.mrf.mxu0 }
 0x1df   : > { %v3127_v36 = vmax.f32 %v3095_v62, 0.0  ;;  %v3093_v9 = vadd.f32 %v5645_v61, %v3054_v53  ;;  %v2738_v22 = vpop.f32.mrf.mxu1  ;;  %v2123_v30 = vadd.f32 %v5967_v12, %v5966_v24  ;;  %v2595_v58 = vadd.f32 %v5968_v31, %v2120_v42  ;;  %v5977_v42 = vld [vmem:[#allocation14_spill] sm:$0xff]  ;;  %v5979_v12 = vld [vmem:[#allocation15_spill] sm:$0xff] }
 0x1e0   : > { %3283 = vst.msk [vmem:[%s5668_s25 + $0x34] sm:$0xf] %vm3269_vm8, %v3667_v25  ;;  %v3096_v46 = vadd.f32 %v5645_v61, %v3057_v2  ;;  %v3055_v16 = vmul.f32 %v5637_v44, %v3016_v43  ;;  %v3021_v59 = vadd.f32 %v4135_v4, %v2807_v14  ;;  %v2805_v32 = vadd.f32 %v2738_v22, %v2591_v39  ;;  %v4136_v26 = vpop.f32.mrf.mxu0  ;;  %v5981_v31 = vld [vmem:[#allocation39_spill] sm:$0xff] }
 0x1e1   : > { %v3672_v34 = vpack.c.bf16 %v3127_v36, %v3127_v36  ;;  %v3125_v29 = vmax.f32 %v3093_v9, 0.0  ;;  %v4102_v28 = vpop.f32.mrf.mxu1  ;;  %v2121_v7 = vadd.f32 %v5970_v55, %v5969_v27  ;;  %v2598_v62 = vadd.f32 %v5971_v57, %v2123_v30  ;;  %v5980_v30 = vld [vmem:[#allocation43_spill] sm:$0xff]  ;;  %v5982_v27 = vld [vmem:[#allocation41_spill] sm:$0xff] }
 0x1e2   : > { %v3128_v49 = vmax.f32 %v3096_v46, 0.0  ;;  %v3094_v11 = vadd.f32 %v5645_v61, %v3055_v16  ;;  %v3060_v37 = vmul.f32 %v5637_v44, %v3021_v59  ;;  %v3019_v15 = vadd.f32 %v2952_v48, %v2805_v32  ;;  %v2955_v50 = vpop.f32.mrf.mxu0 }
 0x1e3   : > { %3288 = vst.msk [vmem:[%s5668_s25 + $0x48] sm:$0xf] %vm3269_vm8, %v3672_v34  ;;  %v3670_v45 = vpack.c.bf16 %v3125_v29, %v3125_v29  ;;  %v2808_v10 = vadd.f32 %v4102_v28, %v2594_v41  ;;  %v2741_v17 = vpop.f32.mrf.mxu1  ;;  %v5972_v41 = vld [vmem:[#allocation35_spill] sm:$0xff]  ;;  %v2126_v36 = vadd.f32 %v5974_v5, %v5973_v35  ;;  %v2127_v34 = vadd.f32 %v5622_v38, %v5977_v42 }
 0x1e4   : > { %v3673_v20 = vpack.c.bf16 %v3128_v49, %v3128_v49  ;;  %v3126_v8 = vmax.f32 %v3094_v11, 0.0  ;;  %v3099_v40 = vadd.f32 %v5645_v61, %v3060_v37  ;;  %v3058_v56 = vmul.f32 %v5637_v44, %v3019_v15  ;;  %v4139_v63 = vpop.f32.mrf.mxu0 }
 0x1e5   : > { %3286 = vst.msk [vmem:[%s5668_s25 + $0x40] sm:$0xf] %vm3269_vm8, %v3670_v45  ;;  %v3022_v3 = vadd.f32 %v4136_v26, %v2808_v10  ;;  %v2806_v21 = vadd.f32 %v2741_v17, %v2592_v0  ;;  %v4105_v51 = vpop.f32.mrf.mxu1  ;;  %v2596_v23 = vadd.f32 %v5972_v41, %v2121_v7  ;;  %v5975_v0 = vld [vmem:[#allocation13_spill] sm:$0xff]  ;;  %v2125_v45 = vadd.f32 %v5980_v30, %v5979_v12 }
 0x1e6   : > { %3289 = vst.msk [vmem:[%s5668_s25 + $0x4c] sm:$0xf] %vm3269_vm8, %v3673_v20  ;;  %v3671_v4 = vpack.c.bf16 %v3126_v8, %v3126_v8  ;;  %v3131_v1 = vmax.f32 %v3099_v40, 0.0  ;;  %v3097_v39 = vadd.f32 %v5645_v61, %v3058_v56  ;;  %v2811_v52 = vadd.f32 %v4105_v51, %v2597_v33  ;;  %v2968_v54 = vpop.f32.mrf.mxu0  ;;  %v5978_v33 = vld [vmem:[#allocation37_spill] sm:$0xff] }
 0x1e7   : > { %v3061_v53 = vmul.f32 %v5637_v44, %v3022_v3  ;;  %v3020_v6 = vadd.f32 %v2955_v50, %v2806_v21  ;;  %v2754_v25 = vpop.f32.mrf.mxu1  ;;  %v2124_v19 = vadd.f32 %v5976_v18, %v5975_v0  ;;  %v2601_v24 = vadd.f32 %v5978_v33, %v2126_v36 }
 0x1e8   : > { %3287 = vst.msk [vmem:[%s5668_s25 + $0x44] sm:$0xf] %vm3269_vm8, %v3671_v4  ;;  %v3676_v2 = vpack.c.bf16 %v3131_v1, %v3131_v1  ;;  %v3129_v43 = vmax.f32 %v3097_v39, 0.0  ;;  %v3025_v14 = vadd.f32 %v4139_v63, %v2811_v52  ;;  %v2809_v48 = vadd.f32 %v2754_v25, %v2595_v58  ;;  %v4140_v13 = vpop.f32.mrf.mxu0  ;;  %v5983_v52 = vld [vmem:[#allocation42_spill] sm:$0xff] }
 0x1e9   : > { %v3100_v9 = vadd.f32 %v5645_v61, %v3061_v53  ;;  %v3059_v22 = vmul.f32 %v5637_v44, %v3020_v6  ;;  %v4106_v46 = vpop.f32.mrf.mxu1  ;;  %v2599_v58 = vadd.f32 %v5981_v31, %v2124_v19  ;;  %v2602_v55 = vadd.f32 %v5982_v27, %v2127_v34 }
 0x1ea   : > { %3292 = vst.msk [vmem:[%s5668_s25 + $0x58] sm:$0xf] %vm3269_vm8, %v3676_v2  ;;  %v3674_v16 = vpack.c.bf16 %v3129_v43, %v3129_v43  ;;  %v3064_v59 = vmul.f32 %v5637_v44, %v3025_v14  ;;  %v3023_v32 = vadd.f32 %v2968_v54, %v2809_v48  ;;  %v2812_v26 = vadd.f32 %v4106_v46, %v2598_v62  ;;  %v2971_v60 = vpop.f32.mrf.mxu0 }
 0x1eb   : > { %v3132_v29 = vmax.f32 %v3100_v9, 0.0  ;;  %v3098_v28 = vadd.f32 %v5645_v61, %v3059_v22  ;;  %v2757_v49 = vpop.f32.mrf.mxu1  ;;  %v2600_v54 = vadd.f32 %v5983_v52, %v2125_v45 }
 0x1ec   : > { %3290 = vst.msk [vmem:[%s5668_s25 + $0x50] sm:$0xf] %vm3269_vm8, %v3674_v16  ;;  %v3103_v11 = vadd.f32 %v5645_v61, %v3064_v59  ;;  %v3062_v37 = vmul.f32 %v5637_v44, %v3023_v32  ;;  %v3026_v15 = vadd.f32 %v4140_v13, %v2812_v26  ;;  %v2810_v50 = vadd.f32 %v2757_v49, %v2596_v23  ;;  %v4143_v47 = vpop.f32.mrf.mxu0 }
 0x1ed   : > { %v3677_v38 = vpack.c.bf16 %v3132_v29, %v3132_v29  ;;  %v3130_v10 = vmax.f32 %v3098_v28, 0.0  ;;  %v4109_v17 = vpop.f32.mrf.mxu1 }
 0x1ee   : > { %v3135_v20 = vmax.f32 %v3103_v11, 0.0  ;;  %v3101_v8 = vadd.f32 %v5645_v61, %v3062_v37  ;;  %v3065_v40 = vmul.f32 %v5637_v44, %v3026_v15  ;;  %v3024_v56 = vadd.f32 %v2971_v60, %v2810_v50  ;;  %v2984_v63 = vpop.f32.mrf.mxu0 }
 0x1ef   : > { %3293 = vst.msk [vmem:[%s5668_s25 + $0x5c] sm:$0xf] %vm3269_vm8, %v3677_v38  ;;  %v3675_v7 = vpack.c.bf16 %v3130_v10, %v3130_v10  ;;  %v2815_v3 = vadd.f32 %v4109_v17, %v2601_v24  ;;  %v2770_v21 = vpop.f32.mrf.mxu1 }
 0x1f0   : > { %v3680_v51 = vpack.c.bf16 %v3135_v20, %v3135_v20  ;;  %v3133_v4 = vmax.f32 %v3101_v8, 0.0  ;;  %v3104_v1 = vadd.f32 %v5645_v61, %v3065_v40  ;;  %v3063_v39 = vmul.f32 %v5637_v44, %v3024_v56  ;;  %v4144_v6 = vpop.f32.mrf.mxu0 }
 0x1f1   : > { %3291 = vst.msk [vmem:[%s5668_s25 + $0x54] sm:$0xf] %vm3269_vm8, %v3675_v7  ;;  %v3029_v57 = vadd.f32 %v4143_v47, %v2815_v3  ;;  %v2813_v62 = vadd.f32 %v2770_v21, %v2599_v58  ;;  %v4110_v53 = vpop.f32.mrf.mxu1 }
 0x1f2   : > { %3296 = vst.msk [vmem:[%s5668_s25 + $0x68] sm:$0xf] %vm3269_vm8, %v3680_v51  ;;  %v3678_v25 = vpack.c.bf16 %v3133_v4, %v3133_v4  ;;  %v3136_v2 = vmax.f32 %v3104_v1, 0.0  ;;  %v3102_v43 = vadd.f32 %v5645_v61, %v3063_v39  ;;  %v2816_v14 = vadd.f32 %v4110_v53, %v2602_v55  ;;  %v2987_v46 = vpop.f32.mrf.mxu0 }
 0x1f3   : > { %v3068_v48 = vmul.f32 %v5637_v44, %v3029_v57  ;;  %v3027_v13 = vadd.f32 %v2984_v63, %v2813_v62  ;;  %v2773_v41 = vpop.f32.mrf.mxu1 }
 0x1f4   : > { %3294 = vst.msk [vmem:[%s5668_s25 + $0x60] sm:$0xf] %vm3269_vm8, %v3678_v25  ;;  %v3681_v23 = vpack.c.bf16 %v3136_v2, %v3136_v2  ;;  %v3134_v35 = vmax.f32 %v3102_v43, 0.0  ;;  %v3030_v5 = vadd.f32 %v4144_v6, %v2816_v14  ;;  %v2814_v36 = vadd.f32 %v2773_v41, %v2600_v54 }
 0x1f5   : > { %v3107_v9 = vadd.f32 %v5645_v61, %v3068_v48  ;;  %v3066_v22 = vmul.f32 %v5637_v44, %v3027_v13 }
 0x1f6   : > { %3297 = vst.msk [vmem:[%s5668_s25 + $0x6c] sm:$0xf] %vm3269_vm8, %v3681_v23  ;;  %v3679_v16 = vpack.c.bf16 %v3134_v35, %v3134_v35  ;;  %v3069_v59 = vmul.f32 %v5637_v44, %v3030_v5  ;;  %v3028_v32 = vadd.f32 %v2987_v46, %v2814_v36 }
 0x1f7   : > { %v3139_v26 = vmax.f32 %v3107_v9, 0.0  ;;  %v3105_v60 = vadd.f32 %v5645_v61, %v3066_v22 }
 0x1f8   : > { %3295 = vst.msk [vmem:[%s5668_s25 + $0x64] sm:$0xf] %vm3269_vm8, %v3679_v16  ;;  %v3108_v0 = vadd.f32 %v5645_v61, %v3069_v59  ;;  %v3067_v18 = vmul.f32 %v5637_v44, %v3028_v32 }
 0x1f9   : > { %v3684_v19 = vpack.c.bf16 %v3139_v26, %v3139_v26  ;;  %v3137_v42 = vmax.f32 %v3105_v60, 0.0 }
 0x1fa   : > { %v3140_v34 = vmax.f32 %v3108_v0, 0.0  ;;  %v3106_v29 = vadd.f32 %v5645_v61, %v3067_v18 }
 0x1fb   : > { %3300 = vst.msk [vmem:[%s5668_s25 + $0x78] sm:$0xf] %vm3269_vm8, %v3684_v19  ;;  %v3682_v28 = vpack.c.bf16 %v3137_v42, %v3137_v42 }
 0x1fc   : > { %v3685_v49 = vpack.c.bf16 %v3140_v34, %v3140_v34  ;;  %v3138_v11 = vmax.f32 %v3106_v29, 0.0 }
 0x1fd   : > { %3298 = vst.msk [vmem:[%s5668_s25 + $0x70] sm:$0xf] %vm3269_vm8, %v3682_v28 }
 0x1fe   : > { %3301 = vst.msk [vmem:[%s5668_s25 + $0x7c] sm:$0xf] %vm3269_vm8, %v3685_v49  ;;  %v3683_v37 = vpack.c.bf16 %v3138_v11, %v3138_v11 }
 0x200   : > { %3299 = vst.msk [vmem:[%s5668_s25 + $0x74] sm:$0xf] %vm3269_vm8, %v3683_v37 }
 0x201 PF: > { %s14_s17 = sadd.s32 1, %s4224_s17   ;;  %s5984_s15 = smov %s4220_s16 }
 0x202   : > { %p11_p5 = scmp.ge.s32.totalorder %s14_s17, 4   ;;  %s5985_s16 = smov %s5987_s18 }
 0x204   :  { %13 = sbr.rel (!%p11_p5) target bundleno = 2 (0x2), region = 75 }

</bundles_post_ra>
